<compile_context>
chip_gen: v5e
topology: v5e:2x2
jax: 0.10.0
libtpu: 0.0.40
codegen_flags: <defaults>
</compile_context>

<pallas_src>
import jax
import jax.numpy as jnp
from jax import lax
from jax.experimental import pallas as pl
from jax.experimental.pallas import tpu as pltpu


def _round_up(x, m):
    return ((x + m - 1) // m) * m


def _sigmoid_via_tanh(x):
    # One EUP push (tanh) instead of exp + reciprocal (two pushes).
    return 0.5 * (jnp.tanh(0.5 * x) + 1.0)


def _repack_gates(w, H, Hp, axis):
    """Split PyTorch's (i,f,g,o)-stacked gate axis (size 4H) into 4 blocks and
    zero-pad each to Hp so every gate slice is 128-lane aligned."""
    blocks = jnp.split(w, 4, axis=axis)
    pad = [(0, 0)] * w.ndim
    pad[axis] = (0, Hp - H)
    return jnp.concatenate([jnp.pad(b, pad) for b in blocks], axis=axis)


# --------------------------------------------------------------------------
# Single kernel: sequential LSTM recurrence (time-chunked) + fused decode.
# --------------------------------------------------------------------------
def _lstm_kernel(xp_ref, whh_ref, wdec_ref, bdec_ref, h0_ref, c0_ref,
                 out_ref, h_sc, c_sc, hs_sc):
    TT, Bp, _ = xp_ref.shape
    Hp = h_sc.shape[-1]

    @pl.when(pl.program_id(0) == 0)
    def _():
        h_sc[...] = jnp.broadcast_to(h0_ref[...], h_sc.shape)
        c_sc[...] = jnp.broadcast_to(c0_ref[...], c_sc.shape)

    h = h_sc[...]            # f32 carry, lives in vregs across the chunk
    c = c_sc[...]

    # Static unroll over the chunk (TT is small); no staging slab, no per-step
    # bias add — the gather already contains x_t @ W_ih^T + bias.
    for tt in range(TT):
        # Decode input = h_{t-1} (hidden BEFORE consuming x_t), matching
        # torch.cat([output0s, outputs[:-1]]).
        hs_sc[tt * Bp:(tt + 1) * Bp, :] = h.astype(hs_sc.dtype)

        gates = (xp_ref[tt].astype(jnp.float32) +
                 jnp.dot(h.astype(whh_ref.dtype), whh_ref[...],
                         preferred_element_type=jnp.float32))

        # PyTorch gate order (i, f, g, o); each block is 128-lane aligned.
        i_g = _sigmoid_via_tanh(gates[:, 0 * Hp:1 * Hp])
        f_g = _sigmoid_via_tanh(gates[:, 1 * Hp:2 * Hp])
        g_g = jnp.tanh(gates[:, 2 * Hp:3 * Hp])
        o_g = _sigmoid_via_tanh(gates[:, 3 * Hp:4 * Hp])

        c = f_g * c + i_g * g_g
        h = o_g * jnp.tanh(c)

    h_sc[...] = h
    c_sc[...] = c

    # Fused per-chunk decode epilogue: hides under recurrence MXU slack and
    # removes the hs HBM round trip + a second pallas_call.
    out_ref[...] = (jnp.dot(hs_sc[...], wdec_ref[...],
                            preferred_element_type=jnp.float32)
                    + bdec_ref[...]).astype(out_ref.dtype)


# --------------------------------------------------------------------------
# Host wrapper.
# --------------------------------------------------------------------------
def lstm_character_predictor_forward(ints, params, *, time_chunk=8):
    """ints: int32 [T, B].  Returns logits float32 [T, B, num_classes]."""
    T, B = ints.shape
    H = params["output0"].shape[0]
    C = params["decode_w"].shape[0]

    # Pad to the vreg grid: sublanes (8) on batch, lanes (128) on features.
    Bp = _round_up(B, 8)
    Hp = _round_up(H, 128)
    Cp = _round_up(C, 128)

    # Time chunk (= static unroll depth); pad T up to a multiple instead of
    # falling back to per-step grid iterations.
    TT = max(1, int(time_chunk))
    Tpad = _round_up(T, TT)

    f32, bf16 = jnp.float32, jnp.bfloat16

    # ---- host-side weight prep ------------------------------------------
    # Projected-embedding table: proj[c] = enc[c] @ W_ih^T + (b_ih + b_hh),
    # gate-repacked/padded to (num_classes, 4*Hp), bf16.  Padded gate lanes
    # have pre-activation 0 -> (i,f,o)=0.5, g=0; with c0 padded to 0 the
    # padded hidden lanes stay 0 and never feed real lanes (zero weights).
    bias = params["bias_ih"] + params["bias_hh"]
    proj = params["encodings"] @ params["weight_ih"].T + bias[None, :]
    proj = _repack_gates(proj, H, Hp, axis=1).astype(bf16)      # (nc, 4Hp)

    # W_hh^T, gate-repacked/padded -> (Hp, 4Hp), bf16 MXU operand.
    w_hh = _repack_gates(params["weight_hh"], H, Hp, axis=0)    # (4Hp, H)
    w_hh = jnp.pad(w_hh, ((0, 0), (0, Hp - H)))                 # (4Hp, Hp)
    w_hh_t = w_hh.T.astype(bf16)                                # (Hp, 4Hp)

    h0 = jnp.pad(params["output0"], (0, Hp - H))[None, :].astype(f32)
    c0 = jnp.pad(params["memory0"], (0, Hp - H))[None, :].astype(f32)

    w_dec = jnp.pad(params["decode_w"].T,
                    ((0, Hp - H), (0, Cp - C))).astype(bf16)    # (Hp, Cp)
    b_dec = jnp.pad(params["decode_b"], (0, Cp - C))[None, :].astype(f32)

    # Gather of the projected table (glue).  Padded time steps / batch rows
    # get zero pre-activations; they compute finite junk and are sliced off.
    xp = proj[ints]                                             # (T, B, 4Hp)
    xp = jnp.pad(xp, ((0, Tpad - T), (0, Bp - B), (0, 0)))      # (Tpad,Bp,4Hp)

    # Explicit VMEM budget: safe on v5e/v6e (128 MiB) and v7x (64 MiB).
    vmem_limit = 32 * 1024 * 1024

    logits_flat = pl.pallas_call(
        _lstm_kernel,
        out_shape=jax.ShapeDtypeStruct((Tpad * Bp, Cp), f32),
        grid_spec=pltpu.PrefetchScalarGridSpec(
            num_scalar_prefetch=0,
            grid=(Tpad // TT,),
            in_specs=[
                pl.BlockSpec((TT, Bp, 4 * Hp), lambda g: (g, 0, 0)),  # proj chunk
                pl.BlockSpec((Hp, 4 * Hp), lambda g: (0, 0)),         # W_hh^T
                pl.BlockSpec((Hp, Cp), lambda g: (0, 0)),             # W_dec
                pl.BlockSpec((1, Cp), lambda g: (0, 0)),              # b_dec
                pl.BlockSpec((1, Hp), lambda g: (0, 0)),              # h0
                pl.BlockSpec((1, Hp), lambda g: (0, 0)),              # c0
            ],
            out_specs=pl.BlockSpec((TT * Bp, Cp), lambda g: (g, 0)),
            scratch_shapes=[
                pltpu.VMEM((Bp, Hp), f32),            # h carry
                pltpu.VMEM((Bp, Hp), f32),            # c carry
                pltpu.VMEM((TT * Bp, Hp), bf16),      # chunk hs for decode
            ],
        ),
        compiler_params=pltpu.CompilerParams(
            dimension_semantics=("arbitrary",),       # time is sequential
            vmem_limit_bytes=vmem_limit),
    )(xp, w_hh_t, w_dec, b_dec, h0, c0)

    return logits_flat.reshape(Tpad, Bp, Cp)[:T, :B, :C]


# --------------------------------------------------------------------------
# Pure-JAX reference (matches the PyTorch forward() semantics, f32).
# --------------------------------------------------------------------------
def reference_forward(ints, params):
    T, B = ints.shape
    H = params["output0"].shape[0]
    x = params["encodings"][ints]                               # [T, B, indim]
    w_ih = params["weight_ih"]                                  # [4H, indim]
    w_hh = params["weight_hh"]                                  # [4H, H]
    b = params["bias_ih"] + params["bias_hh"]
    h0 = jnp.broadcast_to(params["output0"][None, :], (B, H))
    c0 = jnp.broadcast_to(params["memory0"][None, :], (B, H))

    def step(carry, x_t):
        h, c = carry
        gates = x_t @ w_ih.T + h @ w_hh.T + b
        i, f, g, o = jnp.split(gates, 4, axis=-1)
        i, f, o = jax.nn.sigmoid(i), jax.nn.sigmoid(f), jax.nn.sigmoid(o)
        g = jnp.tanh(g)
        c_new = f * c + i * g
        h_new = o * jnp.tanh(c_new)
        return (h_new, c_new), h          # emit h BEFORE the update (= h_{t-1})

    _, hs = lax.scan(step, (h0, c0), x)                         # [T, B, H]
    return hs @ params["decode_w"].T + params["decode_b"]       # [T, B, C]


def init_params(key, encoding_size, recurrence_size, num_classes=256):
    H, indim = recurrence_size, encoding_size
    k = 1.0 / jnp.sqrt(jnp.float32(H))
    ks = jax.random.split(key, 9)
    return {
        # torch.rand -> uniform[0, 1)
        "output0":  jax.random.uniform(ks[0], (H,), jnp.float32),
        "memory0":  jax.random.uniform(ks[1], (H,), jnp.float32),
        "encodings": jax.random.uniform(ks[2], (num_classes, indim), jnp.float32),
        # nn.LSTM / nn.Linear default init -> uniform(-1/sqrt(H), 1/sqrt(H))
        "weight_ih": jax.random.uniform(ks[3], (4 * H, indim), jnp.float32, -k, k),
        "weight_hh": jax.random.uniform(ks[4], (4 * H, H), jnp.float32, -k, k),
        "bias_ih":   jax.random.uniform(ks[5], (4 * H,), jnp.float32, -k, k),
        "bias_hh":   jax.random.uniform(ks[6], (4 * H,), jnp.float32, -k, k),
        "decode_w":  jax.random.uniform(ks[7], (num_classes, H), jnp.float32, -k, k),
        "decode_b":  jax.random.uniform(ks[8], (num_classes,), jnp.float32, -k, k),
    }


if __name__ == "__main__":
    T, B = 8, 2
    encoding_size, recurrence_size, num_classes = 16, 32, 256

    root = jax.random.PRNGKey(0)
    k_param, k_data = jax.random.split(root)
    params = init_params(k_param, encoding_size, recurrence_size, num_classes)
    ints = jax.random.randint(k_data, (T, B), 0, num_classes, dtype=jnp.int32)

    logits = jax.block_until_ready(lstm_character_predictor_forward(ints, params))
    ref = jax.block_until_ready(reference_forward(ints, params))

    assert logits.shape == (T, B, num_classes)
    # bf16 MXU operands / bf16 projected table -> looser tolerance than pure f32.
    max_err = float(jnp.max(jnp.abs(logits - ref)))
    assert max_err < 5e-2, f"mismatch vs reference: max |diff| = {max_err}"

    print("KERNEL_OK")
</pallas_src>

<mosaic_0001>
module attributes {stable_mosaic.version = 11 : i64} {
  func.func @_lstm_kernel(%arg0: i32, %arg1: memref<8x8x512xbf16, #tpu.memory_space<vmem>>, %arg2: memref<128x512xbf16, #tpu.memory_space<vmem>>, %arg3: memref<128x256xbf16, #tpu.memory_space<vmem>>, %arg4: memref<1x256xf32, #tpu.memory_space<vmem>>, %arg5: memref<1x128xf32, #tpu.memory_space<vmem>>, %arg6: memref<1x128xf32, #tpu.memory_space<vmem>>, %arg7: memref<64x256xf32, #tpu.memory_space<vmem>>, %arg8: memref<8x128xf32, #tpu.memory_space<vmem>>, %arg9: memref<8x128xf32, #tpu.memory_space<vmem>>, %arg10: memref<64x128xbf16, #tpu.memory_space<vmem>>) attributes {dimension_semantics = [#tpu.dimension_semantics<arbitrary>], iteration_bounds = array<i64: 1>, scalar_prefetch = 0 : i64, scratch_operands = 3 : i64, tpu.core_type = #tpu.core_type<tc>, window_params = [{transform_indices = @transform_0, window_bounds = array<i64: 8, 8, 512>}, {pipeline_mode = #tpu.pipeline_mode<synchronous>, transform_indices = @transform_1, window_bounds = array<i64: 128, 512>}, {pipeline_mode = #tpu.pipeline_mode<synchronous>, transform_indices = @transform_2, window_bounds = array<i64: 128, 256>}, {pipeline_mode = #tpu.pipeline_mode<synchronous>, transform_indices = @transform_3, window_bounds = array<i64: 1, 256>}, {pipeline_mode = #tpu.pipeline_mode<synchronous>, transform_indices = @transform_4, window_bounds = array<i64: 1, 128>}, {pipeline_mode = #tpu.pipeline_mode<synchronous>, transform_indices = @transform_5, window_bounds = array<i64: 1, 128>}, {transform_indices = @transform_6, window_bounds = array<i64: 64, 256>}]} {
    %c0_i32 = arith.constant 0 : i32
    %0 = arith.cmpi eq, %arg0, %c0_i32 : i32
    %1 = arith.extui %0 : i1 to i32
    %c0_i32_0 = arith.constant 0 : i32
    %2 = arith.cmpi ne, %1, %c0_i32_0 : i32
    scf.if %2 {
      %c0_138 = arith.constant 0 : index
      %c0_139 = arith.constant 0 : index
      %334 = vector.load %arg5[%c0_138, %c0_139] : memref<1x128xf32, #tpu.memory_space<vmem>>, vector<1x128xf32>
      %335 = vector.shape_cast %334 : vector<1x128xf32> to vector<1x128xf32>
      %336 = vector.broadcast %335 : vector<1x128xf32> to vector<8x128xf32>
      %c0_140 = arith.constant 0 : index
      %c0_141 = arith.constant 0 : index
      %337 = vector.load %arg8[%c0_140, %c0_141] : memref<8x128xf32, #tpu.memory_space<vmem>>, vector<8x128xf32>
      tpu.vector_store %arg8[%c0_140, %c0_141], %336 {strides = array<i32>} : memref<8x128xf32, #tpu.memory_space<vmem>>, vector<8x128xf32>,
      %c0_142 = arith.constant 0 : index
      %c0_143 = arith.constant 0 : index
      %338 = vector.load %arg6[%c0_142, %c0_143] : memref<1x128xf32, #tpu.memory_space<vmem>>, vector<1x128xf32>
      %339 = vector.shape_cast %338 : vector<1x128xf32> to vector<1x128xf32>
      %340 = vector.broadcast %339 : vector<1x128xf32> to vector<8x128xf32>
      %c0_144 = arith.constant 0 : index
      %c0_145 = arith.constant 0 : index
      %341 = vector.load %arg9[%c0_144, %c0_145] : memref<8x128xf32, #tpu.memory_space<vmem>>, vector<8x128xf32>
      tpu.vector_store %arg9[%c0_144, %c0_145], %340 {strides = array<i32>} : memref<8x128xf32, #tpu.memory_space<vmem>>, vector<8x128xf32>,
    } else {
    }
    %c0 = arith.constant 0 : index
    %c0_1 = arith.constant 0 : index
    %3 = vector.load %arg8[%c0, %c0_1] : memref<8x128xf32, #tpu.memory_space<vmem>>, vector<8x128xf32>
    %c0_2 = arith.constant 0 : index
    %c0_3 = arith.constant 0 : index
    %4 = vector.load %arg9[%c0_2, %c0_3] : memref<8x128xf32, #tpu.memory_space<vmem>>, vector<8x128xf32>
    %5 = arith.truncf %3 : vector<8x128xf32> to vector<8x128xbf16>
    %c0_4 = arith.constant 0 : index
    %c0_5 = arith.constant 0 : index
    %6 = vector.load %arg10[%c0_4, %c0_5] : memref<64x128xbf16, #tpu.memory_space<vmem>>, vector<8x128xbf16>
    tpu.vector_store %arg10[%c0_4, %c0_5], %5 {strides = array<i32>} : memref<64x128xbf16, #tpu.memory_space<vmem>>, vector<8x128xbf16>,
    %c0_6 = arith.constant 0 : index
    %c0_7 = arith.constant 0 : index
    %c0_8 = arith.constant 0 : index
    %7 = vector.load %arg1[%c0_6, %c0_7, %c0_8] : memref<8x8x512xbf16, #tpu.memory_space<vmem>>, vector<1x8x512xbf16>
    %8 = vector.shape_cast %7 : vector<1x8x512xbf16> to vector<8x512xbf16>
    %9 = arith.extf %8 : vector<8x512xbf16> to vector<8x512xf32>
    %10 = arith.truncf %3 : vector<8x128xf32> to vector<8x128xbf16>
    %c0_9 = arith.constant 0 : index
    %c0_10 = arith.constant 0 : index
    %11 = vector.load %arg2[%c0_9, %c0_10] : memref<128x512xbf16, #tpu.memory_space<vmem>>, vector<128x512xbf16>
    %cst = arith.constant dense<0.000000e+00> : vector<8x512xf32>
    %12 = tpu.matmul %10, %11, %cst {dimension_numbers = #tpu.dot_dimension_numbers<[1], [0], [0], [1], [0, 0, 1, 1], [], []>} : vector<8x128xbf16>, vector<128x512xbf16>, vector<8x512xf32> -> vector<8x512xf32>
    %13 = arith.addf %9, %12 : vector<8x512xf32>
    %14 = vector.extract_strided_slice %13 {offsets = [0, 0], sizes = [8, 128], strides = [1, 1]} : vector<8x512xf32> to vector<8x128xf32>
    %cst_11 = arith.constant 5.000000e-01 : f32
    %15 = vector.broadcast %cst_11 : f32 to vector<8x128xf32>
    %16 = arith.mulf %15, %14 : vector<8x128xf32>
    %17 = math.tanh %16 : vector<8x128xf32>
    %cst_12 = arith.constant 1.000000e+00 : f32
    %18 = vector.broadcast %cst_12 : f32 to vector<8x128xf32>
    %19 = arith.addf %17, %18 : vector<8x128xf32>
    %cst_13 = arith.constant 5.000000e-01 : f32
    %20 = vector.broadcast %cst_13 : f32 to vector<8x128xf32>
    %21 = arith.mulf %20, %19 : vector<8x128xf32>
    %22 = vector.extract_strided_slice %13 {offsets = [0, 128], sizes = [8, 128], strides = [1, 1]} : vector<8x512xf32> to vector<8x128xf32>
    %cst_14 = arith.constant 5.000000e-01 : f32
    %23 = vector.broadcast %cst_14 : f32 to vector<8x128xf32>
    %24 = arith.mulf %23, %22 : vector<8x128xf32>
    %25 = math.tanh %24 : vector<8x128xf32>
    %cst_15 = arith.constant 1.000000e+00 : f32
    %26 = vector.broadcast %cst_15 : f32 to vector<8x128xf32>
    %27 = arith.addf %25, %26 : vector<8x128xf32>
    %cst_16 = arith.constant 5.000000e-01 : f32
    %28 = vector.broadcast %cst_16 : f32 to vector<8x128xf32>
    %29 = arith.mulf %28, %27 : vector<8x128xf32>
    %30 = vector.extract_strided_slice %13 {offsets = [0, 256], sizes = [8, 128], strides = [1, 1]} : vector<8x512xf32> to vector<8x128xf32>
    %31 = math.tanh %30 : vector<8x128xf32>
    %32 = vector.extract_strided_slice %13 {offsets = [0, 384], sizes = [8, 128], strides = [1, 1]} : vector<8x512xf32> to vector<8x128xf32>
    %cst_17 = arith.constant 5.000000e-01 : f32
    %33 = vector.broadcast %cst_17 : f32 to vector<8x128xf32>
    %34 = arith.mulf %33, %32 : vector<8x128xf32>
    %35 = math.tanh %34 : vector<8x128xf32>
    %cst_18 = arith.constant 1.000000e+00 : f32
    %36 = vector.broadcast %cst_18 : f32 to vector<8x128xf32>
    %37 = arith.addf %35, %36 : vector<8x128xf32>
    %cst_19 = arith.constant 5.000000e-01 : f32
    %38 = vector.broadcast %cst_19 : f32 to vector<8x128xf32>
    %39 = arith.mulf %38, %37 : vector<8x128xf32>
    %40 = arith.mulf %29, %4 : vector<8x128xf32>
    %41 = arith.mulf %21, %31 : vector<8x128xf32>
    %42 = arith.addf %40, %41 : vector<8x128xf32>
    %43 = math.tanh %42 : vector<8x128xf32>
    %44 = arith.mulf %39, %43 : vector<8x128xf32>
    %45 = arith.truncf %44 : vector<8x128xf32> to vector<8x128xbf16>
    %c8 = arith.constant 8 : index
    %c0_20 = arith.constant 0 : index
    %46 = vector.load %arg10[%c8, %c0_20] : memref<64x128xbf16, #tpu.memory_space<vmem>>, vector<8x128xbf16>
    tpu.vector_store %arg10[%c8, %c0_20], %45 {strides = array<i32>} : memref<64x128xbf16, #tpu.memory_space<vmem>>, vector<8x128xbf16>,
    %c1 = arith.constant 1 : index
    %c0_21 = arith.constant 0 : index
    %c0_22 = arith.constant 0 : index
    %47 = vector.load %arg1[%c1, %c0_21, %c0_22] : memref<8x8x512xbf16, #tpu.memory_space<vmem>>, vector<1x8x512xbf16>
    %48 = vector.shape_cast %47 : vector<1x8x512xbf16> to vector<8x512xbf16>
    %49 = arith.extf %48 : vector<8x512xbf16> to vector<8x512xf32>
    %50 = arith.truncf %44 : vector<8x128xf32> to vector<8x128xbf16>
    %c0_23 = arith.constant 0 : index
    %c0_24 = arith.constant 0 : index
    %51 = vector.load %arg2[%c0_23, %c0_24] : memref<128x512xbf16, #tpu.memory_space<vmem>>, vector<128x512xbf16>
    %cst_25 = arith.constant dense<0.000000e+00> : vector<8x512xf32>
    %52 = tpu.matmul %50, %51, %cst_25 {dimension_numbers = #tpu.dot_dimension_numbers<[1], [0], [0], [1], [0, 0, 1, 1], [], []>} : vector<8x128xbf16>, vector<128x512xbf16>, vector<8x512xf32> -> vector<8x512xf32>
    %53 = arith.addf %49, %52 : vector<8x512xf32>
    %54 = vector.extract_strided_slice %53 {offsets = [0, 0], sizes = [8, 128], strides = [1, 1]} : vector<8x512xf32> to vector<8x128xf32>
    %cst_26 = arith.constant 5.000000e-01 : f32
    %55 = vector.broadcast %cst_26 : f32 to vector<8x128xf32>
    %56 = arith.mulf %55, %54 : vector<8x128xf32>
    %57 = math.tanh %56 : vector<8x128xf32>
    %cst_27 = arith.constant 1.000000e+00 : f32
    %58 = vector.broadcast %cst_27 : f32 to vector<8x128xf32>
    %59 = arith.addf %57, %58 : vector<8x128xf32>
    %cst_28 = arith.constant 5.000000e-01 : f32
    %60 = vector.broadcast %cst_28 : f32 to vector<8x128xf32>
    %61 = arith.mulf %60, %59 : vector<8x128xf32>
    %62 = vector.extract_strided_slice %53 {offsets = [0, 128], sizes = [8, 128], strides = [1, 1]} : vector<8x512xf32> to vector<8x128xf32>
    %cst_29 = arith.constant 5.000000e-01 : f32
    %63 = vector.broadcast %cst_29 : f32 to vector<8x128xf32>
    %64 = arith.mulf %63, %62 : vector<8x128xf32>
    %65 = math.tanh %64 : vector<8x128xf32>
    %cst_30 = arith.constant 1.000000e+00 : f32
    %66 = vector.broadcast %cst_30 : f32 to vector<8x128xf32>
    %67 = arith.addf %65, %66 : vector<8x128xf32>
    %cst_31 = arith.constant 5.000000e-01 : f32
    %68 = vector.broadcast %cst_31 : f32 to vector<8x128xf32>
    %69 = arith.mulf %68, %67 : vector<8x128xf32>
    %70 = vector.extract_strided_slice %53 {offsets = [0, 256], sizes = [8, 128], strides = [1, 1]} : vector<8x512xf32> to vector<8x128xf32>
    %71 = math.tanh %70 : vector<8x128xf32>
    %72 = vector.extract_strided_slice %53 {offsets = [0, 384], sizes = [8, 128], strides = [1, 1]} : vector<8x512xf32> to vector<8x128xf32>
    %cst_32 = arith.constant 5.000000e-01 : f32
    %73 = vector.broadcast %cst_32 : f32 to vector<8x128xf32>
    %74 = arith.mulf %73, %72 : vector<8x128xf32>
    %75 = math.tanh %74 : vector<8x128xf32>
    %cst_33 = arith.constant 1.000000e+00 : f32
    %76 = vector.broadcast %cst_33 : f32 to vector<8x128xf32>
    %77 = arith.addf %75, %76 : vector<8x128xf32>
    %cst_34 = arith.constant 5.000000e-01 : f32
    %78 = vector.broadcast %cst_34 : f32 to vector<8x128xf32>
    %79 = arith.mulf %78, %77 : vector<8x128xf32>
    %80 = arith.mulf %69, %42 : vector<8x128xf32>
    %81 = arith.mulf %61, %71 : vector<8x128xf32>
    %82 = arith.addf %80, %81 : vector<8x128xf32>
    %83 = math.tanh %82 : vector<8x128xf32>
    %84 = arith.mulf %79, %83 : vector<8x128xf32>
    %85 = arith.truncf %84 : vector<8x128xf32> to vector<8x128xbf16>
    %c16 = arith.constant 16 : index
    %c0_35 = arith.constant 0 : index
    %86 = vector.load %arg10[%c16, %c0_35] : memref<64x128xbf16, #tpu.memory_space<vmem>>, vector<8x128xbf16>
    tpu.vector_store %arg10[%c16, %c0_35], %85 {strides = array<i32>} : memref<64x128xbf16, #tpu.memory_space<vmem>>, vector<8x128xbf16>,
    %c2 = arith.constant 2 : index
    %c0_36 = arith.constant 0 : index
    %c0_37 = arith.constant 0 : index
    %87 = vector.load %arg1[%c2, %c0_36, %c0_37] : memref<8x8x512xbf16, #tpu.memory_space<vmem>>, vector<1x8x512xbf16>
    %88 = vector.shape_cast %87 : vector<1x8x512xbf16> to vector<8x512xbf16>
    %89 = arith.extf %88 : vector<8x512xbf16> to vector<8x512xf32>
    %90 = arith.truncf %84 : vector<8x128xf32> to vector<8x128xbf16>
    %c0_38 = arith.constant 0 : index
    %c0_39 = arith.constant 0 : index
    %91 = vector.load %arg2[%c0_38, %c0_39] : memref<128x512xbf16, #tpu.memory_space<vmem>>, vector<128x512xbf16>
    %cst_40 = arith.constant dense<0.000000e+00> : vector<8x512xf32>
    %92 = tpu.matmul %90, %91, %cst_40 {dimension_numbers = #tpu.dot_dimension_numbers<[1], [0], [0], [1], [0, 0, 1, 1], [], []>} : vector<8x128xbf16>, vector<128x512xbf16>, vector<8x512xf32> -> vector<8x512xf32>
    %93 = arith.addf %89, %92 : vector<8x512xf32>
    %94 = vector.extract_strided_slice %93 {offsets = [0, 0], sizes = [8, 128], strides = [1, 1]} : vector<8x512xf32> to vector<8x128xf32>
    %cst_41 = arith.constant 5.000000e-01 : f32
    %95 = vector.broadcast %cst_41 : f32 to vector<8x128xf32>
    %96 = arith.mulf %95, %94 : vector<8x128xf32>
    %97 = math.tanh %96 : vector<8x128xf32>
    %cst_42 = arith.constant 1.000000e+00 : f32
    %98 = vector.broadcast %cst_42 : f32 to vector<8x128xf32>
    %99 = arith.addf %97, %98 : vector<8x128xf32>
    %cst_43 = arith.constant 5.000000e-01 : f32
    %100 = vector.broadcast %cst_43 : f32 to vector<8x128xf32>
    %101 = arith.mulf %100, %99 : vector<8x128xf32>
    %102 = vector.extract_strided_slice %93 {offsets = [0, 128], sizes = [8, 128], strides = [1, 1]} : vector<8x512xf32> to vector<8x128xf32>
    %cst_44 = arith.constant 5.000000e-01 : f32
    %103 = vector.broadcast %cst_44 : f32 to vector<8x128xf32>
    %104 = arith.mulf %103, %102 : vector<8x128xf32>
    %105 = math.tanh %104 : vector<8x128xf32>
    %cst_45 = arith.constant 1.000000e+00 : f32
    %106 = vector.broadcast %cst_45 : f32 to vector<8x128xf32>
    %107 = arith.addf %105, %106 : vector<8x128xf32>
    %cst_46 = arith.constant 5.000000e-01 : f32
    %108 = vector.broadcast %cst_46 : f32 to vector<8x128xf32>
    %109 = arith.mulf %108, %107 : vector<8x128xf32>
    %110 = vector.extract_strided_slice %93 {offsets = [0, 256], sizes = [8, 128], strides = [1, 1]} : vector<8x512xf32> to vector<8x128xf32>
    %111 = math.tanh %110 : vector<8x128xf32>
    %112 = vector.extract_strided_slice %93 {offsets = [0, 384], sizes = [8, 128], strides = [1, 1]} : vector<8x512xf32> to vector<8x128xf32>
    %cst_47 = arith.constant 5.000000e-01 : f32
    %113 = vector.broadcast %cst_47 : f32 to vector<8x128xf32>
    %114 = arith.mulf %113, %112 : vector<8x128xf32>
    %115 = math.tanh %114 : vector<8x128xf32>
    %cst_48 = arith.constant 1.000000e+00 : f32
    %116 = vector.broadcast %cst_48 : f32 to vector<8x128xf32>
    %117 = arith.addf %115, %116 : vector<8x128xf32>
    %cst_49 = arith.constant 5.000000e-01 : f32
    %118 = vector.broadcast %cst_49 : f32 to vector<8x128xf32>
    %119 = arith.mulf %118, %117 : vector<8x128xf32>
    %120 = arith.mulf %109, %82 : vector<8x128xf32>
    %121 = arith.mulf %101, %111 : vector<8x128xf32>
    %122 = arith.addf %120, %121 : vector<8x128xf32>
    %123 = math.tanh %122 : vector<8x128xf32>
    %124 = arith.mulf %119, %123 : vector<8x128xf32>
    %125 = arith.truncf %124 : vector<8x128xf32> to vector<8x128xbf16>
    %c24 = arith.constant 24 : index
    %c0_50 = arith.constant 0 : index
    %126 = vector.load %arg10[%c24, %c0_50] : memref<64x128xbf16, #tpu.memory_space<vmem>>, vector<8x128xbf16>
    tpu.vector_store %arg10[%c24, %c0_50], %125 {strides = array<i32>} : memref<64x128xbf16, #tpu.memory_space<vmem>>, vector<8x128xbf16>,
    %c3 = arith.constant 3 : index
    %c0_51 = arith.constant 0 : index
    %c0_52 = arith.constant 0 : index
    %127 = vector.load %arg1[%c3, %c0_51, %c0_52] : memref<8x8x512xbf16, #tpu.memory_space<vmem>>, vector<1x8x512xbf16>
    %128 = vector.shape_cast %127 : vector<1x8x512xbf16> to vector<8x512xbf16>
    %129 = arith.extf %128 : vector<8x512xbf16> to vector<8x512xf32>
    %130 = arith.truncf %124 : vector<8x128xf32> to vector<8x128xbf16>
    %c0_53 = arith.constant 0 : index
    %c0_54 = arith.constant 0 : index
    %131 = vector.load %arg2[%c0_53, %c0_54] : memref<128x512xbf16, #tpu.memory_space<vmem>>, vector<128x512xbf16>
    %cst_55 = arith.constant dense<0.000000e+00> : vector<8x512xf32>
    %132 = tpu.matmul %130, %131, %cst_55 {dimension_numbers = #tpu.dot_dimension_numbers<[1], [0], [0], [1], [0, 0, 1, 1], [], []>} : vector<8x128xbf16>, vector<128x512xbf16>, vector<8x512xf32> -> vector<8x512xf32>
    %133 = arith.addf %129, %132 : vector<8x512xf32>
    %134 = vector.extract_strided_slice %133 {offsets = [0, 0], sizes = [8, 128], strides = [1, 1]} : vector<8x512xf32> to vector<8x128xf32>
    %cst_56 = arith.constant 5.000000e-01 : f32
    %135 = vector.broadcast %cst_56 : f32 to vector<8x128xf32>
    %136 = arith.mulf %135, %134 : vector<8x128xf32>
    %137 = math.tanh %136 : vector<8x128xf32>
    %cst_57 = arith.constant 1.000000e+00 : f32
    %138 = vector.broadcast %cst_57 : f32 to vector<8x128xf32>
    %139 = arith.addf %137, %138 : vector<8x128xf32>
    %cst_58 = arith.constant 5.000000e-01 : f32
    %140 = vector.broadcast %cst_58 : f32 to vector<8x128xf32>
    %141 = arith.mulf %140, %139 : vector<8x128xf32>
    %142 = vector.extract_strided_slice %133 {offsets = [0, 128], sizes = [8, 128], strides = [1, 1]} : vector<8x512xf32> to vector<8x128xf32>
    %cst_59 = arith.constant 5.000000e-01 : f32
    %143 = vector.broadcast %cst_59 : f32 to vector<8x128xf32>
    %144 = arith.mulf %143, %142 : vector<8x128xf32>
    %145 = math.tanh %144 : vector<8x128xf32>
    %cst_60 = arith.constant 1.000000e+00 : f32
    %146 = vector.broadcast %cst_60 : f32 to vector<8x128xf32>
    %147 = arith.addf %145, %146 : vector<8x128xf32>
    %cst_61 = arith.constant 5.000000e-01 : f32
    %148 = vector.broadcast %cst_61 : f32 to vector<8x128xf32>
    %149 = arith.mulf %148, %147 : vector<8x128xf32>
    %150 = vector.extract_strided_slice %133 {offsets = [0, 256], sizes = [8, 128], strides = [1, 1]} : vector<8x512xf32> to vector<8x128xf32>
    %151 = math.tanh %150 : vector<8x128xf32>
    %152 = vector.extract_strided_slice %133 {offsets = [0, 384], sizes = [8, 128], strides = [1, 1]} : vector<8x512xf32> to vector<8x128xf32>
    %cst_62 = arith.constant 5.000000e-01 : f32
    %153 = vector.broadcast %cst_62 : f32 to vector<8x128xf32>
    %154 = arith.mulf %153, %152 : vector<8x128xf32>
    %155 = math.tanh %154 : vector<8x128xf32>
    %cst_63 = arith.constant 1.000000e+00 : f32
    %156 = vector.broadcast %cst_63 : f32 to vector<8x128xf32>
    %157 = arith.addf %155, %156 : vector<8x128xf32>
    %cst_64 = arith.constant 5.000000e-01 : f32
    %158 = vector.broadcast %cst_64 : f32 to vector<8x128xf32>
    %159 = arith.mulf %158, %157 : vector<8x128xf32>
    %160 = arith.mulf %149, %122 : vector<8x128xf32>
    %161 = arith.mulf %141, %151 : vector<8x128xf32>
    %162 = arith.addf %160, %161 : vector<8x128xf32>
    %163 = math.tanh %162 : vector<8x128xf32>
    %164 = arith.mulf %159, %163 : vector<8x128xf32>
    %165 = arith.truncf %164 : vector<8x128xf32> to vector<8x128xbf16>
    %c32 = arith.constant 32 : index
    %c0_65 = arith.constant 0 : index
    %166 = vector.load %arg10[%c32, %c0_65] : memref<64x128xbf16, #tpu.memory_space<vmem>>, vector<8x128xbf16>
    tpu.vector_store %arg10[%c32, %c0_65], %165 {strides = array<i32>} : memref<64x128xbf16, #tpu.memory_space<vmem>>, vector<8x128xbf16>,
    %c4 = arith.constant 4 : index
    %c0_66 = arith.constant 0 : index
    %c0_67 = arith.constant 0 : index
    %167 = vector.load %arg1[%c4, %c0_66, %c0_67] : memref<8x8x512xbf16, #tpu.memory_space<vmem>>, vector<1x8x512xbf16>
    %168 = vector.shape_cast %167 : vector<1x8x512xbf16> to vector<8x512xbf16>
    %169 = arith.extf %168 : vector<8x512xbf16> to vector<8x512xf32>
    %170 = arith.truncf %164 : vector<8x128xf32> to vector<8x128xbf16>
    %c0_68 = arith.constant 0 : index
    %c0_69 = arith.constant 0 : index
    %171 = vector.load %arg2[%c0_68, %c0_69] : memref<128x512xbf16, #tpu.memory_space<vmem>>, vector<128x512xbf16>
    %cst_70 = arith.constant dense<0.000000e+00> : vector<8x512xf32>
    %172 = tpu.matmul %170, %171, %cst_70 {dimension_numbers = #tpu.dot_dimension_numbers<[1], [0], [0], [1], [0, 0, 1, 1], [], []>} : vector<8x128xbf16>, vector<128x512xbf16>, vector<8x512xf32> -> vector<8x512xf32>
    %173 = arith.addf %169, %172 : vector<8x512xf32>
    %174 = vector.extract_strided_slice %173 {offsets = [0, 0], sizes = [8, 128], strides = [1, 1]} : vector<8x512xf32> to vector<8x128xf32>
    %cst_71 = arith.constant 5.000000e-01 : f32
    %175 = vector.broadcast %cst_71 : f32 to vector<8x128xf32>
    %176 = arith.mulf %175, %174 : vector<8x128xf32>
    %177 = math.tanh %176 : vector<8x128xf32>
    %cst_72 = arith.constant 1.000000e+00 : f32
    %178 = vector.broadcast %cst_72 : f32 to vector<8x128xf32>
    %179 = arith.addf %177, %178 : vector<8x128xf32>
    %cst_73 = arith.constant 5.000000e-01 : f32
    %180 = vector.broadcast %cst_73 : f32 to vector<8x128xf32>
    %181 = arith.mulf %180, %179 : vector<8x128xf32>
    %182 = vector.extract_strided_slice %173 {offsets = [0, 128], sizes = [8, 128], strides = [1, 1]} : vector<8x512xf32> to vector<8x128xf32>
    %cst_74 = arith.constant 5.000000e-01 : f32
    %183 = vector.broadcast %cst_74 : f32 to vector<8x128xf32>
    %184 = arith.mulf %183, %182 : vector<8x128xf32>
    %185 = math.tanh %184 : vector<8x128xf32>
    %cst_75 = arith.constant 1.000000e+00 : f32
    %186 = vector.broadcast %cst_75 : f32 to vector<8x128xf32>
    %187 = arith.addf %185, %186 : vector<8x128xf32>
    %cst_76 = arith.constant 5.000000e-01 : f32
    %188 = vector.broadcast %cst_76 : f32 to vector<8x128xf32>
    %189 = arith.mulf %188, %187 : vector<8x128xf32>
    %190 = vector.extract_strided_slice %173 {offsets = [0, 256], sizes = [8, 128], strides = [1, 1]} : vector<8x512xf32> to vector<8x128xf32>
    %191 = math.tanh %190 : vector<8x128xf32>
    %192 = vector.extract_strided_slice %173 {offsets = [0, 384], sizes = [8, 128], strides = [1, 1]} : vector<8x512xf32> to vector<8x128xf32>
    %cst_77 = arith.constant 5.000000e-01 : f32
    %193 = vector.broadcast %cst_77 : f32 to vector<8x128xf32>
    %194 = arith.mulf %193, %192 : vector<8x128xf32>
    %195 = math.tanh %194 : vector<8x128xf32>
    %cst_78 = arith.constant 1.000000e+00 : f32
    %196 = vector.broadcast %cst_78 : f32 to vector<8x128xf32>
    %197 = arith.addf %195, %196 : vector<8x128xf32>
    %cst_79 = arith.constant 5.000000e-01 : f32
    %198 = vector.broadcast %cst_79 : f32 to vector<8x128xf32>
    %199 = arith.mulf %198, %197 : vector<8x128xf32>
    %200 = arith.mulf %189, %162 : vector<8x128xf32>
    %201 = arith.mulf %181, %191 : vector<8x128xf32>
    %202 = arith.addf %200, %201 : vector<8x128xf32>
    %203 = math.tanh %202 : vector<8x128xf32>
    %204 = arith.mulf %199, %203 : vector<8x128xf32>
    %205 = arith.truncf %204 : vector<8x128xf32> to vector<8x128xbf16>
    %c40 = arith.constant 40 : index
    %c0_80 = arith.constant 0 : index
    %206 = vector.load %arg10[%c40, %c0_80] : memref<64x128xbf16, #tpu.memory_space<vmem>>, vector<8x128xbf16>
    tpu.vector_store %arg10[%c40, %c0_80], %205 {strides = array<i32>} : memref<64x128xbf16, #tpu.memory_space<vmem>>, vector<8x128xbf16>,
    %c5 = arith.constant 5 : index
    %c0_81 = arith.constant 0 : index
    %c0_82 = arith.constant 0 : index
    %207 = vector.load %arg1[%c5, %c0_81, %c0_82] : memref<8x8x512xbf16, #tpu.memory_space<vmem>>, vector<1x8x512xbf16>
    %208 = vector.shape_cast %207 : vector<1x8x512xbf16> to vector<8x512xbf16>
    %209 = arith.extf %208 : vector<8x512xbf16> to vector<8x512xf32>
    %210 = arith.truncf %204 : vector<8x128xf32> to vector<8x128xbf16>
    %c0_83 = arith.constant 0 : index
    %c0_84 = arith.constant 0 : index
    %211 = vector.load %arg2[%c0_83, %c0_84] : memref<128x512xbf16, #tpu.memory_space<vmem>>, vector<128x512xbf16>
    %cst_85 = arith.constant dense<0.000000e+00> : vector<8x512xf32>
    %212 = tpu.matmul %210, %211, %cst_85 {dimension_numbers = #tpu.dot_dimension_numbers<[1], [0], [0], [1], [0, 0, 1, 1], [], []>} : vector<8x128xbf16>, vector<128x512xbf16>, vector<8x512xf32> -> vector<8x512xf32>
    %213 = arith.addf %209, %212 : vector<8x512xf32>
    %214 = vector.extract_strided_slice %213 {offsets = [0, 0], sizes = [8, 128], strides = [1, 1]} : vector<8x512xf32> to vector<8x128xf32>
    %cst_86 = arith.constant 5.000000e-01 : f32
    %215 = vector.broadcast %cst_86 : f32 to vector<8x128xf32>
    %216 = arith.mulf %215, %214 : vector<8x128xf32>
    %217 = math.tanh %216 : vector<8x128xf32>
    %cst_87 = arith.constant 1.000000e+00 : f32
    %218 = vector.broadcast %cst_87 : f32 to vector<8x128xf32>
    %219 = arith.addf %217, %218 : vector<8x128xf32>
    %cst_88 = arith.constant 5.000000e-01 : f32
    %220 = vector.broadcast %cst_88 : f32 to vector<8x128xf32>
    %221 = arith.mulf %220, %219 : vector<8x128xf32>
    %222 = vector.extract_strided_slice %213 {offsets = [0, 128], sizes = [8, 128], strides = [1, 1]} : vector<8x512xf32> to vector<8x128xf32>
    %cst_89 = arith.constant 5.000000e-01 : f32
    %223 = vector.broadcast %cst_89 : f32 to vector<8x128xf32>
    %224 = arith.mulf %223, %222 : vector<8x128xf32>
    %225 = math.tanh %224 : vector<8x128xf32>
    %cst_90 = arith.constant 1.000000e+00 : f32
    %226 = vector.broadcast %cst_90 : f32 to vector<8x128xf32>
    %227 = arith.addf %225, %226 : vector<8x128xf32>
    %cst_91 = arith.constant 5.000000e-01 : f32
    %228 = vector.broadcast %cst_91 : f32 to vector<8x128xf32>
    %229 = arith.mulf %228, %227 : vector<8x128xf32>
    %230 = vector.extract_strided_slice %213 {offsets = [0, 256], sizes = [8, 128], strides = [1, 1]} : vector<8x512xf32> to vector<8x128xf32>
    %231 = math.tanh %230 : vector<8x128xf32>
    %232 = vector.extract_strided_slice %213 {offsets = [0, 384], sizes = [8, 128], strides = [1, 1]} : vector<8x512xf32> to vector<8x128xf32>
    %cst_92 = arith.constant 5.000000e-01 : f32
    %233 = vector.broadcast %cst_92 : f32 to vector<8x128xf32>
    %234 = arith.mulf %233, %232 : vector<8x128xf32>
    %235 = math.tanh %234 : vector<8x128xf32>
    %cst_93 = arith.constant 1.000000e+00 : f32
    %236 = vector.broadcast %cst_93 : f32 to vector<8x128xf32>
    %237 = arith.addf %235, %236 : vector<8x128xf32>
    %cst_94 = arith.constant 5.000000e-01 : f32
    %238 = vector.broadcast %cst_94 : f32 to vector<8x128xf32>
    %239 = arith.mulf %238, %237 : vector<8x128xf32>
    %240 = arith.mulf %229, %202 : vector<8x128xf32>
    %241 = arith.mulf %221, %231 : vector<8x128xf32>
    %242 = arith.addf %240, %241 : vector<8x128xf32>
    %243 = math.tanh %242 : vector<8x128xf32>
    %244 = arith.mulf %239, %243 : vector<8x128xf32>
    %245 = arith.truncf %244 : vector<8x128xf32> to vector<8x128xbf16>
    %c48 = arith.constant 48 : index
    %c0_95 = arith.constant 0 : index
    %246 = vector.load %arg10[%c48, %c0_95] : memref<64x128xbf16, #tpu.memory_space<vmem>>, vector<8x128xbf16>
    tpu.vector_store %arg10[%c48, %c0_95], %245 {strides = array<i32>} : memref<64x128xbf16, #tpu.memory_space<vmem>>, vector<8x128xbf16>,
    %c6 = arith.constant 6 : index
    %c0_96 = arith.constant 0 : index
    %c0_97 = arith.constant 0 : index
    %247 = vector.load %arg1[%c6, %c0_96, %c0_97] : memref<8x8x512xbf16, #tpu.memory_space<vmem>>, vector<1x8x512xbf16>
    %248 = vector.shape_cast %247 : vector<1x8x512xbf16> to vector<8x512xbf16>
    %249 = arith.extf %248 : vector<8x512xbf16> to vector<8x512xf32>
    %250 = arith.truncf %244 : vector<8x128xf32> to vector<8x128xbf16>
    %c0_98 = arith.constant 0 : index
    %c0_99 = arith.constant 0 : index
    %251 = vector.load %arg2[%c0_98, %c0_99] : memref<128x512xbf16, #tpu.memory_space<vmem>>, vector<128x512xbf16>
    %cst_100 = arith.constant dense<0.000000e+00> : vector<8x512xf32>
    %252 = tpu.matmul %250, %251, %cst_100 {dimension_numbers = #tpu.dot_dimension_numbers<[1], [0], [0], [1], [0, 0, 1, 1], [], []>} : vector<8x128xbf16>, vector<128x512xbf16>, vector<8x512xf32> -> vector<8x512xf32>
    %253 = arith.addf %249, %252 : vector<8x512xf32>
    %254 = vector.extract_strided_slice %253 {offsets = [0, 0], sizes = [8, 128], strides = [1, 1]} : vector<8x512xf32> to vector<8x128xf32>
    %cst_101 = arith.constant 5.000000e-01 : f32
    %255 = vector.broadcast %cst_101 : f32 to vector<8x128xf32>
    %256 = arith.mulf %255, %254 : vector<8x128xf32>
    %257 = math.tanh %256 : vector<8x128xf32>
    %cst_102 = arith.constant 1.000000e+00 : f32
    %258 = vector.broadcast %cst_102 : f32 to vector<8x128xf32>
    %259 = arith.addf %257, %258 : vector<8x128xf32>
    %cst_103 = arith.constant 5.000000e-01 : f32
    %260 = vector.broadcast %cst_103 : f32 to vector<8x128xf32>
    %261 = arith.mulf %260, %259 : vector<8x128xf32>
    %262 = vector.extract_strided_slice %253 {offsets = [0, 128], sizes = [8, 128], strides = [1, 1]} : vector<8x512xf32> to vector<8x128xf32>
    %cst_104 = arith.constant 5.000000e-01 : f32
    %263 = vector.broadcast %cst_104 : f32 to vector<8x128xf32>
    %264 = arith.mulf %263, %262 : vector<8x128xf32>
    %265 = math.tanh %264 : vector<8x128xf32>
    %cst_105 = arith.constant 1.000000e+00 : f32
    %266 = vector.broadcast %cst_105 : f32 to vector<8x128xf32>
    %267 = arith.addf %265, %266 : vector<8x128xf32>
    %cst_106 = arith.constant 5.000000e-01 : f32
    %268 = vector.broadcast %cst_106 : f32 to vector<8x128xf32>
    %269 = arith.mulf %268, %267 : vector<8x128xf32>
    %270 = vector.extract_strided_slice %253 {offsets = [0, 256], sizes = [8, 128], strides = [1, 1]} : vector<8x512xf32> to vector<8x128xf32>
    %271 = math.tanh %270 : vector<8x128xf32>
    %272 = vector.extract_strided_slice %253 {offsets = [0, 384], sizes = [8, 128], strides = [1, 1]} : vector<8x512xf32> to vector<8x128xf32>
    %cst_107 = arith.constant 5.000000e-01 : f32
    %273 = vector.broadcast %cst_107 : f32 to vector<8x128xf32>
    %274 = arith.mulf %273, %272 : vector<8x128xf32>
    %275 = math.tanh %274 : vector<8x128xf32>
    %cst_108 = arith.constant 1.000000e+00 : f32
    %276 = vector.broadcast %cst_108 : f32 to vector<8x128xf32>
    %277 = arith.addf %275, %276 : vector<8x128xf32>
    %cst_109 = arith.constant 5.000000e-01 : f32
    %278 = vector.broadcast %cst_109 : f32 to vector<8x128xf32>
    %279 = arith.mulf %278, %277 : vector<8x128xf32>
    %280 = arith.mulf %269, %242 : vector<8x128xf32>
    %281 = arith.mulf %261, %271 : vector<8x128xf32>
    %282 = arith.addf %280, %281 : vector<8x128xf32>
    %283 = math.tanh %282 : vector<8x128xf32>
    %284 = arith.mulf %279, %283 : vector<8x128xf32>
    %285 = arith.truncf %284 : vector<8x128xf32> to vector<8x128xbf16>
    %c56 = arith.constant 56 : index
    %c0_110 = arith.constant 0 : index
    %286 = vector.load %arg10[%c56, %c0_110] : memref<64x128xbf16, #tpu.memory_space<vmem>>, vector<8x128xbf16>
    tpu.vector_store %arg10[%c56, %c0_110], %285 {strides = array<i32>} : memref<64x128xbf16, #tpu.memory_space<vmem>>, vector<8x128xbf16>,
    %c7 = arith.constant 7 : index
    %c0_111 = arith.constant 0 : index
    %c0_112 = arith.constant 0 : index
    %287 = vector.load %arg1[%c7, %c0_111, %c0_112] : memref<8x8x512xbf16, #tpu.memory_space<vmem>>, vector<1x8x512xbf16>
    %288 = vector.shape_cast %287 : vector<1x8x512xbf16> to vector<8x512xbf16>
    %289 = arith.extf %288 : vector<8x512xbf16> to vector<8x512xf32>
    %290 = arith.truncf %284 : vector<8x128xf32> to vector<8x128xbf16>
    %c0_113 = arith.constant 0 : index
    %c0_114 = arith.constant 0 : index
    %291 = vector.load %arg2[%c0_113, %c0_114] : memref<128x512xbf16, #tpu.memory_space<vmem>>, vector<128x512xbf16>
    %cst_115 = arith.constant dense<0.000000e+00> : vector<8x512xf32>
    %292 = tpu.matmul %290, %291, %cst_115 {dimension_numbers = #tpu.dot_dimension_numbers<[1], [0], [0], [1], [0, 0, 1, 1], [], []>} : vector<8x128xbf16>, vector<128x512xbf16>, vector<8x512xf32> -> vector<8x512xf32>
    %293 = arith.addf %289, %292 : vector<8x512xf32>
    %294 = vector.extract_strided_slice %293 {offsets = [0, 0], sizes = [8, 128], strides = [1, 1]} : vector<8x512xf32> to vector<8x128xf32>
    %cst_116 = arith.constant 5.000000e-01 : f32
    %295 = vector.broadcast %cst_116 : f32 to vector<8x128xf32>
    %296 = arith.mulf %295, %294 : vector<8x128xf32>
    %297 = math.tanh %296 : vector<8x128xf32>
    %cst_117 = arith.constant 1.000000e+00 : f32
    %298 = vector.broadcast %cst_117 : f32 to vector<8x128xf32>
    %299 = arith.addf %297, %298 : vector<8x128xf32>
    %cst_118 = arith.constant 5.000000e-01 : f32
    %300 = vector.broadcast %cst_118 : f32 to vector<8x128xf32>
    %301 = arith.mulf %300, %299 : vector<8x128xf32>
    %302 = vector.extract_strided_slice %293 {offsets = [0, 128], sizes = [8, 128], strides = [1, 1]} : vector<8x512xf32> to vector<8x128xf32>
    %cst_119 = arith.constant 5.000000e-01 : f32
    %303 = vector.broadcast %cst_119 : f32 to vector<8x128xf32>
    %304 = arith.mulf %303, %302 : vector<8x128xf32>
    %305 = math.tanh %304 : vector<8x128xf32>
    %cst_120 = arith.constant 1.000000e+00 : f32
    %306 = vector.broadcast %cst_120 : f32 to vector<8x128xf32>
    %307 = arith.addf %305, %306 : vector<8x128xf32>
    %cst_121 = arith.constant 5.000000e-01 : f32
    %308 = vector.broadcast %cst_121 : f32 to vector<8x128xf32>
    %309 = arith.mulf %308, %307 : vector<8x128xf32>
    %310 = vector.extract_strided_slice %293 {offsets = [0, 256], sizes = [8, 128], strides = [1, 1]} : vector<8x512xf32> to vector<8x128xf32>
    %311 = math.tanh %310 : vector<8x128xf32>
    %312 = vector.extract_strided_slice %293 {offsets = [0, 384], sizes = [8, 128], strides = [1, 1]} : vector<8x512xf32> to vector<8x128xf32>
    %cst_122 = arith.constant 5.000000e-01 : f32
    %313 = vector.broadcast %cst_122 : f32 to vector<8x128xf32>
    %314 = arith.mulf %313, %312 : vector<8x128xf32>
    %315 = math.tanh %314 : vector<8x128xf32>
    %cst_123 = arith.constant 1.000000e+00 : f32
    %316 = vector.broadcast %cst_123 : f32 to vector<8x128xf32>
    %317 = arith.addf %315, %316 : vector<8x128xf32>
    %cst_124 = arith.constant 5.000000e-01 : f32
    %318 = vector.broadcast %cst_124 : f32 to vector<8x128xf32>
    %319 = arith.mulf %318, %317 : vector<8x128xf32>
    %320 = arith.mulf %309, %282 : vector<8x128xf32>
    %321 = arith.mulf %301, %311 : vector<8x128xf32>
    %322 = arith.addf %320, %321 : vector<8x128xf32>
    %323 = math.tanh %322 : vector<8x128xf32>
    %324 = arith.mulf %319, %323 : vector<8x128xf32>
    %c0_125 = arith.constant 0 : index
    %c0_126 = arith.constant 0 : index
    %325 = vector.load %arg8[%c0_125, %c0_126] : memref<8x128xf32, #tpu.memory_space<vmem>>, vector<8x128xf32>
    tpu.vector_store %arg8[%c0_125, %c0_126], %324 {strides = array<i32>} : memref<8x128xf32, #tpu.memory_space<vmem>>, vector<8x128xf32>,
    %c0_127 = arith.constant 0 : index
    %c0_128 = arith.constant 0 : index
    %326 = vector.load %arg9[%c0_127, %c0_128] : memref<8x128xf32, #tpu.memory_space<vmem>>, vector<8x128xf32>
    tpu.vector_store %arg9[%c0_127, %c0_128], %322 {strides = array<i32>} : memref<8x128xf32, #tpu.memory_space<vmem>>, vector<8x128xf32>,
    %c0_129 = arith.constant 0 : index
    %c0_130 = arith.constant 0 : index
    %327 = vector.load %arg10[%c0_129, %c0_130] : memref<64x128xbf16, #tpu.memory_space<vmem>>, vector<64x128xbf16>
    %c0_131 = arith.constant 0 : index
    %c0_132 = arith.constant 0 : index
    %328 = vector.load %arg3[%c0_131, %c0_132] : memref<128x256xbf16, #tpu.memory_space<vmem>>, vector<128x256xbf16>
    %cst_133 = arith.constant dense<0.000000e+00> : vector<64x256xf32>
    %329 = tpu.matmul %327, %328, %cst_133 {dimension_numbers = #tpu.dot_dimension_numbers<[1], [0], [0], [1], [0, 0, 1, 1], [], []>} : vector<64x128xbf16>, vector<128x256xbf16>, vector<64x256xf32> -> vector<64x256xf32>
    %c0_134 = arith.constant 0 : index
    %c0_135 = arith.constant 0 : index
    %330 = vector.load %arg4[%c0_134, %c0_135] : memref<1x256xf32, #tpu.memory_space<vmem>>, vector<1x256xf32>
    %331 = vector.broadcast %330 : vector<1x256xf32> to vector<64x256xf32>
    %332 = arith.addf %329, %331 : vector<64x256xf32>
    %c0_136 = arith.constant 0 : index
    %c0_137 = arith.constant 0 : index
    %333 = vector.load %arg7[%c0_136, %c0_137] : memref<64x256xf32, #tpu.memory_space<vmem>>, vector<64x256xf32>
    tpu.vector_store %arg7[%c0_136, %c0_137], %332 {strides = array<i32>} : memref<64x256xf32, #tpu.memory_space<vmem>>, vector<64x256xf32>,
    return
  }
  func.func @transform_0(%arg0: i32) -> (i32, i32, i32) {
    %c0_i32 = arith.constant 0 : i32
    %c0_i32_0 = arith.constant 0 : i32
    %c0_i32_1 = arith.constant 0 : i32
    return %arg0, %c0_i32, %c0_i32_0 : i32, i32, i32
  }
  func.func @transform_1(%arg0: i32) -> (i32, i32) {
    %c0_i32 = arith.constant 0 : i32
    %c0_i32_0 = arith.constant 0 : i32
    %c0_i32_1 = arith.constant 0 : i32
    return %c0_i32, %c0_i32_0 : i32, i32
  }
  func.func @transform_2(%arg0: i32) -> (i32, i32) {
    %c0_i32 = arith.constant 0 : i32
    %c0_i32_0 = arith.constant 0 : i32
    %c0_i32_1 = arith.constant 0 : i32
    return %c0_i32, %c0_i32_0 : i32, i32
  }
  func.func @transform_3(%arg0: i32) -> (i32, i32) {
    %c0_i32 = arith.constant 0 : i32
    %c0_i32_0 = arith.constant 0 : i32
    %c0_i32_1 = arith.constant 0 : i32
    return %c0_i32, %c0_i32_0 : i32, i32
  }
  func.func @transform_4(%arg0: i32) -> (i32, i32) {
    %c0_i32 = arith.constant 0 : i32
    %c0_i32_0 = arith.constant 0 : i32
    %c0_i32_1 = arith.constant 0 : i32
    return %c0_i32, %c0_i32_0 : i32, i32
  }
  func.func @transform_5(%arg0: i32) -> (i32, i32) {
    %c0_i32 = arith.constant 0 : i32
    %c0_i32_0 = arith.constant 0 : i32
    %c0_i32_1 = arith.constant 0 : i32
    return %c0_i32, %c0_i32_0 : i32, i32
  }
  func.func @transform_6(%arg0: i32) -> (i32, i32) {
    %c0_i32 = arith.constant 0 : i32
    %c0_i32_0 = arith.constant 0 : i32
    return %arg0, %c0_i32 : i32, i32
  }
}

</mosaic_0001>

<bundles_post_ra>
// kernel: tpu_custom_call.1
= control target key start
LH: loop header
LB: loop body
LE: loop exit
PB: predicated region body
PF: predicated region fallthrough
CT: control target
= control target key end

     0   :  { %11 = vsyncpa [#allocation6], 0  ;;  %s4185_s0 = inlined_call_operand.hbm [shape: bf16[8,8,512], index: 0, kind: input, shape index: {}]   ;;  %s4186_s1 = inlined_call_operand.hbm [shape: bf16[128,512], index: 1, kind: input, shape index: {}]   ;;  %s4187_s2 = inlined_call_operand.hbm [shape: bf16[128,256], index: 2, kind: input, shape index: {}]   ;;  %s4188_s3 = inlined_call_operand.vmem [shape: f32[1,256], index: 3, kind: input, shape index: {}]   ;;  %s4189_s4 = inlined_call_operand.vmem [shape: f32[1,128], index: 4, kind: input, shape index: {}]   ;;  %s4190_s5 = inlined_call_operand.vmem [shape: f32[1,128], index: 5, kind: input, shape index: {}]   ;;  %s4191_s6 = inlined_call_operand.hbm [shape: f32[64,256], index: 6, kind: output, shape index: {}]  }
   0x1   :  { %12 = vsyncpa [#allocation9], 0 }
   0x2   :  { %13 = vsyncpa [#allocation7], 0  ;;  %s31_s23 = sshll.u32 %s4186_s1, 4  ;;  %s4078_s24 = smov [#allocation8]   ;;  %s32_s23 = int_to_ptr.hbm [resolvable:$true] %s31_s23 }
   0x3   :  { %s33_s25 = sshll.u32 %s4078_s24, 4  ;;  %s18_s28 = sshll.u32 %s4185_s0, 4  ;;  %s34_s25 = int_to_ptr.vmem [resolvable:$true] %s33_s25  ;;  %s19_s28 = int_to_ptr.hbm [resolvable:$true] %s18_s28 }
   0x4   :  { %s4079_s29 = smov 256   ;;  %s4080_s30 = smov 16  }
   0x5   :  { %39 = dma.hbm_to_vmem [thread:$0]  %s32_s23, 4096, %s34_s25, [#allocation9], %s4079_s29, %s4079_s29, %s4080_s30  }
   0x6   :  { %s4081_s7 = smov [#allocation5]   ;;  %s44_s1 = sshll.u32 %s4187_s2, 4  ;;  %s45_s1 = int_to_ptr.hbm [resolvable:$true] %s44_s1 }
   0x7   :  { %s20_s8 = sshll.u32 %s4081_s7, 4  ;;  %s4082_s0 = smov [#allocation10]   ;;  %s21_s8 = int_to_ptr.vmem [resolvable:$true] %s20_s8 }
   0x8   :  { %26 = dma.hbm_to_vmem [thread:$0]  %s19_s28, 2048, %s21_s8, [#allocation6], %s4079_s29, %s4079_s29, %s4080_s30  }
   0x9   :  { %s46_s11 = sshll.u32 %s4082_s0, 4  ;;  %s4083_s12 = smov 128   ;;  %s47_s11 = int_to_ptr.vmem [resolvable:$true] %s46_s11 }
   0xa   :  { %s4084_s13 = smov 8  }
   0xb   :  { %52 = dma.hbm_to_vmem [thread:$0]  %s45_s1, 2048, %s47_s11, [#allocation9], %s4083_s12, %s4083_s12, %s4084_s13  }
   0xc   :  { %4072 = dma.done.wait [#allocation6], 2048  }
   0xd   :  { %4073 = vsyncadd [#allocation6], 4294965248 }
   0xe   :  { %4074 = dma.done.wait [#allocation9], 6144  }
   0xf   :  { %4075 = vsyncadd [#allocation9], 4294961152  ;;  %v2630_v0 = vld [vmem:[#allocation8 + $0xe0] sm:$0xf]  ;;  %v3650_v1 = vld [vmem:[#allocation8 + $0xec] sm:$0xf0] }
  0x10   :  { %v3648_v2 = vld [vmem:[#allocation8 + $0xe4] sm:$0xf]  ;;  %v2631_v3 = vor.u32 %v3650_v1, %v2630_v0  ;;  %v2632_v4 = vld [vmem:[#allocation8 + $0xf0] sm:$0xf0]  ;;  %v2614_v5 = vld [vmem:[#allocation8 + $0xc0] sm:$0xf] }
  0x11   :  { %v3646_v6 = vld [vmem:[#allocation8 + $0xcc] sm:$0xf0]  ;;  %v2635_v7 = vor.u32 %v3648_v2, %v2632_v4  ;;  %v3644_v8 = vld [vmem:[#allocation8 + $0xc4] sm:$0xf]  ;;  %v2616_v9 = vld [vmem:[#allocation8 + $0xd0] sm:$0xf0] }
  0x12   :  { %287 = vmatpush.bf16.msra.mxu2 %v2631_v3  ;;  %v2615_v10 = vor.u32 %v3646_v6, %v2614_v5  ;;  %v2619_v11 = vor.u32 %v3644_v8, %v2616_v9  ;;  %v2598_v12 = vld [vmem:[#allocation8 + $0xa0] sm:$0xf]  ;;  %v3642_v13 = vld [vmem:[#allocation8 + $0xac] sm:$0xf0]  ;;  %v3640_v14 = vld [vmem:[#allocation8 + $0xa4] sm:$0xf] }
  0x13   :  { %300 = vmatpush.bf16.msra.mxu3 %v2635_v7  ;;  %v2600_v15 = vld [vmem:[#allocation8 + $0xb0] sm:$0xf0]  ;;  %v2599_v16 = vor.u32 %v3642_v13, %v2598_v12  ;;  %v2582_v18 = vld [vmem:[#allocation8 + $0x80] sm:$0xf]  ;;  %v3638_v19 = vld [vmem:[#allocation8 + $0x8c] sm:$0xf0] }
  0x14   :  { %v2603_v17 = vor.u32 %v3640_v14, %v2600_v15  ;;  %v3636_v20 = vld [vmem:[#allocation8 + $0x84] sm:$0xf]  ;;  %v2584_v21 = vld [vmem:[#allocation8 + $0x90] sm:$0xf0]  ;;  %v2583_v22 = vor.u32 %v3638_v19, %v2582_v18  ;;  %v2566_v24 = vld [vmem:[#allocation8 + $0x60] sm:$0xf] }
  0x15   :  { %v2587_v23 = vor.u32 %v3636_v20, %v2584_v21  ;;  %v3634_v25 = vld [vmem:[#allocation8 + $0x6c] sm:$0xf0]  ;;  %v3632_v26 = vld [vmem:[#allocation8 + $0x64] sm:$0xf]  ;;  %v2568_v27 = vld [vmem:[#allocation8 + $0x70] sm:$0xf0] }
  0x16   :  { %288 = vmatpush.bf16.msra.mxu2 %v2615_v10  ;;  %v3904_v28 = vld [vmem:[%s4189_s4] ss:$0 sm:$0xff]  ;;  %v2567_v29 = vor.u32 %v3634_v25, %v2566_v24  ;;  %v2571_v31 = vor.u32 %v3632_v26, %v2568_v27  ;;  %v3630_v33 = vld [vmem:[#allocation8 + $0x4c] sm:$0xf0]  ;;  %v3628_v34 = vld [vmem:[#allocation8 + $0x44] sm:$0xf] }
  0x17   :  { %301 = vmatpush.bf16.msra.mxu3 %v2619_v11  ;;  %v4139_v30 = vpack.c.bf16 %v3904_v28, %v3904_v28  ;;  %v2550_v32 = vld [vmem:[#allocation8 + $0x40] sm:$0xf]  ;;  %v2552_v35 = vld [vmem:[#allocation8 + $0x50] sm:$0xf0]  ;;  %v3626_v39 = vld [vmem:[#allocation8 + $0x2c] sm:$0xf0] }
  0x18   :  { %v2551_v36 = vor.u32 %v3630_v33, %v2550_v32  ;;  %v2555_v37 = vor.u32 %v3628_v34, %v2552_v35  ;;  %v2534_v38 = vld [vmem:[#allocation8 + $0x20] sm:$0xf]  ;;  %v3624_v40 = vld [vmem:[#allocation8 + $0x24] sm:$0xf]  ;;  %v2536_v41 = vld [vmem:[#allocation8 + $0x30] sm:$0xf0] }
  0x19   :  { %88 = vst [vmem:[#allocation4] sm:$0xf] %v4139_v30  ;;  %v2535_v42 = vor.u32 %v3626_v39, %v2534_v38  ;;  %v2539_v43 = vor.u32 %v3624_v40, %v2536_v41  ;;  %v2518_v44 = vld [vmem:[#allocation8] sm:$0xf]  ;;  %v3622_v45 = vld [vmem:[#allocation8 + $0xc] sm:$0xf0] }
  0x1a   :  { %289 = vmatpush.bf16.msra.mxu2 %v2599_v16  ;;  %v3620_v46 = vld [vmem:[#allocation8 + $0x4] sm:$0xf]  ;;  %v2520_v47 = vld [vmem:[#allocation8 + $0x10] sm:$0xf0]  ;;  %v2638_v48 = vld [vmem:[#allocation8 + $0xe8] sm:$0xf]  ;;  %v2519_v52 = vor.u32 %v3622_v45, %v2518_v44 }
  0x1b   :  { %302 = vmatpush.bf16.msra.mxu3 %v2603_v17  ;;  %v3651_v49 = vld [vmem:[#allocation8 + $0xf4] sm:$0xf0]  ;;  %v3649_v50 = vld [vmem:[#allocation8 + $0xec] sm:$0xf]  ;;  %v2640_v51 = vld [vmem:[#allocation8 + $0xf8] sm:$0xf0]  ;;  %v2523_v53 = vor.u32 %v3620_v46, %v2520_v47 }
  0x1c   :  { %v2639_v54 = vor.u32 %v3651_v49, %v2638_v48  ;;  %v2643_v55 = vor.u32 %v3649_v50, %v2640_v51  ;;  %v2622_v56 = vld [vmem:[#allocation8 + $0xc8] sm:$0xf]  ;;  %v3647_v57 = vld [vmem:[#allocation8 + $0xd4] sm:$0xf0]  ;;  %v3645_v58 = vld [vmem:[#allocation8 + $0xcc] sm:$0xf] }
  0x1d   :  { %v2624_v59 = vld [vmem:[#allocation8 + $0xd8] sm:$0xf0]  ;;  %v2623_v60 = vor.u32 %v3647_v57, %v2622_v56  ;;  %v2606_v62 = vld [vmem:[#allocation8 + $0xa8] sm:$0xf]  ;;  %v3643_v63 = vld [vmem:[#allocation8 + $0xb4] sm:$0xf0] }
  0x1e   :  { %290 = vmatpush.bf16.msra.mxu2 %v2583_v22  ;;  %v2627_v61 = vor.u32 %v3645_v58, %v2624_v59  ;;  %v3641_v0 = vld [vmem:[#allocation8 + $0xac] sm:$0xf]  ;;  %v2608_v1 = vld [vmem:[#allocation8 + $0xb8] sm:$0xf0]  ;;  %v2607_v2 = vor.u32 %v3643_v63, %v2606_v62  ;;  %v2590_v4 = vld [vmem:[#allocation8 + $0x88] sm:$0xf] }
  0x1f   :  { %303 = vmatpush.bf16.msra.mxu3 %v2587_v23  ;;  %v2611_v3 = vor.u32 %v3641_v0, %v2608_v1  ;;  %v3639_v5 = vld [vmem:[#allocation8 + $0x94] sm:$0xf0]  ;;  %v3637_v6 = vld [vmem:[#allocation8 + $0x8c] sm:$0xf]  ;;  %v2592_v7 = vld [vmem:[#allocation8 + $0x98] sm:$0xf0] }
  0x20   :  { %v2591_v8 = vor.u32 %v3639_v5, %v2590_v4  ;;  %v2595_v9 = vor.u32 %v3637_v6, %v2592_v7  ;;  %v2574_v10 = vld [vmem:[#allocation8 + $0x68] sm:$0xf]  ;;  %v3635_v11 = vld [vmem:[#allocation8 + $0x74] sm:$0xf0]  ;;  %v3633_v12 = vld [vmem:[#allocation8 + $0x6c] sm:$0xf] }
  0x21   :  { %v2576_v13 = vld [vmem:[#allocation8 + $0x78] sm:$0xf0]  ;;  %v2575_v14 = vor.u32 %v3635_v11, %v2574_v10  ;;  %v2558_v16 = vld [vmem:[#allocation8 + $0x48] sm:$0xf]  ;;  %v3631_v17 = vld [vmem:[#allocation8 + $0x54] sm:$0xf0] }
  0x22   :  { %291 = vmatpush.bf16.msra.mxu2 %v2567_v29  ;;  %v2579_v15 = vor.u32 %v3633_v12, %v2576_v13  ;;  %v3629_v18 = vld [vmem:[#allocation8 + $0x4c] sm:$0xf]  ;;  %v2560_v19 = vld [vmem:[#allocation8 + $0x58] sm:$0xf0]  ;;  %v2559_v20 = vor.u32 %v3631_v17, %v2558_v16  ;;  %v2542_v22 = vld [vmem:[#allocation8 + $0x28] sm:$0xf] }
  0x23   :  { %304 = vmatpush.bf16.msra.mxu3 %v2571_v31  ;;  %v2563_v21 = vor.u32 %v3629_v18, %v2560_v19  ;;  %v3627_v23 = vld [vmem:[#allocation8 + $0x34] sm:$0xf0]  ;;  %v3625_v24 = vld [vmem:[#allocation8 + $0x2c] sm:$0xf]  ;;  %v2544_v25 = vld [vmem:[#allocation8 + $0x38] sm:$0xf0] }
  0x24   :  { %v2543_v26 = vor.u32 %v3627_v23, %v2542_v22  ;;  %v2547_v27 = vor.u32 %v3625_v24, %v2544_v25  ;;  %v2526_v28 = vld [vmem:[#allocation8 + $0x8] sm:$0xf]  ;;  %v3623_v29 = vld [vmem:[#allocation8 + $0x14] sm:$0xf0]  ;;  %v3621_v31 = vld [vmem:[#allocation8 + $0xc] sm:$0xf] }
  0x25   :  { %v2528_v32 = vld [vmem:[#allocation8 + $0x18] sm:$0xf0]  ;;  %v2527_v33 = vor.u32 %v3623_v29, %v2526_v28  ;;  %v2758_v35 = vld [vmem:[#allocation8 + $0xe0] sm:$0xf]  ;;  %v2760_v39 = vld [vmem:[#allocation8 + $0xf0] sm:$0xf0] }
  0x26   :  { %292 = vmatpush.bf16.msra.mxu2 %v2551_v36  ;;  %v2531_v34 = vor.u32 %v3621_v31, %v2528_v32  ;;  %v3682_v36 = vld [vmem:[#allocation8 + $0xec] sm:$0xf0]  ;;  %v2766_v40 = vld [vmem:[#allocation8 + $0xe8] sm:$0xf]  ;;  %v3683_v41 = vld [vmem:[#allocation8 + $0xf4] sm:$0xf0] }
  0x27   :  { %305 = vmatpush.bf16.msra.mxu3 %v2555_v37  ;;  %v3680_v37 = vld [vmem:[#allocation8 + $0xe4] sm:$0xf]  ;;  %v2759_v38 = vor.u32 %v3682_v36, %v2758_v35  ;;  %v3681_v44 = vld [vmem:[#allocation8 + $0xec] sm:$0xf]  ;;  %v2768_v45 = vld [vmem:[#allocation8 + $0xf8] sm:$0xf0] }
  0x28   :  { %v2742_v46 = vld [vmem:[#allocation8 + $0xc0] sm:$0xf]  ;;  %v2771_v47 = vor.u32 %v3681_v44, %v2768_v45  ;;  %v3678_v48 = vld [vmem:[#allocation8 + $0xcc] sm:$0xf0]  ;;  %v3676_v49 = vld [vmem:[#allocation8 + $0xc4] sm:$0xf] }
  0x29   :  { %562 = vmatpush.bf16.msra.mxu0 %v2759_v38  ;;  %v2744_v50 = vld [vmem:[#allocation8 + $0xd0] sm:$0xf0]  ;;  %v2752_v56 = vld [vmem:[#allocation8 + $0xd8] sm:$0xf0]  ;;  %v2726_v58 = vld [vmem:[#allocation8 + $0xa0] sm:$0xf] }
  0x2a   :  { %293 = vmatpush.bf16.msra.mxu2 %v2535_v42  ;;  %v2763_v42 = vor.u32 %v3680_v37, %v2760_v39  ;;  %v2747_v51 = vor.u32 %v3676_v49, %v2744_v50  ;;  %v3674_v59 = vld [vmem:[#allocation8 + $0xac] sm:$0xf0]  ;;  %v2728_v62 = vld [vmem:[#allocation8 + $0xb0] sm:$0xf0]  ;;  %v2734_v63 = vld [vmem:[#allocation8 + $0xa8] sm:$0xf] }
  0x2b   :  { %306 = vmatpush.bf16.msra.mxu3 %v2539_v43  ;;  %v2767_v43 = vor.u32 %v3683_v41, %v2766_v40  ;;  %v3675_v0 = vld [vmem:[#allocation8 + $0xb4] sm:$0xf0]  ;;  %v2736_v4 = vld [vmem:[#allocation8 + $0xb8] sm:$0xf0]  ;;  %v3668_v10 = vld [vmem:[#allocation8 + $0x84] sm:$0xf] }
  0x2c   :  { %575 = vmatpush.bf16.msra.mxu1 %v2763_v42  ;;  %v2712_v12 = vld [vmem:[#allocation8 + $0x90] sm:$0xf0]  ;;  %v2718_v13 = vld [vmem:[#allocation8 + $0x88] sm:$0xf]  ;;  %v3669_v17 = vld [vmem:[#allocation8 + $0x8c] sm:$0xf] }
  0x2d   :  { %v2720_v18 = vld [vmem:[#allocation8 + $0x98] sm:$0xf0]  ;;  %v3664_v22 = vld [vmem:[#allocation8 + $0x64] sm:$0xf]  ;;  %v2696_v24 = vld [vmem:[#allocation8 + $0x70] sm:$0xf0] }
  0x2e   :  { %294 = vmatpush.bf16.msra.mxu2 %v2519_v52  ;;  %v2750_v52 = vld [vmem:[#allocation8 + $0xc8] sm:$0xf]  ;;  %v2723_v19 = vor.u32 %v3669_v17, %v2720_v18  ;;  %v2699_v28 = vor.u32 %v3664_v22, %v2696_v24  ;;  %v3665_v31 = vld [vmem:[#allocation8 + $0x6c] sm:$0xf]  ;;  %v2704_v32 = vld [vmem:[#allocation8 + $0x78] sm:$0xf0] }
  0x2f   :  { %307 = vmatpush.bf16.msra.mxu3 %v2523_v53  ;;  %v3679_v53 = vld [vmem:[#allocation8 + $0xd4] sm:$0xf0]  ;;  %v2702_v25 = vld [vmem:[#allocation8 + $0x68] sm:$0xf]  ;;  %v2707_v35 = vor.u32 %v3665_v31, %v2704_v32  ;;  %v2678_v37 = vld [vmem:[#allocation8 + $0x40] sm:$0xf] }
  0x30   :  { %576 = vmatpush.bf16.msra.mxu1 %v2747_v51  ;;  %v3662_v38 = vld [vmem:[#allocation8 + $0x4c] sm:$0xf0]  ;;  %v3660_v39 = vld [vmem:[#allocation8 + $0x44] sm:$0xf]  ;;  %v2680_v41 = vld [vmem:[#allocation8 + $0x50] sm:$0xf0] }
  0x31   :  { %295 = vmatmul.bf16.vlgmr.msra.gmra.mxu2 %v4139_v30  ;;  %v2679_v40 = vor.u32 %v3662_v38, %v2678_v37  ;;  %v2686_v42 = vld [vmem:[#allocation8 + $0x48] sm:$0xf]  ;;  %v2683_v44 = vor.u32 %v3660_v39, %v2680_v41  ;;  %v3658_v51 = vld [vmem:[#allocation8 + $0x2c] sm:$0xf0]  ;;  %v2886_v41 = vld [vmem:[#allocation8 + $0xe0] sm:$0xf] }
  0x32   :  { %313 = vmatpush.bf16.msrb.mxu2 %v2639_v54  ;;  %308 = vmatmul.bf16.vlgmr.msra.gmra.mxu3 %v4139_v30  ;;  %v3677_v54 = vld [vmem:[#allocation8 + $0xcc] sm:$0xf]  ;;  %s2502_s20 = sshll.u32 %s4191_s6, 4  ;;  %s2503_s20 = int_to_ptr.hbm [resolvable:$true] %s2502_s20 }
  0x33   :  { %326 = vmatpush.bf16.msrb.mxu3 %v2643_v55  ;;  %v2751_v55 = vor.u32 %v3679_v53, %v2750_v52  ;;  %v2755_v57 = vor.u32 %v3677_v54, %v2752_v56  ;;  %v3656_v53 = vld [vmem:[#allocation8 + $0x24] sm:$0xf]  ;;  %v2664_v54 = vld [vmem:[#allocation8 + $0x30] sm:$0xf0]  ;;  %v2670_v56 = vld [vmem:[#allocation8 + $0x28] sm:$0xf] }
  0x36   :  { %314 = vmatpush.bf16.msrb.mxu2 %v2623_v60  ;;  %v3672_v60 = vld [vmem:[#allocation8 + $0xa4] sm:$0xf] }
  0x37   :  { %327 = vmatpush.bf16.msrb.mxu3 %v2627_v61  ;;  %v2727_v61 = vor.u32 %v3674_v59, %v2726_v58  ;;  %v2731_v1 = vor.u32 %v3672_v60, %v2728_v62  ;;  %v2672_v62 = vld [vmem:[#allocation8 + $0x38] sm:$0xf0] }
  0x39   :  { %577 = vmatpush.bf16.msra.mxu1 %v2731_v1  ;;  %v3654_v1 = vld [vmem:[#allocation8 + $0xc] sm:$0xf0] }
  0x3a   :  { %315 = vmatpush.bf16.msrb.mxu2 %v2607_v2  ;;  %v2735_v2 = vor.u32 %v3675_v0, %v2734_v63  ;;  %v2646_v0 = vld [vmem:[#allocation8] sm:$0xf] }
  0x3b   :  { %328 = vmatpush.bf16.msrb.mxu3 %v2611_v3  ;;  %v3673_v3 = vld [vmem:[#allocation8 + $0xac] sm:$0xf] }
  0x3c   :  { %v2739_v6 = vor.u32 %v3673_v3, %v2736_v4  ;;  %v2647_v3 = vor.u32 %v3654_v1, %v2646_v0  ;;  %v2648_v4 = vld [vmem:[#allocation8 + $0x10] sm:$0xf0]  ;;  %v2854_v0 = vld [vmem:[#allocation8 + $0xa0] sm:$0xf]  ;;  %v3706_v1 = vld [vmem:[#allocation8 + $0xac] sm:$0xf0] }
  0x3e   :  { %316 = vmatpush.bf16.msrb.mxu2 %v2591_v8  ;;  %v2710_v8 = vld [vmem:[#allocation8 + $0x80] sm:$0xf] }
  0x3f   :  { %329 = vmatpush.bf16.msrb.mxu3 %v2595_v9  ;;  %v3670_v9 = vld [vmem:[#allocation8 + $0x8c] sm:$0xf0] }
  0x40   :  { %v2711_v11 = vor.u32 %v3670_v9, %v2710_v8 }
  0x42   :  { %317 = vmatpush.bf16.msrb.mxu2 %v2575_v14  ;;  %v3671_v14 = vld [vmem:[#allocation8 + $0x94] sm:$0xf0] }
  0x43   :  { %330 = vmatpush.bf16.msrb.mxu3 %v2579_v15  ;;  %v2715_v15 = vor.u32 %v3668_v10, %v2712_v12  ;;  %v2719_v16 = vor.u32 %v3671_v14, %v2718_v13  ;;  %v3653_v10 = vld [vmem:[#allocation8 + $0xc] sm:$0xf] }
  0x44   :  { %v90_v13 = vld [vmem:[#allocation5 + $0x8] sm:$0xff] }
  0x45   :  { %578 = vmatpush.bf16.msra.mxu1 %v2715_v15  ;;  %v93_v14 = vunpack.c.l.bf16 %v90_v13  ;;  %v94_v15 = vunpack.c.h.bf16 %v90_v13  ;;  %v3702_v13 = vld [vmem:[#allocation8 + $0x8c] sm:$0xf0] }
  0x46   :  { %318 = vmatpush.bf16.msrb.mxu2 %v2559_v20  ;;  %v2694_v20 = vld [vmem:[#allocation8 + $0x60] sm:$0xf] }
  0x47   :  { %331 = vmatpush.bf16.msrb.mxu3 %v2563_v21  ;;  %v3666_v21 = vld [vmem:[#allocation8 + $0x6c] sm:$0xf0] }
  0x48   :  { %v2695_v23 = vor.u32 %v3666_v21, %v2694_v20 }
  0x49   :  { %579 = vmatpush.bf16.msra.mxu1 %v2699_v28 }
  0x4a   :  { %319 = vmatpush.bf16.msrb.mxu2 %v2543_v26  ;;  %v3667_v26 = vld [vmem:[#allocation8 + $0x74] sm:$0xf0] }
  0x4b   :  { %332 = vmatpush.bf16.msrb.mxu3 %v2547_v27  ;;  %v89_v27 = vld [vmem:[#allocation5] sm:$0xff]  ;;  %v2703_v29 = vor.u32 %v3667_v26, %v2702_v25 }
  0x4c   :  { %v3905_v25 = vld [vmem:[%s4190_s5] ss:$0 sm:$0xff] }
  0x4d   :  { %580 = vmatpush.bf16.msra.mxu1 %v2683_v44 }
  0x4e   :  { %320 = vmatpush.bf16.msrb.mxu2 %v2527_v33  ;;  %v92_v33 = vunpack.c.h.bf16 %v89_v27 }
  0x4f   :  { %333 = vmatpush.bf16.msrb.mxu3 %v2531_v34 }
  0x51   :  { %321 = vmatmul.bf16.vlgmr.msrb.gmra.mxu2 %v4139_v30 }
  0x52   :  { %334 = vmatmul.bf16.vlgmr.msrb.gmra.mxu3 %v4139_v30  ;;  %588 = vmatpush.bf16.msra.mxu2 %v2767_v43  ;;  %v2743_v30 = vor.u32 %v3678_v48, %v2742_v46  ;;  %v3663_v43 = vld [vmem:[#allocation8 + $0x54] sm:$0xf0]  ;;  %v3661_v46 = vld [vmem:[#allocation8 + $0x4c] sm:$0xf]  ;;  %v91_v48 = vunpack.c.l.bf16 %v89_v27 }
  0x53   :  { %601 = vmatpush.bf16.msra.mxu3 %v2771_v47  ;;  %v2687_v45 = vor.u32 %v3663_v43, %v2686_v42  ;;  %v2688_v47 = vld [vmem:[#allocation8 + $0x58] sm:$0xf0]  ;;  %v3714_v42 = vld [vmem:[#allocation8 + $0xec] sm:$0xf0]  ;;  %v3712_v43 = vld [vmem:[#allocation8 + $0xe4] sm:$0xf] }
  0x54   :  { %563 = vmatpush.bf16.msra.mxu0 %v2743_v30  ;;  %v2691_v50 = vor.u32 %v3661_v46, %v2688_v47  ;;  %v2662_v30 = vld [vmem:[#allocation8 + $0x20] sm:$0xf]  ;;  %v2887_v44 = vor.u32 %v3714_v42, %v2886_v41  ;;  %v2894_v46 = vld [vmem:[#allocation8 + $0xe8] sm:$0xf]  ;;  %v3715_v47 = vld [vmem:[#allocation8 + $0xf4] sm:$0xf0] }
  0x55   :  { %v2663_v52 = vor.u32 %v3658_v51, %v2662_v30  ;;  %v2896_v30 = vld [vmem:[#allocation8 + $0xf8] sm:$0xf0]  ;;  %v2808_v42 = vld [vmem:[#allocation8 + $0x50] sm:$0xf0] }
  0x56   :  { %589 = vmatpush.bf16.msra.mxu2 %v2751_v55  ;;  %v2667_v55 = vor.u32 %v3656_v53, %v2664_v54  ;;  %v3710_v53 = vld [vmem:[#allocation8 + $0xcc] sm:$0xf0]  ;;  %v3708_v54 = vld [vmem:[#allocation8 + $0xc4] sm:$0xf] }
  0x57   :  { %602 = vmatpush.bf16.msra.mxu3 %v2755_v57  ;;  %v3659_v57 = vld [vmem:[#allocation8 + $0x34] sm:$0xf0] }
  0x58   :  { %564 = vmatpush.bf16.msra.mxu0 %v2727_v61  ;;  %v2671_v60 = vor.u32 %v3659_v57, %v2670_v56  ;;  %v3657_v61 = vld [vmem:[#allocation8 + $0x2c] sm:$0xf]  ;;  %581 = vmatpush.bf16.msra.mxu1 %v2667_v55  ;;  %v2872_v56 = vld [vmem:[#allocation8 + $0xd0] sm:$0xf0]  ;;  %v2878_v57 = vld [vmem:[#allocation8 + $0xc8] sm:$0xf] }
  0x59   :  { %v2675_v63 = vor.u32 %v3657_v61, %v2672_v62  ;;  %v3709_v61 = vld [vmem:[#allocation8 + $0xcc] sm:$0xf]  ;;  %v2880_v62 = vld [vmem:[#allocation8 + $0xd8] sm:$0xf0] }
  0x5a   :  { %590 = vmatpush.bf16.msra.mxu2 %v2735_v2  ;;  %v3652_v2 = vld [vmem:[#allocation8 + $0x4] sm:$0xf] }
  0x5b   :  { %603 = vmatpush.bf16.msra.mxu3 %v2739_v6  ;;  %v2654_v6 = vld [vmem:[#allocation8 + $0x8] sm:$0xf]  ;;  %v2651_v8 = vor.u32 %v3652_v2, %v2648_v4  ;;  %v3704_v2 = vld [vmem:[#allocation8 + $0xa4] sm:$0xf]  ;;  %v2856_v4 = vld [vmem:[#allocation8 + $0xb0] sm:$0xf0] }
  0x5c   :  { %565 = vmatpush.bf16.msra.mxu0 %v2711_v11 }
  0x5d   :  { %582 = vmatpush.bf16.msra.mxu1 %v2651_v8  ;;  %v2859_v8 = vor.u32 %v3704_v2, %v2856_v4  ;;  %v2776_v2 = vld [vmem:[#allocation8 + $0x10] sm:$0xf0]  ;;  %v3687_v4 = vld [vmem:[#allocation8 + $0x14] sm:$0xf0] }
  0x5e   :  { %591 = vmatpush.bf16.msra.mxu2 %v2719_v16 }
  0x5f   :  { %604 = vmatpush.bf16.msra.mxu3 %v2723_v19 }
  0x60   :  { %566 = vmatpush.bf16.msra.mxu0 %v2695_v23 }
  0x62   :  { %592 = vmatpush.bf16.msra.mxu2 %v2703_v29 }
  0x63   :  { %605 = vmatpush.bf16.msra.mxu3 %v2707_v35 }
  0x64   :  { %567 = vmatpush.bf16.msra.mxu0 %v2679_v40 }
  0x66   :  { %593 = vmatpush.bf16.msra.mxu2 %v2687_v45  ;;  %v2888_v45 = vld [vmem:[#allocation8 + $0xf0] sm:$0xf0] }
  0x67   :  { %606 = vmatpush.bf16.msra.mxu3 %v2691_v50  ;;  %v3713_v50 = vld [vmem:[#allocation8 + $0xec] sm:$0xf] }
  0x68   :  { %568 = vmatpush.bf16.msra.mxu0 %v2663_v52  ;;  %v2899_v51 = vor.u32 %v3713_v50, %v2896_v30  ;;  %v2870_v52 = vld [vmem:[#allocation8 + $0xc0] sm:$0xf]  ;;  %v3690_v30 = vld [vmem:[#allocation8 + $0x2c] sm:$0xf0] }
  0x69   :  { %v2871_v55 = vor.u32 %v3710_v53, %v2870_v52  ;;  %v2790_v50 = vld [vmem:[#allocation8 + $0x20] sm:$0xf]  ;;  %v2792_v53 = vld [vmem:[#allocation8 + $0x30] sm:$0xf0] }
  0x6a   :  { %594 = vmatpush.bf16.msra.mxu2 %v2671_v60  ;;  %v2791_v52 = vor.u32 %v3690_v30, %v2790_v50  ;;  %v3744_v50 = vld [vmem:[#allocation8 + $0xe4] sm:$0xf]  ;;  %v3016_v30 = vld [vmem:[#allocation8 + $0xf0] sm:$0xf0] }
  0x6b   :  { %607 = vmatpush.bf16.msra.mxu3 %v2675_v63  ;;  %v2883_v63 = vor.u32 %v3709_v61, %v2880_v62  ;;  %v2774_v62 = vld [vmem:[#allocation8] sm:$0xf] }
  0x6c   :  { %569 = vmatpush.bf16.msra.mxu0 %v2647_v3  ;;  %v2855_v3 = vor.u32 %v3706_v1, %v2854_v0  ;;  %v3684_v0 = vld [vmem:[#allocation8 + $0x4] sm:$0xf] }
  0x70   :  { %837 = vmatpush.bf16.msrb.mxu0 %v2887_v44  ;;  %v3695_v44 = vld [vmem:[#allocation8 + $0x54] sm:$0xf0] }
  0x74   :  { %838 = vmatpush.bf16.msrb.mxu0 %v2871_v55  ;;  %v3691_v55 = vld [vmem:[#allocation8 + $0x34] sm:$0xf0] }
  0x78   :  { %839 = vmatpush.bf16.msrb.mxu0 %v2855_v3  ;;  %v2782_v3 = vld [vmem:[#allocation8 + $0x8] sm:$0xf] }
  0xb4   :  { %v4146_v5 = vpop.f32.mrf.mxu2 }
  0xb5   :  { %v309_v7 = vpop.f32.mrf.mxu3  ;;  %v339_v58 = vadd.f32 %v4146_v5, %v91_v48  ;;  %v2656_v5 = vld [vmem:[#allocation8 + $0x18] sm:$0xf0]  ;;  %v2891_v48 = vor.u32 %v3712_v43, %v2888_v45  ;;  %v2814_v43 = vld [vmem:[#allocation8 + $0x48] sm:$0xf] }
  0xb6   :  { %v340_v49 = vadd.f32 %v309_v7, %v92_v33  ;;  %v3655_v7 = vld [vmem:[#allocation8 + $0x14] sm:$0xf0]  ;;  %v2659_v12 = vor.u32 %v3653_v10, %v2656_v5  ;;  %v3705_v10 = vld [vmem:[#allocation8 + $0xac] sm:$0xf]  ;;  %v2864_v5 = vld [vmem:[#allocation8 + $0xb8] sm:$0xf0] }
  0xb7   :  { %v2655_v9 = vor.u32 %v3655_v7, %v2654_v6  ;;  %v343_v11 = vmul.f32 0.5, %v339_v58  ;;  %850 = vmatpush.bf16.msrb.mxu1 %v2891_v48  ;;  %v3711_v58 = vld [vmem:[#allocation8 + $0xd4] sm:$0xf0]  ;;  %v2862_v6 = vld [vmem:[#allocation8 + $0xa8] sm:$0xf] }
  0xb8   :  { %v347_v59 = vmul.f32 0.5, %v340_v49  ;;  %608 = vmatpush.bf16.msra.mxu3 %v2659_v12  ;;  %v2895_v49 = vor.u32 %v3715_v47, %v2894_v46  ;;  %v2879_v60 = vor.u32 %v3711_v58, %v2878_v57  ;;  %v3707_v7 = vld [vmem:[#allocation8 + $0xb4] sm:$0xf0]  ;;  %v2838_v12 = vld [vmem:[#allocation8 + $0x80] sm:$0xf]  ;;  %v2815_v46 = vor.u32 %v3695_v44, %v2814_v43 }
  0xb9   :  { %595 = vmatpush.bf16.msra.mxu2 %v2655_v9  ;;  %v2863_v9 = vor.u32 %v3707_v7, %v2862_v6  ;;  %v3693_v47 = vld [vmem:[#allocation8 + $0x4c] sm:$0xf]  ;;  %v2816_v48 = vld [vmem:[#allocation8 + $0x58] sm:$0xf0]  ;;  %v2779_v6 = vor.u32 %v3684_v0, %v2776_v2  ;;  %v2783_v7 = vor.u32 %v3687_v4, %v2782_v3  ;;  %v3743_v0 = vld [vmem:[#allocation8 + $0xd4] sm:$0xf0] }
  0xba   :  { %3906 = vtanh.f32 %v347_v59  ;;  %v2875_v59 = vor.u32 %v3708_v54, %v2872_v56  ;;  %v2798_v54 = vld [vmem:[#allocation8 + $0x28] sm:$0xf]  ;;  %v3689_v58 = vld [vmem:[#allocation8 + $0x2c] sm:$0xf]  ;;  %v3008_v4 = vld [vmem:[#allocation8 + $0xd8] sm:$0xf0] }
  0xbb   :  { %3908 = vtanh.f32 %v343_v11  ;;  %v2867_v11 = vor.u32 %v3705_v10, %v2864_v5  ;;  %v2799_v57 = vor.u32 %v3691_v55, %v2798_v54  ;;  %v3745_v55 = vld [vmem:[#allocation8 + $0xec] sm:$0xf] }
  0xbc   :  { %v298_v34 = vpop.f32.mrf.mxu2  ;;  %876 = vmatpush.bf16.msrb.mxu3 %v2899_v51  ;;  %851 = vmatpush.bf16.msrb.mxu1 %v2875_v59  ;;  %v3688_v51 = vld [vmem:[#allocation8 + $0x24] sm:$0xf]  ;;  %v2800_v59 = vld [vmem:[#allocation8 + $0x38] sm:$0xf0]  ;;  %v3741_v3 = vld [vmem:[#allocation8 + $0xcc] sm:$0xf] }
  0xbd   :  { %v311_v36 = vpop.f32.mrf.mxu3  ;;  %863 = vmatpush.bf16.msrb.mxu2 %v2895_v49  ;;  %v2819_v49 = vor.u32 %v3693_v47, %v2816_v48  ;;  %v2795_v56 = vor.u32 %v3688_v51, %v2792_v53  ;;  %v2803_v61 = vor.u32 %v3689_v58, %v2800_v59  ;;  %v3014_v48 = vld [vmem:[#allocation8 + $0xe0] sm:$0xf]  ;;  %v3022_v51 = vld [vmem:[#allocation8 + $0xe8] sm:$0xf]  ;;  %v3019_v53 = vor.u32 %v3744_v50, %v3016_v30  ;;  %v3742_v59 = vld [vmem:[#allocation8 + $0xcc] sm:$0xf0] }
  0xbe   :  { %v2998_v58 = vld [vmem:[#allocation8 + $0xc0] sm:$0xf]  ;;  %v2942_v50 = vld [vmem:[#allocation8 + $0x48] sm:$0xf] }
  0xc0   :  { %v3907_v16 = vpop.eup %3906  ;;  %877 = vmatpush.bf16.msrb.mxu3 %v2883_v63  ;;  %852 = vmatpush.bf16.msrb.mxu1 %v2859_v8  ;;  %v3686_v63 = vld [vmem:[#allocation8 + $0xc] sm:$0xf0]  ;;  %v3685_v8 = vld [vmem:[#allocation8 + $0xc] sm:$0xf] }
  0xc1   :  { %v3909_v18 = vpop.eup %3908  ;;  %v349_v21 = vadd.f32 1.0, %v3907_v16  ;;  %864 = vmatpush.bf16.msrb.mxu2 %v2879_v60  ;;  %v2840_v16 = vld [vmem:[#allocation8 + $0x90] sm:$0xf0]  ;;  %v2775_v1 = vor.u32 %v3686_v63, %v2774_v62  ;;  %v3006_v63 = vld [vmem:[#allocation8 + $0xc8] sm:$0xf] }
  0xc2   :  { %v345_v23 = vadd.f32 1.0, %v3909_v18  ;;  %v3703_v18 = vld [vmem:[#allocation8 + $0x94] sm:$0xf0]  ;;  %v364_v60 = vld [vmem:[#allocation5 + $0x10] sm:$0xff]  ;;  %v3007_v2 = vor.u32 %v3743_v0, %v3006_v63  ;;  %v3721_v0 = vld [vmem:[#allocation8 + $0x2c] sm:$0xf] }
  0xc3   :  { %v350_v26 = vmul.f32 0.5, %v349_v21  ;;  %v3701_v21 = vld [vmem:[#allocation8 + $0x8c] sm:$0xf]  ;;  %v366_v10 = vunpack.c.l.bf16 %v364_v60  ;;  %v367_v5 = vunpack.c.h.bf16 %v364_v60  ;;  %v3740_v60 = vld [vmem:[#allocation8 + $0xc4] sm:$0xf] }
  0xc4   :  { %v346_v27 = vmul.f32 0.5, %v345_v23  ;;  %878 = vmatpush.bf16.msrb.mxu3 %v2867_v11  ;;  %v3000_v62 = vld [vmem:[#allocation8 + $0xd0] sm:$0xf0] }
  0xc5   :  { %v356_v32 = vmul.f32 %v3905_v25, %v350_v26  ;;  %865 = vmatpush.bf16.msrb.mxu2 %v2863_v9  ;;  %v3698_v25 = vld [vmem:[#allocation8 + $0x6c] sm:$0xf0]  ;;  %v3696_v26 = vld [vmem:[#allocation8 + $0x64] sm:$0xf]  ;;  %v2784_v9 = vld [vmem:[#allocation8 + $0x18] sm:$0xf0] }
  0xc6   :  { %v2787_v11 = vor.u32 %v3685_v8, %v2784_v9  ;;  %v3738_v8 = vld [vmem:[#allocation8 + $0xac] sm:$0xf0]  ;;  %v3736_v9 = vld [vmem:[#allocation8 + $0xa4] sm:$0xf] }
  0xd4   :  { %v322_v17 = vpop.f32.mrf.mxu2 }
  0xd5   :  { %v341_v19 = vadd.f32 %v322_v17, %v93_v14  ;;  %v335_v20 = vpop.f32.mrf.mxu3  ;;  %v3700_v14 = vld [vmem:[#allocation8 + $0x84] sm:$0xf]  ;;  %v2846_v17 = vld [vmem:[#allocation8 + $0x88] sm:$0xf] }
  0xd6   :  { %v342_v22 = vadd.f32 %v335_v20, %v94_v15  ;;  %v2839_v15 = vor.u32 %v3702_v13, %v2838_v12  ;;  %v2847_v20 = vor.u32 %v3703_v18, %v2846_v17 }
  0xd7   :  { %3910 = vtanh.f32 %v341_v19  ;;  %v2843_v19 = vor.u32 %v3700_v14, %v2840_v16  ;;  %v365_v16 = vld [vmem:[#allocation5 + $0x18] sm:$0xff] }
  0xd8   :  { %v352_v24 = vmul.f32 0.5, %v342_v22  ;;  %v2848_v22 = vld [vmem:[#allocation8 + $0x98] sm:$0xf0]  ;;  %840 = vmatpush.bf16.msrb.mxu0 %v2839_v15  ;;  %866 = vmatpush.bf16.msrb.mxu2 %v2847_v20  ;;  %v369_v20 = vunpack.c.h.bf16 %v365_v16 }
  0xd9   :  { %v2851_v23 = vor.u32 %v3701_v21, %v2848_v22  ;;  %853 = vmatpush.bf16.msrb.mxu1 %v2843_v19  ;;  %v368_v19 = vunpack.c.l.bf16 %v365_v16  ;;  %v2992_v16 = vld [vmem:[#allocation8 + $0xb8] sm:$0xf0] }
  0xda   :  { %3912 = vtanh.f32 %v352_v24  ;;  %v2822_v24 = vld [vmem:[#allocation8 + $0x60] sm:$0xf] }
  0xdb   :  { %879 = vmatpush.bf16.msrb.mxu3 %v2851_v23 }
  0xdc   :  { %v324_v28 = vpop.f32.mrf.mxu2 }
  0xdd   :  { %v3911_v29 = vpop.eup %3910  ;;  %v337_v31 = vpop.f32.mrf.mxu3  ;;  %v2824_v28 = vld [vmem:[#allocation8 + $0x70] sm:$0xf0] }
  0xde   :  { %v357_v33 = vmul.f32 %v3911_v29, %v346_v27  ;;  %v2823_v27 = vor.u32 %v3698_v25, %v2822_v24  ;;  %v2830_v29 = vld [vmem:[#allocation8 + $0x68] sm:$0xf]  ;;  %v3699_v31 = vld [vmem:[#allocation8 + $0x74] sm:$0xf0] }
  0xe0   :  { %v3913_v34 = vpop.eup %3912  ;;  %v4152_v35 = vadd.f32 %v357_v33, %v356_v32  ;;  %v2827_v32 = vor.u32 %v3696_v26, %v2824_v28  ;;  %v2831_v33 = vor.u32 %v3699_v31, %v2830_v29  ;;  %841 = vmatpush.bf16.msrb.mxu0 %v2823_v27 }
  0xe1   :  { %v354_v36 = vadd.f32 1.0, %v3913_v34  ;;  %v3697_v34 = vld [vmem:[#allocation8 + $0x6c] sm:$0xf] }
  0xe2   :  { %3914 = vtanh.f32 %v4152_v35  ;;  %854 = vmatpush.bf16.msrb.mxu1 %v2827_v32  ;;  %867 = vmatpush.bf16.msrb.mxu2 %v2831_v33 }
  0xe3   :  { %v355_v37 = vmul.f32 0.5, %v354_v36  ;;  %v2832_v36 = vld [vmem:[#allocation8 + $0x78] sm:$0xf0] }
  0xe6   :  { %868 = vmatpush.bf16.msrb.mxu2 %v2815_v46 }
  0xe8   :  { %v3915_v38 = vpop.eup %3914 }
  0xe9   :  { %v360_v39 = vmul.f32 %v3915_v38, %v355_v37  ;;  %v2835_v37 = vor.u32 %v3697_v34, %v2832_v36  ;;  %v2806_v38 = vld [vmem:[#allocation8 + $0x40] sm:$0xf] }
  0xea   :  { %869 = vmatpush.bf16.msrb.mxu2 %v2799_v57 }
  0xeb   :  { %v361_v40 = vpack.c.bf16 %v360_v39, %v360_v39  ;;  %v3694_v39 = vld [vmem:[#allocation8 + $0x4c] sm:$0xf0]  ;;  %880 = vmatpush.bf16.msrb.mxu3 %v2835_v37 }
  0xec   :  { %v2807_v41 = vor.u32 %v3694_v39, %v2806_v38 }
  0xed   :  { %362 = vst [vmem:[#allocation4 + $0x4] sm:$0xf] %v361_v40  ;;  %570 = vmatmul.bf16.vlgmr.msra.gmra.mxu0 %v361_v40  ;;  %583 = vmatmul.bf16.vlgmr.msra.gmra.mxu1 %v361_v40 }
  0xee   :  { %596 = vmatmul.bf16.vlgmr.msra.gmra.mxu2 %v361_v40  ;;  %609 = vmatmul.bf16.vlgmr.msra.gmra.mxu3 %v361_v40  ;;  %v3692_v40 = vld [vmem:[#allocation8 + $0x44] sm:$0xf] }
  0xef   :  { %v2811_v45 = vor.u32 %v3692_v40, %v2808_v42  ;;  %842 = vmatpush.bf16.msrb.mxu0 %v2807_v41  ;;  %881 = vmatpush.bf16.msrb.mxu3 %v2819_v49  ;;  %v3746_v49 = vld [vmem:[#allocation8 + $0xec] sm:$0xf0] }
  0xf0   :  { %870 = vmatpush.bf16.msrb.mxu2 %v2783_v7  ;;  %v2982_v7 = vld [vmem:[#allocation8 + $0xa0] sm:$0xf] }
  0xf1   :  { %855 = vmatpush.bf16.msrb.mxu1 %v2811_v45 }
  0xf3   :  { %843 = vmatpush.bf16.msrb.mxu0 %v2791_v52  ;;  %882 = vmatpush.bf16.msrb.mxu3 %v2803_v61  ;;  %v3747_v52 = vld [vmem:[#allocation8 + $0xf4] sm:$0xf0]  ;;  %v2999_v61 = vor.u32 %v3742_v59, %v2998_v58  ;;  %v2920_v59 = vld [vmem:[#allocation8 + $0x30] sm:$0xf0] }
  0xf4   :  { %v3023_v54 = vor.u32 %v3747_v52, %v3022_v51  ;;  %v3725_v52 = vld [vmem:[#allocation8 + $0x4c] sm:$0xf] }
  0xf5   :  { %856 = vmatpush.bf16.msrb.mxu1 %v2795_v56  ;;  %v3024_v56 = vld [vmem:[#allocation8 + $0xf8] sm:$0xf0] }
  0xf6   :  { %v3027_v57 = vor.u32 %v3745_v55, %v3024_v56  ;;  %1138 = vmatpush.bf16.msra.mxu2 %v3023_v54  ;;  %v2918_v55 = vld [vmem:[#allocation8 + $0x20] sm:$0xf]  ;;  %v3722_v56 = vld [vmem:[#allocation8 + $0x2c] sm:$0xf0] }
  0xf7   :  { %844 = vmatpush.bf16.msrb.mxu0 %v2775_v1  ;;  %883 = vmatpush.bf16.msrb.mxu3 %v2787_v11  ;;  %v3003_v1 = vor.u32 %v3740_v60, %v3000_v62  ;;  %v2990_v11 = vld [vmem:[#allocation8 + $0xa8] sm:$0xf]  ;;  %v2919_v58 = vor.u32 %v3722_v56, %v2918_v55  ;;  %v3776_v55 = vld [vmem:[#allocation8 + $0xe4] sm:$0xf]  ;;  %v3144_v56 = vld [vmem:[#allocation8 + $0xf0] sm:$0xf0] }
  0xf8   :  { %v2926_v60 = vld [vmem:[#allocation8 + $0x28] sm:$0xf] }
  0xf9   :  { %857 = vmatpush.bf16.msrb.mxu1 %v2779_v6  ;;  %v3011_v6 = vor.u32 %v3741_v3, %v3008_v4  ;;  %v2902_v4 = vld [vmem:[#allocation8] sm:$0xf] }
  0xfa   :  { %1139 = vmatpush.bf16.msra.mxu2 %v3007_v2  ;;  %v639_v2 = vld [vmem:[#allocation5 + $0x20] sm:$0xff] }
  0xfb   :  { %1151 = vmatpush.bf16.msra.mxu3 %v3027_v57  ;;  %v3720_v57 = vld [vmem:[#allocation8 + $0x24] sm:$0xf] }
  0xfc   :  { %v2923_v62 = vor.u32 %v3720_v57, %v2920_v59  ;;  %v3150_v57 = vld [vmem:[#allocation8 + $0xe8] sm:$0xf]  ;;  %v3147_v59 = vor.u32 %v3776_v55, %v3144_v56 }
  0xfd   :  { %1125 = vmatpush.bf16.msra.mxu1 %v3019_v53  ;;  %v2944_v53 = vld [vmem:[#allocation8 + $0x58] sm:$0xf0]  ;;  %v3070_v55 = vld [vmem:[#allocation8 + $0x48] sm:$0xf] }
  0xfe   :  { %v2947_v54 = vor.u32 %v3725_v52, %v2944_v53  ;;  %v3142_v53 = vld [vmem:[#allocation8 + $0xe0] sm:$0xf] }
  0xff   :  { %1152 = vmatpush.bf16.msra.mxu3 %v3011_v6  ;;  %v3718_v6 = vld [vmem:[#allocation8 + $0xc] sm:$0xf0] }
 0x101   :  { %1126 = vmatpush.bf16.msra.mxu1 %v3003_v1  ;;  %v2928_v1 = vld [vmem:[#allocation8 + $0x38] sm:$0xf0] }
 0x102   :  { %v2931_v3 = vor.u32 %v3721_v0, %v2928_v1  ;;  %v3126_v0 = vld [vmem:[#allocation8 + $0xc0] sm:$0xf]  ;;  %v3774_v1 = vld [vmem:[#allocation8 + $0xcc] sm:$0xf0] }
 0x16a   :  { %v571_v12 = vpop.f32.mrf.mxu0  ;;  %v584_v13 = vpop.f32.mrf.mxu1 }
 0x16b   :  { %v614_v14 = vadd.f32 %v571_v12, %v366_v10  ;;  %v615_v15 = vadd.f32 %v584_v13, %v367_v5  ;;  %v2983_v10 = vor.u32 %v3738_v8, %v2982_v7  ;;  %v2984_v5 = vld [vmem:[#allocation8 + $0xb0] sm:$0xf0]  ;;  %v3739_v12 = vld [vmem:[#allocation8 + $0xb4] sm:$0xf0]  ;;  %v3716_v7 = vld [vmem:[#allocation8 + $0x4] sm:$0xf]  ;;  %v2903_v8 = vor.u32 %v3718_v6, %v2902_v4 }
 0x16c   :  { %v2987_v13 = vor.u32 %v3736_v9, %v2984_v5  ;;  %v2904_v9 = vld [vmem:[#allocation8 + $0x10] sm:$0xf0]  ;;  %v3719_v5 = vld [vmem:[#allocation8 + $0x14] sm:$0xf0]  ;;  %v3134_v6 = vld [vmem:[#allocation8 + $0xc8] sm:$0xf] }
 0x16d   :  { %v618_v17 = vmul.f32 0.5, %v614_v14  ;;  %v622_v18 = vmul.f32 0.5, %v615_v15  ;;  %v2991_v14 = vor.u32 %v3739_v12, %v2990_v11  ;;  %v3737_v15 = vld [vmem:[#allocation8 + $0xac] sm:$0xf]  ;;  %v2907_v11 = vor.u32 %v3716_v7, %v2904_v9  ;;  %v3128_v4 = vld [vmem:[#allocation8 + $0xd0] sm:$0xf0] }
 0x16e   :  { %1127 = vmatpush.bf16.msra.mxu1 %v2987_v13  ;;  %v3717_v13 = vld [vmem:[#allocation8 + $0xc] sm:$0xf]  ;;  %v3775_v7 = vld [vmem:[#allocation8 + $0xd4] sm:$0xf0] }
 0x16f   :  { %3916 = vtanh.f32 %v618_v17  ;;  %v2995_v17 = vor.u32 %v3737_v15, %v2992_v16  ;;  %1140 = vmatpush.bf16.msra.mxu2 %v2991_v14  ;;  %v2912_v14 = vld [vmem:[#allocation8 + $0x18] sm:$0xf0]  ;;  %v641_v15 = vunpack.c.l.bf16 %v639_v2  ;;  %v642_v16 = vunpack.c.h.bf16 %v639_v2  ;;  %v3772_v2 = vld [vmem:[#allocation8 + $0xc4] sm:$0xf] }
 0x170   :  { %3918 = vtanh.f32 %v622_v18  ;;  %v2966_v18 = vld [vmem:[#allocation8 + $0x80] sm:$0xf]  ;;  %v3135_v9 = vor.u32 %v3775_v7, %v3134_v6  ;;  %v3753_v7 = vld [vmem:[#allocation8 + $0x2c] sm:$0xf] }
 0x171   :  { %v597_v21 = vpop.f32.mrf.mxu2  ;;  %v610_v22 = vpop.f32.mrf.mxu3  ;;  %1153 = vmatpush.bf16.msra.mxu3 %v2995_v17  ;;  %v2915_v17 = vor.u32 %v3717_v13, %v2912_v14  ;;  %v3770_v13 = vld [vmem:[#allocation8 + $0xac] sm:$0xf0]  ;;  %v3768_v14 = vld [vmem:[#allocation8 + $0xa4] sm:$0xf] }
 0x172   :  { %v616_v23 = vadd.f32 %v597_v21, %v368_v19  ;;  %v617_v24 = vadd.f32 %v610_v22, %v369_v20  ;;  %v573_v25 = vpop.f32.mrf.mxu0  ;;  %v586_v26 = vpop.f32.mrf.mxu1  ;;  %v3734_v19 = vld [vmem:[#allocation8 + $0x8c] sm:$0xf0]  ;;  %v3732_v20 = vld [vmem:[#allocation8 + $0x84] sm:$0xf]  ;;  %v2968_v22 = vld [vmem:[#allocation8 + $0x90] sm:$0xf0] }
 0x173   :  { %v2967_v21 = vor.u32 %v3734_v19, %v2966_v18  ;;  %v2971_v25 = vor.u32 %v3732_v20, %v2968_v22  ;;  %v640_v22 = vld [vmem:[#allocation5 + $0x28] sm:$0xff] }
 0x174   :  { %3920 = vtanh.f32 %v616_v23  ;;  %v627_v27 = vmul.f32 0.5, %v617_v24  ;;  %v2974_v23 = vld [vmem:[#allocation8 + $0x88] sm:$0xf]  ;;  %v3735_v24 = vld [vmem:[#allocation8 + $0x94] sm:$0xf0] }
 0x175   :  { %v3917_v28 = vpop.eup %3916  ;;  %v2975_v26 = vor.u32 %v3735_v24, %v2974_v23  ;;  %1128 = vmatpush.bf16.msra.mxu1 %v2971_v25  ;;  %v643_v25 = vunpack.c.l.bf16 %v640_v22 }
 0x176   :  { %v3919_v29 = vpop.eup %3918  ;;  %v620_v31 = vadd.f32 1.0, %v3917_v28  ;;  %3922 = vtanh.f32 %v627_v27  ;;  %v3733_v27 = vld [vmem:[#allocation8 + $0x8c] sm:$0xf]  ;;  %v2976_v28 = vld [vmem:[#allocation8 + $0x98] sm:$0xf0] }
 0x177   :  { %v624_v32 = vadd.f32 1.0, %v3919_v29  ;;  %v2979_v29 = vor.u32 %v3733_v27, %v2976_v28  ;;  %1141 = vmatpush.bf16.msra.mxu2 %v2975_v26  ;;  %v644_v26 = vunpack.c.h.bf16 %v640_v22  ;;  %v3120_v22 = vld [vmem:[#allocation8 + $0xb8] sm:$0xf0] }
 0x178   :  { %v621_v33 = vmul.f32 0.5, %v620_v31  ;;  %v2950_v31 = vld [vmem:[#allocation8 + $0x60] sm:$0xf] }
 0x179   :  { %v625_v34 = vmul.f32 0.5, %v624_v32  ;;  %v599_v36 = vpop.f32.mrf.mxu2  ;;  %v612_v37 = vpop.f32.mrf.mxu3  ;;  %v3730_v32 = vld [vmem:[#allocation8 + $0x6c] sm:$0xf0]  ;;  %1154 = vmatpush.bf16.msra.mxu3 %v2979_v29 }
 0x17a   :  { %v3921_v38 = vpop.eup %3920  ;;  %v2952_v36 = vld [vmem:[#allocation8 + $0x70] sm:$0xf0]  ;;  %v2958_v37 = vld [vmem:[#allocation8 + $0x68] sm:$0xf] }
 0x17b   :  { %v631_v39 = vmul.f32 %v625_v34, %v4152_v35  ;;  %v632_v40 = vmul.f32 %v3921_v38, %v621_v33  ;;  %v3015_v35 = vor.u32 %v3746_v49, %v3014_v48  ;;  %v3728_v33 = vld [vmem:[#allocation8 + $0x64] sm:$0xf]  ;;  %v2951_v34 = vor.u32 %v3730_v32, %v2950_v31  ;;  %v3731_v38 = vld [vmem:[#allocation8 + $0x74] sm:$0xf0]  ;;  %v2936_v49 = vld [vmem:[#allocation8 + $0x50] sm:$0xf0] }
 0x17c   :  { %v3923_v41 = vpop.eup %3922 }
 0x17d   :  { %v4156_v42 = vadd.f32 %v632_v40, %v631_v39  ;;  %v629_v43 = vadd.f32 1.0, %v3923_v41  ;;  %1112 = vmatpush.bf16.msra.mxu0 %v3015_v35  ;;  %v2955_v39 = vor.u32 %v3728_v33, %v2952_v36  ;;  %v2959_v40 = vor.u32 %v3731_v38, %v2958_v37  ;;  %v3729_v41 = vld [vmem:[#allocation8 + $0x6c] sm:$0xf]  ;;  %v3727_v35 = vld [vmem:[#allocation8 + $0x54] sm:$0xf0] }
 0x17e   :  { %v2943_v51 = vor.u32 %v3727_v35, %v2942_v50 }
 0x17f   :  { %3924 = vtanh.f32 %v4156_v42  ;;  %v630_v44 = vmul.f32 0.5, %v629_v43  ;;  %v2960_v43 = vld [vmem:[#allocation8 + $0x78] sm:$0xf0]  ;;  %1129 = vmatpush.bf16.msra.mxu1 %v2955_v39  ;;  %1142 = vmatpush.bf16.msra.mxu2 %v2959_v40 }
 0x181   :  { %1113 = vmatpush.bf16.msra.mxu0 %v2999_v61  ;;  %v3723_v61 = vld [vmem:[#allocation8 + $0x34] sm:$0xf0] }
 0x182   :  { %v2927_v63 = vor.u32 %v3723_v61, %v2926_v60  ;;  %v3777_v61 = vld [vmem:[#allocation8 + $0xec] sm:$0xf] }
 0x183   :  { %1143 = vmatpush.bf16.msra.mxu2 %v2943_v51 }
 0x185   :  { %v3925_v45 = vpop.eup %3924  ;;  %1114 = vmatpush.bf16.msra.mxu0 %v2983_v10  ;;  %v2910_v10 = vld [vmem:[#allocation8 + $0x8] sm:$0xf] }
 0x186   :  { %v635_v46 = vmul.f32 %v3925_v45, %v630_v44  ;;  %v2963_v44 = vor.u32 %v3729_v41, %v2960_v43  ;;  %v2934_v45 = vld [vmem:[#allocation8 + $0x40] sm:$0xf]  ;;  %v2911_v12 = vor.u32 %v3719_v5, %v2910_v10  ;;  %v3773_v10 = vld [vmem:[#allocation8 + $0xcc] sm:$0xf]  ;;  %v3136_v5 = vld [vmem:[#allocation8 + $0xd8] sm:$0xf0] }
 0x187   :  { %1144 = vmatpush.bf16.msra.mxu2 %v2927_v63 }
 0x188   :  { %v636_v47 = vpack.c.bf16 %v635_v46, %v635_v46  ;;  %v3726_v46 = vld [vmem:[#allocation8 + $0x4c] sm:$0xf0]  ;;  %1155 = vmatpush.bf16.msra.mxu3 %v2963_v44 }
 0x189   :  { %1115 = vmatpush.bf16.msra.mxu0 %v2967_v21  ;;  %v2935_v48 = vor.u32 %v3726_v46, %v2934_v45 }
 0x18a   :  { %637 = vst [vmem:[#allocation4 + $0x8] sm:$0xf] %v636_v47  ;;  %845 = vmatmul.bf16.vlgmr.msrb.gmra.mxu0 %v636_v47  ;;  %858 = vmatmul.bf16.vlgmr.msrb.gmra.mxu1 %v636_v47 }
 0x18b   :  { %871 = vmatmul.bf16.vlgmr.msrb.gmra.mxu2 %v636_v47  ;;  %884 = vmatmul.bf16.vlgmr.msrb.gmra.mxu3 %v636_v47  ;;  %v3724_v47 = vld [vmem:[#allocation8 + $0x44] sm:$0xf] }
 0x18c   :  { %v2939_v30 = vor.u32 %v3724_v47, %v2936_v49  ;;  %1156 = vmatpush.bf16.msra.mxu3 %v2947_v54  ;;  %1145 = vmatpush.bf16.msra.mxu2 %v2911_v12  ;;  %v3778_v54 = vld [vmem:[#allocation8 + $0xec] sm:$0xf0]  ;;  %v3110_v12 = vld [vmem:[#allocation8 + $0xa0] sm:$0xf] }
 0x18d   :  { %1116 = vmatpush.bf16.msra.mxu0 %v2951_v34 }
 0x18e   :  { %1130 = vmatpush.bf16.msra.mxu1 %v2939_v30 }
 0x190   :  { %1157 = vmatpush.bf16.msra.mxu3 %v2931_v3  ;;  %v3127_v3 = vor.u32 %v3774_v1, %v3126_v0  ;;  %v3048_v1 = vld [vmem:[#allocation8 + $0x30] sm:$0xf0] }
 0x191   :  { %1117 = vmatpush.bf16.msra.mxu0 %v2935_v48 }
 0x192   :  { %1131 = vmatpush.bf16.msra.mxu1 %v2923_v62  ;;  %v3152_v62 = vld [vmem:[#allocation8 + $0xf8] sm:$0xf0] }
 0x193   :  { %v3155_v63 = vor.u32 %v3777_v61, %v3152_v62  ;;  %v3046_v61 = vld [vmem:[#allocation8 + $0x20] sm:$0xf]  ;;  %v3754_v62 = vld [vmem:[#allocation8 + $0x2c] sm:$0xf0] }
 0x194   :  { %1158 = vmatpush.bf16.msra.mxu3 %v2915_v17  ;;  %v3118_v17 = vld [vmem:[#allocation8 + $0xa8] sm:$0xf]  ;;  %v3047_v0 = vor.u32 %v3754_v62, %v3046_v61  ;;  %v3808_v61 = vld [vmem:[#allocation8 + $0xe4] sm:$0xf]  ;;  %v3272_v62 = vld [vmem:[#allocation8 + $0xf0] sm:$0xf0] }
 0x195   :  { %1118 = vmatpush.bf16.msra.mxu0 %v2919_v58  ;;  %v3779_v58 = vld [vmem:[#allocation8 + $0xf4] sm:$0xf0] }
 0x196   :  { %1132 = vmatpush.bf16.msra.mxu1 %v2907_v11  ;;  %v3151_v60 = vor.u32 %v3779_v58, %v3150_v57  ;;  %v3139_v11 = vor.u32 %v3773_v10, %v3136_v5  ;;  %v3757_v58 = vld [vmem:[#allocation8 + $0x4c] sm:$0xf]  ;;  %v3030_v5 = vld [vmem:[#allocation8] sm:$0xf] }
 0x198   :  { %1413 = vmatpush.bf16.msrb.mxu2 %v3151_v60  ;;  %1426 = vmatpush.bf16.msrb.mxu3 %v3155_v63  ;;  %v3752_v63 = vld [vmem:[#allocation8 + $0x24] sm:$0xf] }
 0x199   :  { %1119 = vmatpush.bf16.msra.mxu0 %v2903_v8  ;;  %v3131_v8 = vor.u32 %v3772_v2, %v3128_v4  ;;  %v3054_v2 = vld [vmem:[#allocation8 + $0x28] sm:$0xf]  ;;  %v3051_v4 = vor.u32 %v3752_v63, %v3048_v1  ;;  %v3275_v1 = vor.u32 %v3808_v61, %v3272_v62 }
 0x19a   :  { %1400 = vmatpush.bf16.msrb.mxu1 %v3147_v59  ;;  %v3072_v59 = vld [vmem:[#allocation8 + $0x58] sm:$0xf0]  ;;  %v3278_v63 = vld [vmem:[#allocation8 + $0xe8] sm:$0xf] }
 0x19b   :  { %v3075_v60 = vor.u32 %v3757_v58, %v3072_v59  ;;  %v3270_v59 = vld [vmem:[#allocation8 + $0xe0] sm:$0xf]  ;;  %v3198_v61 = vld [vmem:[#allocation8 + $0x48] sm:$0xf] }
 0x19c   :  { %1414 = vmatpush.bf16.msrb.mxu2 %v3135_v9  ;;  %1427 = vmatpush.bf16.msrb.mxu3 %v3139_v11  ;;  %v914_v9 = vld [vmem:[#allocation5 + $0x30] sm:$0xff] }
 0x19d   :  { %v3750_v11 = vld [vmem:[#allocation8 + $0xc] sm:$0xf0] }
 0x19e   :  { %1401 = vmatpush.bf16.msrb.mxu1 %v3131_v8  ;;  %v3056_v8 = vld [vmem:[#allocation8 + $0x38] sm:$0xf0] }
 0x19f   :  { %v3059_v10 = vor.u32 %v3753_v7, %v3056_v8  ;;  %v3254_v7 = vld [vmem:[#allocation8 + $0xc0] sm:$0xf]  ;;  %v3806_v8 = vld [vmem:[#allocation8 + $0xcc] sm:$0xf0] }
 0x207   :  { %v846_v18 = vpop.f32.mrf.mxu0  ;;  %v859_v19 = vpop.f32.mrf.mxu1 }
 0x208   :  { %v889_v20 = vadd.f32 %v846_v18, %v641_v15  ;;  %v890_v21 = vadd.f32 %v859_v19, %v642_v16  ;;  %v3111_v15 = vor.u32 %v3770_v13, %v3110_v12  ;;  %v3112_v16 = vld [vmem:[#allocation8 + $0xb0] sm:$0xf0]  ;;  %v3771_v18 = vld [vmem:[#allocation8 + $0xb4] sm:$0xf0]  ;;  %v3748_v12 = vld [vmem:[#allocation8 + $0x4] sm:$0xf]  ;;  %v3031_v13 = vor.u32 %v3750_v11, %v3030_v5 }
 0x209   :  { %v3115_v19 = vor.u32 %v3768_v14, %v3112_v16  ;;  %v3032_v14 = vld [vmem:[#allocation8 + $0x10] sm:$0xf0]  ;;  %v3751_v16 = vld [vmem:[#allocation8 + $0x14] sm:$0xf0]  ;;  %v3262_v11 = vld [vmem:[#allocation8 + $0xc8] sm:$0xf] }
 0x20a   :  { %v893_v23 = vmul.f32 0.5, %v889_v20  ;;  %v897_v24 = vmul.f32 0.5, %v890_v21  ;;  %v3119_v20 = vor.u32 %v3771_v18, %v3118_v17  ;;  %v3769_v21 = vld [vmem:[#allocation8 + $0xac] sm:$0xf]  ;;  %v3035_v17 = vor.u32 %v3748_v12, %v3032_v14  ;;  %v3256_v5 = vld [vmem:[#allocation8 + $0xd0] sm:$0xf0] }
 0x20b   :  { %1402 = vmatpush.bf16.msrb.mxu1 %v3115_v19  ;;  %v3749_v19 = vld [vmem:[#allocation8 + $0xc] sm:$0xf]  ;;  %v3807_v12 = vld [vmem:[#allocation8 + $0xd4] sm:$0xf0] }
 0x20c   :  { %3926 = vtanh.f32 %v893_v23  ;;  %v3123_v23 = vor.u32 %v3769_v21, %v3120_v22  ;;  %1415 = vmatpush.bf16.msrb.mxu2 %v3119_v20  ;;  %v3040_v20 = vld [vmem:[#allocation8 + $0x18] sm:$0xf0]  ;;  %v916_v21 = vunpack.c.l.bf16 %v914_v9  ;;  %v917_v22 = vunpack.c.h.bf16 %v914_v9  ;;  %v3804_v9 = vld [vmem:[#allocation8 + $0xc4] sm:$0xf] }
 0x20d   :  { %3928 = vtanh.f32 %v897_v24  ;;  %v3094_v24 = vld [vmem:[#allocation8 + $0x80] sm:$0xf]  ;;  %v3263_v14 = vor.u32 %v3807_v12, %v3262_v11  ;;  %v3785_v12 = vld [vmem:[#allocation8 + $0x2c] sm:$0xf] }
 0x20e   :  { %v872_v27 = vpop.f32.mrf.mxu2  ;;  %v885_v28 = vpop.f32.mrf.mxu3  ;;  %1428 = vmatpush.bf16.msrb.mxu3 %v3123_v23  ;;  %v3043_v23 = vor.u32 %v3749_v19, %v3040_v20  ;;  %v3802_v19 = vld [vmem:[#allocation8 + $0xac] sm:$0xf0]  ;;  %v3800_v20 = vld [vmem:[#allocation8 + $0xa4] sm:$0xf] }
 0x20f   :  { %v891_v29 = vadd.f32 %v872_v27, %v643_v25  ;;  %v892_v31 = vadd.f32 %v885_v28, %v644_v26  ;;  %v848_v32 = vpop.f32.mrf.mxu0  ;;  %v861_v33 = vpop.f32.mrf.mxu1  ;;  %v3766_v25 = vld [vmem:[#allocation8 + $0x8c] sm:$0xf0]  ;;  %v3764_v26 = vld [vmem:[#allocation8 + $0x84] sm:$0xf]  ;;  %v3096_v28 = vld [vmem:[#allocation8 + $0x90] sm:$0xf0] }
 0x210   :  { %v3095_v27 = vor.u32 %v3766_v25, %v3094_v24  ;;  %v3099_v32 = vor.u32 %v3764_v26, %v3096_v28  ;;  %v915_v28 = vld [vmem:[#allocation5 + $0x38] sm:$0xff] }
 0x211   :  { %3930 = vtanh.f32 %v891_v29  ;;  %v902_v34 = vmul.f32 0.5, %v892_v31  ;;  %v3102_v29 = vld [vmem:[#allocation8 + $0x88] sm:$0xf]  ;;  %v3767_v31 = vld [vmem:[#allocation8 + $0x94] sm:$0xf0] }
 0x212   :  { %v3927_v36 = vpop.eup %3926  ;;  %v3103_v33 = vor.u32 %v3767_v31, %v3102_v29  ;;  %1403 = vmatpush.bf16.msrb.mxu1 %v3099_v32  ;;  %v918_v32 = vunpack.c.l.bf16 %v915_v28 }
 0x213   :  { %v3929_v37 = vpop.eup %3928  ;;  %v895_v38 = vadd.f32 1.0, %v3927_v36  ;;  %3932 = vtanh.f32 %v902_v34  ;;  %v3765_v34 = vld [vmem:[#allocation8 + $0x8c] sm:$0xf]  ;;  %v3104_v36 = vld [vmem:[#allocation8 + $0x98] sm:$0xf0] }
 0x214   :  { %v899_v39 = vadd.f32 1.0, %v3929_v37  ;;  %v3107_v37 = vor.u32 %v3765_v34, %v3104_v36  ;;  %1416 = vmatpush.bf16.msrb.mxu2 %v3103_v33  ;;  %v919_v33 = vunpack.c.h.bf16 %v915_v28  ;;  %v3248_v28 = vld [vmem:[#allocation8 + $0xb8] sm:$0xf0] }
 0x215   :  { %v896_v40 = vmul.f32 0.5, %v895_v38  ;;  %v3078_v38 = vld [vmem:[#allocation8 + $0x60] sm:$0xf] }
 0x216   :  { %v900_v41 = vmul.f32 0.5, %v899_v39  ;;  %v874_v43 = vpop.f32.mrf.mxu2  ;;  %v887_v44 = vpop.f32.mrf.mxu3  ;;  %v3762_v39 = vld [vmem:[#allocation8 + $0x6c] sm:$0xf0]  ;;  %1429 = vmatpush.bf16.msrb.mxu3 %v3107_v37 }
 0x217   :  { %v3931_v45 = vpop.eup %3930  ;;  %v3080_v43 = vld [vmem:[#allocation8 + $0x70] sm:$0xf0]  ;;  %v3086_v44 = vld [vmem:[#allocation8 + $0x68] sm:$0xf] }
 0x218   :  { %v906_v46 = vmul.f32 %v900_v41, %v4156_v42  ;;  %v907_v47 = vmul.f32 %v3931_v45, %v896_v40  ;;  %v3143_v42 = vor.u32 %v3778_v54, %v3142_v53  ;;  %v3760_v40 = vld [vmem:[#allocation8 + $0x64] sm:$0xf]  ;;  %v3079_v41 = vor.u32 %v3762_v39, %v3078_v38  ;;  %v3763_v45 = vld [vmem:[#allocation8 + $0x74] sm:$0xf0]  ;;  %v3064_v54 = vld [vmem:[#allocation8 + $0x50] sm:$0xf0] }
 0x219   :  { %v3933_v48 = vpop.eup %3932 }
 0x21a   :  { %v4160_v49 = vadd.f32 %v907_v47, %v906_v46  ;;  %v904_v50 = vadd.f32 1.0, %v3933_v48  ;;  %1387 = vmatpush.bf16.msrb.mxu0 %v3143_v42  ;;  %v3083_v46 = vor.u32 %v3760_v40, %v3080_v43  ;;  %v3087_v47 = vor.u32 %v3763_v45, %v3086_v44  ;;  %v3761_v48 = vld [vmem:[#allocation8 + $0x6c] sm:$0xf]  ;;  %v3759_v42 = vld [vmem:[#allocation8 + $0x54] sm:$0xf0] }
 0x21b   :  { %v3071_v57 = vor.u32 %v3759_v42, %v3070_v55 }
 0x21c   :  { %3934 = vtanh.f32 %v4160_v49  ;;  %v905_v35 = vmul.f32 0.5, %v904_v50  ;;  %v3088_v50 = vld [vmem:[#allocation8 + $0x78] sm:$0xf0]  ;;  %1404 = vmatpush.bf16.msrb.mxu1 %v3083_v46  ;;  %1417 = vmatpush.bf16.msrb.mxu2 %v3087_v47 }
 0x21e   :  { %1388 = vmatpush.bf16.msrb.mxu0 %v3127_v3  ;;  %v3755_v3 = vld [vmem:[#allocation8 + $0x34] sm:$0xf0] }
 0x21f   :  { %v3055_v6 = vor.u32 %v3755_v3, %v3054_v2  ;;  %v3809_v3 = vld [vmem:[#allocation8 + $0xec] sm:$0xf] }
 0x220   :  { %1418 = vmatpush.bf16.msrb.mxu2 %v3071_v57 }
 0x222   :  { %v3935_v30 = vpop.eup %3934  ;;  %1389 = vmatpush.bf16.msrb.mxu0 %v3111_v15  ;;  %v3038_v15 = vld [vmem:[#allocation8 + $0x8] sm:$0xf] }
 0x223   :  { %v910_v51 = vmul.f32 %v3935_v30, %v905_v35  ;;  %v3091_v35 = vor.u32 %v3761_v48, %v3088_v50  ;;  %v3062_v30 = vld [vmem:[#allocation8 + $0x40] sm:$0xf]  ;;  %v3039_v18 = vor.u32 %v3751_v16, %v3038_v15  ;;  %v3805_v15 = vld [vmem:[#allocation8 + $0xcc] sm:$0xf]  ;;  %v3264_v16 = vld [vmem:[#allocation8 + $0xd8] sm:$0xf0] }
 0x224   :  { %1419 = vmatpush.bf16.msrb.mxu2 %v3055_v6 }
 0x225   :  { %v911_v52 = vpack.c.bf16 %v910_v51, %v910_v51  ;;  %v3758_v51 = vld [vmem:[#allocation8 + $0x4c] sm:$0xf0]  ;;  %1430 = vmatpush.bf16.msrb.mxu3 %v3091_v35 }
 0x226   :  { %1390 = vmatpush.bf16.msrb.mxu0 %v3095_v27  ;;  %v3063_v53 = vor.u32 %v3758_v51, %v3062_v30 }
 0x227   :  { %912 = vst [vmem:[#allocation4 + $0xc] sm:$0xf] %v911_v52  ;;  %1120 = vmatmul.bf16.vlgmr.msra.gmra.mxu0 %v911_v52  ;;  %1133 = vmatmul.bf16.vlgmr.msra.gmra.mxu1 %v911_v52 }
 0x228   :  { %1146 = vmatmul.bf16.vlgmr.msra.gmra.mxu2 %v911_v52  ;;  %1159 = vmatmul.bf16.vlgmr.msra.gmra.mxu3 %v911_v52  ;;  %v3756_v52 = vld [vmem:[#allocation8 + $0x44] sm:$0xf] }
 0x229   :  { %v3067_v56 = vor.u32 %v3756_v52, %v3064_v54  ;;  %1431 = vmatpush.bf16.msrb.mxu3 %v3075_v60  ;;  %1420 = vmatpush.bf16.msrb.mxu2 %v3039_v18  ;;  %v3810_v60 = vld [vmem:[#allocation8 + $0xec] sm:$0xf0]  ;;  %v3238_v18 = vld [vmem:[#allocation8 + $0xa0] sm:$0xf] }
 0x22a   :  { %1391 = vmatpush.bf16.msrb.mxu0 %v3079_v41 }
 0x22b   :  { %1405 = vmatpush.bf16.msrb.mxu1 %v3067_v56 }
 0x22d   :  { %1432 = vmatpush.bf16.msrb.mxu3 %v3059_v10  ;;  %v3255_v10 = vor.u32 %v3806_v8, %v3254_v7  ;;  %v3176_v8 = vld [vmem:[#allocation8 + $0x30] sm:$0xf0] }
 0x22e   :  { %1392 = vmatpush.bf16.msrb.mxu0 %v3063_v53 }
 0x22f   :  { %1406 = vmatpush.bf16.msrb.mxu1 %v3051_v4  ;;  %v3280_v4 = vld [vmem:[#allocation8 + $0xf8] sm:$0xf0] }
 0x230   :  { %v3283_v6 = vor.u32 %v3809_v3, %v3280_v4  ;;  %v3174_v3 = vld [vmem:[#allocation8 + $0x20] sm:$0xf]  ;;  %v3786_v4 = vld [vmem:[#allocation8 + $0x2c] sm:$0xf0] }
 0x231   :  { %1433 = vmatpush.bf16.msrb.mxu3 %v3043_v23  ;;  %v3246_v23 = vld [vmem:[#allocation8 + $0xa8] sm:$0xf]  ;;  %v3175_v7 = vor.u32 %v3786_v4, %v3174_v3  ;;  %v3840_v3 = vld [vmem:[#allocation8 + $0xe4] sm:$0xf]  ;;  %v3400_v4 = vld [vmem:[#allocation8 + $0xf0] sm:$0xf0] }
 0x232   :  { %1393 = vmatpush.bf16.msrb.mxu0 %v3047_v0  ;;  %v3811_v0 = vld [vmem:[#allocation8 + $0xf4] sm:$0xf0] }
 0x233   :  { %1407 = vmatpush.bf16.msrb.mxu1 %v3035_v17  ;;  %v3279_v2 = vor.u32 %v3811_v0, %v3278_v63  ;;  %v3267_v17 = vor.u32 %v3805_v15, %v3264_v16  ;;  %v3789_v0 = vld [vmem:[#allocation8 + $0x4c] sm:$0xf]  ;;  %v3158_v16 = vld [vmem:[#allocation8] sm:$0xf] }
 0x235   :  { %1688 = vmatpush.bf16.msra.mxu2 %v3279_v2  ;;  %1701 = vmatpush.bf16.msra.mxu3 %v3283_v6  ;;  %v3784_v6 = vld [vmem:[#allocation8 + $0x24] sm:$0xf] }
 0x236   :  { %1394 = vmatpush.bf16.msrb.mxu0 %v3031_v13  ;;  %v3259_v13 = vor.u32 %v3804_v9, %v3256_v5  ;;  %v3182_v9 = vld [vmem:[#allocation8 + $0x28] sm:$0xf]  ;;  %v3179_v5 = vor.u32 %v3784_v6, %v3176_v8  ;;  %v3403_v8 = vor.u32 %v3840_v3, %v3400_v4 }
 0x237   :  { %1675 = vmatpush.bf16.msra.mxu1 %v3275_v1  ;;  %v3200_v1 = vld [vmem:[#allocation8 + $0x58] sm:$0xf0]  ;;  %v3406_v6 = vld [vmem:[#allocation8 + $0xe8] sm:$0xf] }
 0x238   :  { %v3203_v2 = vor.u32 %v3789_v0, %v3200_v1  ;;  %v3398_v1 = vld [vmem:[#allocation8 + $0xe0] sm:$0xf]  ;;  %v3326_v3 = vld [vmem:[#allocation8 + $0x48] sm:$0xf] }
 0x239   :  { %1689 = vmatpush.bf16.msra.mxu2 %v3263_v14  ;;  %1702 = vmatpush.bf16.msra.mxu3 %v3267_v17  ;;  %v1189_v14 = vld [vmem:[#allocation5 + $0x40] sm:$0xff]  ;;  %v3782_v17 = vld [vmem:[#allocation8 + $0xc] sm:$0xf0] }
 0x23b   :  { %1676 = vmatpush.bf16.msra.mxu1 %v3259_v13  ;;  %v3184_v13 = vld [vmem:[#allocation8 + $0x38] sm:$0xf0] }
 0x23c   :  { %v3187_v15 = vor.u32 %v3785_v12, %v3184_v13  ;;  %v3382_v12 = vld [vmem:[#allocation8 + $0xc0] sm:$0xf]  ;;  %v3838_v13 = vld [vmem:[#allocation8 + $0xcc] sm:$0xf0] }
 0x2a4   :  { %v1121_v24 = vpop.f32.mrf.mxu0  ;;  %v1134_v25 = vpop.f32.mrf.mxu1 }
 0x2a5   :  { %v1164_v26 = vadd.f32 %v1121_v24, %v916_v21  ;;  %v1165_v27 = vadd.f32 %v1134_v25, %v917_v22  ;;  %v3239_v21 = vor.u32 %v3802_v19, %v3238_v18  ;;  %v3240_v22 = vld [vmem:[#allocation8 + $0xb0] sm:$0xf0]  ;;  %v3803_v24 = vld [vmem:[#allocation8 + $0xb4] sm:$0xf0]  ;;  %v3780_v18 = vld [vmem:[#allocation8 + $0x4] sm:$0xf]  ;;  %v3159_v19 = vor.u32 %v3782_v17, %v3158_v16 }
 0x2a6   :  { %v3243_v25 = vor.u32 %v3800_v20, %v3240_v22  ;;  %v3160_v20 = vld [vmem:[#allocation8 + $0x10] sm:$0xf0]  ;;  %v3783_v22 = vld [vmem:[#allocation8 + $0x14] sm:$0xf0]  ;;  %v3390_v17 = vld [vmem:[#allocation8 + $0xc8] sm:$0xf] }
 0x2a7   :  { %v1168_v29 = vmul.f32 0.5, %v1164_v26  ;;  %v1172_v31 = vmul.f32 0.5, %v1165_v27  ;;  %v3247_v26 = vor.u32 %v3803_v24, %v3246_v23  ;;  %v3801_v27 = vld [vmem:[#allocation8 + $0xac] sm:$0xf]  ;;  %v3163_v23 = vor.u32 %v3780_v18, %v3160_v20  ;;  %v3384_v16 = vld [vmem:[#allocation8 + $0xd0] sm:$0xf0] }
 0x2a8   :  { %1677 = vmatpush.bf16.msra.mxu1 %v3243_v25  ;;  %v3781_v25 = vld [vmem:[#allocation8 + $0xc] sm:$0xf]  ;;  %v3839_v18 = vld [vmem:[#allocation8 + $0xd4] sm:$0xf0] }
 0x2a9   :  { %3936 = vtanh.f32 %v1168_v29  ;;  %v3251_v29 = vor.u32 %v3801_v27, %v3248_v28  ;;  %1690 = vmatpush.bf16.msra.mxu2 %v3247_v26  ;;  %v3168_v26 = vld [vmem:[#allocation8 + $0x18] sm:$0xf0]  ;;  %v1191_v27 = vunpack.c.l.bf16 %v1189_v14  ;;  %v1192_v28 = vunpack.c.h.bf16 %v1189_v14  ;;  %v3836_v14 = vld [vmem:[#allocation8 + $0xc4] sm:$0xf] }
 0x2aa   :  { %3938 = vtanh.f32 %v1172_v31  ;;  %v3222_v31 = vld [vmem:[#allocation8 + $0x80] sm:$0xf]  ;;  %v3391_v20 = vor.u32 %v3839_v18, %v3390_v17  ;;  %v3817_v18 = vld [vmem:[#allocation8 + $0x2c] sm:$0xf] }
 0x2ab   :  { %v1147_v34 = vpop.f32.mrf.mxu2  ;;  %v1160_v36 = vpop.f32.mrf.mxu3  ;;  %1703 = vmatpush.bf16.msra.mxu3 %v3251_v29  ;;  %v3171_v29 = vor.u32 %v3781_v25, %v3168_v26  ;;  %v3834_v25 = vld [vmem:[#allocation8 + $0xac] sm:$0xf0]  ;;  %v3832_v26 = vld [vmem:[#allocation8 + $0xa4] sm:$0xf] }
 0x2ac   :  { %v1166_v37 = vadd.f32 %v1147_v34, %v918_v32  ;;  %v1167_v38 = vadd.f32 %v1160_v36, %v919_v33  ;;  %v1123_v39 = vpop.f32.mrf.mxu0  ;;  %v1136_v40 = vpop.f32.mrf.mxu1  ;;  %v3798_v32 = vld [vmem:[#allocation8 + $0x8c] sm:$0xf0]  ;;  %v3796_v33 = vld [vmem:[#allocation8 + $0x84] sm:$0xf]  ;;  %v3224_v36 = vld [vmem:[#allocation8 + $0x90] sm:$0xf0] }
 0x2ad   :  { %v3223_v34 = vor.u32 %v3798_v32, %v3222_v31  ;;  %v3227_v39 = vor.u32 %v3796_v33, %v3224_v36  ;;  %v1190_v36 = vld [vmem:[#allocation5 + $0x48] sm:$0xff] }
 0x2ae   :  { %3940 = vtanh.f32 %v1166_v37  ;;  %v1177_v41 = vmul.f32 0.5, %v1167_v38  ;;  %v3230_v37 = vld [vmem:[#allocation8 + $0x88] sm:$0xf]  ;;  %v3799_v38 = vld [vmem:[#allocation8 + $0x94] sm:$0xf0] }
 0x2af   :  { %v3937_v43 = vpop.eup %3936  ;;  %v3231_v40 = vor.u32 %v3799_v38, %v3230_v37  ;;  %1678 = vmatpush.bf16.msra.mxu1 %v3227_v39  ;;  %v1193_v39 = vunpack.c.l.bf16 %v1190_v36 }
 0x2b0   :  { %v3939_v44 = vpop.eup %3938  ;;  %v1170_v45 = vadd.f32 1.0, %v3937_v43  ;;  %3942 = vtanh.f32 %v1177_v41  ;;  %v3797_v41 = vld [vmem:[#allocation8 + $0x8c] sm:$0xf]  ;;  %v3232_v43 = vld [vmem:[#allocation8 + $0x98] sm:$0xf0] }
 0x2b1   :  { %v1174_v46 = vadd.f32 1.0, %v3939_v44  ;;  %v3235_v44 = vor.u32 %v3797_v41, %v3232_v43  ;;  %1691 = vmatpush.bf16.msra.mxu2 %v3231_v40  ;;  %v1194_v40 = vunpack.c.h.bf16 %v1190_v36  ;;  %v3376_v36 = vld [vmem:[#allocation8 + $0xb8] sm:$0xf0] }
 0x2b2   :  { %v1171_v47 = vmul.f32 0.5, %v1170_v45  ;;  %v3206_v45 = vld [vmem:[#allocation8 + $0x60] sm:$0xf] }
 0x2b3   :  { %v1175_v48 = vmul.f32 0.5, %v1174_v46  ;;  %v1149_v50 = vpop.f32.mrf.mxu2  ;;  %v1162_v35 = vpop.f32.mrf.mxu3  ;;  %v3794_v46 = vld [vmem:[#allocation8 + $0x6c] sm:$0xf0]  ;;  %1704 = vmatpush.bf16.msra.mxu3 %v3235_v44 }
 0x2b4   :  { %v3941_v30 = vpop.eup %3940  ;;  %v3208_v50 = vld [vmem:[#allocation8 + $0x70] sm:$0xf0]  ;;  %v3214_v35 = vld [vmem:[#allocation8 + $0x68] sm:$0xf] }
 0x2b5   :  { %v1181_v51 = vmul.f32 %v1175_v48, %v4160_v49  ;;  %v1182_v52 = vmul.f32 %v3941_v30, %v1171_v47  ;;  %v3271_v49 = vor.u32 %v3810_v60, %v3270_v59  ;;  %v3792_v47 = vld [vmem:[#allocation8 + $0x64] sm:$0xf]  ;;  %v3207_v48 = vor.u32 %v3794_v46, %v3206_v45  ;;  %v3795_v30 = vld [vmem:[#allocation8 + $0x74] sm:$0xf0]  ;;  %v3192_v60 = vld [vmem:[#allocation8 + $0x50] sm:$0xf0] }
 0x2b6   :  { %v3943_v53 = vpop.eup %3942 }
 0x2b7   :  { %v4164_v54 = vadd.f32 %v1182_v52, %v1181_v51  ;;  %v1179_v55 = vadd.f32 1.0, %v3943_v53  ;;  %1662 = vmatpush.bf16.msra.mxu0 %v3271_v49  ;;  %v3211_v51 = vor.u32 %v3792_v47, %v3208_v50  ;;  %v3215_v52 = vor.u32 %v3795_v30, %v3214_v35  ;;  %v3793_v53 = vld [vmem:[#allocation8 + $0x6c] sm:$0xf]  ;;  %v3791_v49 = vld [vmem:[#allocation8 + $0x54] sm:$0xf0] }
 0x2b8   :  { %v3199_v63 = vor.u32 %v3791_v49, %v3198_v61 }
 0x2b9   :  { %3944 = vtanh.f32 %v4164_v54  ;;  %v1180_v42 = vmul.f32 0.5, %v1179_v55  ;;  %v3216_v55 = vld [vmem:[#allocation8 + $0x78] sm:$0xf0]  ;;  %1679 = vmatpush.bf16.msra.mxu1 %v3211_v51  ;;  %1692 = vmatpush.bf16.msra.mxu2 %v3215_v52 }
 0x2bb   :  { %1663 = vmatpush.bf16.msra.mxu0 %v3255_v10  ;;  %v3787_v10 = vld [vmem:[#allocation8 + $0x34] sm:$0xf0] }
 0x2bc   :  { %v3183_v11 = vor.u32 %v3787_v10, %v3182_v9  ;;  %v3841_v10 = vld [vmem:[#allocation8 + $0xec] sm:$0xf] }
 0x2bd   :  { %1693 = vmatpush.bf16.msra.mxu2 %v3199_v63 }
 0x2bf   :  { %v3945_v56 = vpop.eup %3944  ;;  %1664 = vmatpush.bf16.msra.mxu0 %v3239_v21  ;;  %v3166_v21 = vld [vmem:[#allocation8 + $0x8] sm:$0xf] }
 0x2c0   :  { %v1185_v57 = vmul.f32 %v3945_v56, %v1180_v42  ;;  %v3219_v42 = vor.u32 %v3793_v53, %v3216_v55  ;;  %v3190_v56 = vld [vmem:[#allocation8 + $0x40] sm:$0xf]  ;;  %v3167_v24 = vor.u32 %v3783_v22, %v3166_v21  ;;  %v3837_v21 = vld [vmem:[#allocation8 + $0xcc] sm:$0xf]  ;;  %v3392_v22 = vld [vmem:[#allocation8 + $0xd8] sm:$0xf0] }
 0x2c1   :  { %1694 = vmatpush.bf16.msra.mxu2 %v3183_v11 }
 0x2c2   :  { %v1186_v58 = vpack.c.bf16 %v1185_v57, %v1185_v57  ;;  %v3790_v57 = vld [vmem:[#allocation8 + $0x4c] sm:$0xf0]  ;;  %1705 = vmatpush.bf16.msra.mxu3 %v3219_v42 }
 0x2c3   :  { %1665 = vmatpush.bf16.msra.mxu0 %v3223_v34  ;;  %v3191_v59 = vor.u32 %v3790_v57, %v3190_v56 }
 0x2c4   :  { %1187 = vst [vmem:[#allocation4 + $0x10] sm:$0xf] %v1186_v58  ;;  %1395 = vmatmul.bf16.vlgmr.msrb.gmra.mxu0 %v1186_v58  ;;  %1408 = vmatmul.bf16.vlgmr.msrb.gmra.mxu1 %v1186_v58 }
 0x2c5   :  { %1421 = vmatmul.bf16.vlgmr.msrb.gmra.mxu2 %v1186_v58  ;;  %1434 = vmatmul.bf16.vlgmr.msrb.gmra.mxu3 %v1186_v58  ;;  %v3788_v58 = vld [vmem:[#allocation8 + $0x44] sm:$0xf] }
 0x2c6   :  { %v3195_v62 = vor.u32 %v3788_v58, %v3192_v60  ;;  %1706 = vmatpush.bf16.msra.mxu3 %v3203_v2  ;;  %1695 = vmatpush.bf16.msra.mxu2 %v3167_v24  ;;  %v3842_v2 = vld [vmem:[#allocation8 + $0xec] sm:$0xf0]  ;;  %v3366_v24 = vld [vmem:[#allocation8 + $0xa0] sm:$0xf] }
 0x2c7   :  { %1666 = vmatpush.bf16.msra.mxu0 %v3207_v48 }
 0x2c8   :  { %1680 = vmatpush.bf16.msra.mxu1 %v3195_v62 }
 0x2ca   :  { %1707 = vmatpush.bf16.msra.mxu3 %v3187_v15  ;;  %v3383_v15 = vor.u32 %v3838_v13, %v3382_v12  ;;  %v3304_v13 = vld [vmem:[#allocation8 + $0x30] sm:$0xf0] }
 0x2cb   :  { %1667 = vmatpush.bf16.msra.mxu0 %v3191_v59 }
 0x2cc   :  { %1681 = vmatpush.bf16.msra.mxu1 %v3179_v5  ;;  %v3408_v5 = vld [vmem:[#allocation8 + $0xf8] sm:$0xf0] }
 0x2cd   :  { %v3411_v11 = vor.u32 %v3841_v10, %v3408_v5  ;;  %v3302_v10 = vld [vmem:[#allocation8 + $0x20] sm:$0xf]  ;;  %v3818_v5 = vld [vmem:[#allocation8 + $0x2c] sm:$0xf0] }
 0x2ce   :  { %1708 = vmatpush.bf16.msra.mxu3 %v3171_v29  ;;  %v3374_v29 = vld [vmem:[#allocation8 + $0xa8] sm:$0xf]  ;;  %v3303_v12 = vor.u32 %v3818_v5, %v3302_v10  ;;  %v3860_v10 = vld [vmem:[#allocation8 + $0x84] sm:$0xf]  ;;  %v3480_v5 = vld [vmem:[#allocation8 + $0x90] sm:$0xf0] }
 0x2cf   :  { %1668 = vmatpush.bf16.msra.mxu0 %v3175_v7  ;;  %v3843_v7 = vld [vmem:[#allocation8 + $0xf4] sm:$0xf0] }
 0x2d0   :  { %1682 = vmatpush.bf16.msra.mxu1 %v3163_v23  ;;  %v3407_v9 = vor.u32 %v3843_v7, %v3406_v6  ;;  %v3395_v23 = vor.u32 %v3837_v21, %v3392_v22  ;;  %v3821_v7 = vld [vmem:[#allocation8 + $0x4c] sm:$0xf]  ;;  %v3286_v22 = vld [vmem:[#allocation8] sm:$0xf] }
 0x2d2   :  { %1963 = vmatpush.bf16.msrb.mxu2 %v3407_v9  ;;  %1976 = vmatpush.bf16.msrb.mxu3 %v3411_v11  ;;  %v3816_v11 = vld [vmem:[#allocation8 + $0x24] sm:$0xf] }
 0x2d3   :  { %1669 = vmatpush.bf16.msra.mxu0 %v3159_v19  ;;  %v3387_v19 = vor.u32 %v3836_v14, %v3384_v16  ;;  %v3310_v14 = vld [vmem:[#allocation8 + $0x28] sm:$0xf]  ;;  %v3307_v16 = vor.u32 %v3816_v11, %v3304_v13 }
 0x2d4   :  { %1950 = vmatpush.bf16.msrb.mxu1 %v3403_v8  ;;  %v3328_v8 = vld [vmem:[#allocation8 + $0x58] sm:$0xf0] }
 0x2d5   :  { %v3331_v9 = vor.u32 %v3821_v7, %v3328_v8  ;;  %v3478_v7 = vld [vmem:[#allocation8 + $0x80] sm:$0xf]  ;;  %v3862_v8 = vld [vmem:[#allocation8 + $0x8c] sm:$0xf0] }
 0x2d6   :  { %1964 = vmatpush.bf16.msrb.mxu2 %v3391_v20  ;;  %1977 = vmatpush.bf16.msrb.mxu3 %v3395_v23  ;;  %v1464_v20 = vld [vmem:[#allocation5 + $0x50] sm:$0xff] }
 0x2d7   :  { %v3814_v23 = vld [vmem:[#allocation8 + $0xc] sm:$0xf0] }
 0x2d8   :  { %1951 = vmatpush.bf16.msrb.mxu1 %v3387_v19  ;;  %v3312_v19 = vld [vmem:[#allocation8 + $0x38] sm:$0xf0] }
 0x2d9   :  { %v3315_v21 = vor.u32 %v3817_v18, %v3312_v19 }
 0x341   :  { %v1396_v31 = vpop.f32.mrf.mxu0  ;;  %v1409_v32 = vpop.f32.mrf.mxu1 }
 0x342   :  { %v1439_v33 = vadd.f32 %v1396_v31, %v1191_v27  ;;  %v1440_v34 = vadd.f32 %v1409_v32, %v1192_v28  ;;  %v3367_v27 = vor.u32 %v3834_v25, %v3366_v24  ;;  %v3368_v28 = vld [vmem:[#allocation8 + $0xb0] sm:$0xf0]  ;;  %v3835_v31 = vld [vmem:[#allocation8 + $0xb4] sm:$0xf0]  ;;  %v3812_v24 = vld [vmem:[#allocation8 + $0x4] sm:$0xf]  ;;  %v3287_v25 = vor.u32 %v3814_v23, %v3286_v22 }
 0x343   :  { %v3371_v32 = vor.u32 %v3832_v26, %v3368_v28  ;;  %v3288_v26 = vld [vmem:[#allocation8 + $0x10] sm:$0xf0]  ;;  %v3815_v28 = vld [vmem:[#allocation8 + $0x14] sm:$0xf0] }
 0x344   :  { %v1443_v37 = vmul.f32 0.5, %v1439_v33  ;;  %v1447_v38 = vmul.f32 0.5, %v1440_v34  ;;  %v3375_v33 = vor.u32 %v3835_v31, %v3374_v29  ;;  %v3833_v34 = vld [vmem:[#allocation8 + $0xac] sm:$0xf]  ;;  %v3291_v29 = vor.u32 %v3812_v24, %v3288_v26 }
 0x345   :  { %1952 = vmatpush.bf16.msrb.mxu1 %v3371_v32  ;;  %v3813_v32 = vld [vmem:[#allocation8 + $0xc] sm:$0xf] }
 0x346   :  { %3946 = vtanh.f32 %v1443_v37  ;;  %v3379_v37 = vor.u32 %v3833_v34, %v3376_v36  ;;  %1965 = vmatpush.bf16.msrb.mxu2 %v3375_v33  ;;  %v3296_v33 = vld [vmem:[#allocation8 + $0x18] sm:$0xf0]  ;;  %v1466_v34 = vunpack.c.l.bf16 %v1464_v20  ;;  %v1467_v36 = vunpack.c.h.bf16 %v1464_v20 }
 0x347   :  { %3948 = vtanh.f32 %v1447_v38  ;;  %v3350_v38 = vld [vmem:[#allocation8 + $0x80] sm:$0xf] }
 0x348   :  { %v1422_v41 = vpop.f32.mrf.mxu2  ;;  %v1435_v43 = vpop.f32.mrf.mxu3  ;;  %1978 = vmatpush.bf16.msrb.mxu3 %v3379_v37  ;;  %v3299_v37 = vor.u32 %v3813_v32, %v3296_v33  ;;  %v3534_v32 = vld [vmem:[#allocation8 + $0xe8] sm:$0xf]  ;;  %v3875_v33 = vld [vmem:[#allocation8 + $0xf4] sm:$0xf0] }
 0x349   :  { %v1441_v44 = vadd.f32 %v1422_v41, %v1193_v39  ;;  %v1442_v45 = vadd.f32 %v1435_v43, %v1194_v40  ;;  %v1398_v46 = vpop.f32.mrf.mxu0  ;;  %v1411_v47 = vpop.f32.mrf.mxu1  ;;  %v3830_v39 = vld [vmem:[#allocation8 + $0x8c] sm:$0xf0]  ;;  %v3828_v40 = vld [vmem:[#allocation8 + $0x84] sm:$0xf]  ;;  %v3352_v43 = vld [vmem:[#allocation8 + $0x90] sm:$0xf0] }
 0x34a   :  { %v3351_v41 = vor.u32 %v3830_v39, %v3350_v38  ;;  %v3355_v46 = vor.u32 %v3828_v40, %v3352_v43  ;;  %v1465_v40 = vld [vmem:[#allocation5 + $0x58] sm:$0xff] }
 0x34b   :  { %3950 = vtanh.f32 %v1441_v44  ;;  %v1452_v48 = vmul.f32 0.5, %v1442_v45  ;;  %v3358_v44 = vld [vmem:[#allocation8 + $0x88] sm:$0xf]  ;;  %v3831_v45 = vld [vmem:[#allocation8 + $0x94] sm:$0xf0] }
 0x34c   :  { %v3947_v50 = vpop.eup %3946  ;;  %v3359_v47 = vor.u32 %v3831_v45, %v3358_v44  ;;  %1953 = vmatpush.bf16.msrb.mxu1 %v3355_v46  ;;  %v3526_v44 = vld [vmem:[#allocation8 + $0xe0] sm:$0xf]  ;;  %v3874_v45 = vld [vmem:[#allocation8 + $0xec] sm:$0xf0]  ;;  %v3872_v46 = vld [vmem:[#allocation8 + $0xe4] sm:$0xf] }
 0x34d   :  { %v3949_v35 = vpop.eup %3948  ;;  %v1445_v30 = vadd.f32 1.0, %v3947_v50  ;;  %3952 = vtanh.f32 %v1452_v48  ;;  %v3829_v48 = vld [vmem:[#allocation8 + $0x8c] sm:$0xf]  ;;  %v3360_v50 = vld [vmem:[#allocation8 + $0x98] sm:$0xf0] }
 0x34e   :  { %v1449_v51 = vadd.f32 1.0, %v3949_v35  ;;  %v3363_v35 = vor.u32 %v3829_v48, %v3360_v50  ;;  %1966 = vmatpush.bf16.msrb.mxu2 %v3359_v47  ;;  %v3527_v47 = vor.u32 %v3874_v45, %v3526_v44  ;;  %v3528_v48 = vld [vmem:[#allocation8 + $0xf0] sm:$0xf0]  ;;  %v3510_v50 = vld [vmem:[#allocation8 + $0xc0] sm:$0xf] }
 0x34f   :  { %v1446_v52 = vmul.f32 0.5, %v1445_v30  ;;  %v3334_v30 = vld [vmem:[#allocation8 + $0x60] sm:$0xf]  ;;  %v3518_v44 = vld [vmem:[#allocation8 + $0xc8] sm:$0xf] }
 0x350   :  { %v1450_v53 = vmul.f32 0.5, %v1449_v51  ;;  %v1424_v55 = vpop.f32.mrf.mxu2  ;;  %v1437_v42 = vpop.f32.mrf.mxu3  ;;  %v3826_v51 = vld [vmem:[#allocation8 + $0x6c] sm:$0xf0]  ;;  %1979 = vmatpush.bf16.msrb.mxu3 %v3363_v35  ;;  %v3871_v45 = vld [vmem:[#allocation8 + $0xd4] sm:$0xf0] }
 0x351   :  { %v3951_v56 = vpop.eup %3950  ;;  %v3336_v55 = vld [vmem:[#allocation8 + $0x70] sm:$0xf0]  ;;  %v3342_v42 = vld [vmem:[#allocation8 + $0x68] sm:$0xf]  ;;  %v3870_v35 = vld [vmem:[#allocation8 + $0xcc] sm:$0xf0] }
 0x352   :  { %v1456_v57 = vmul.f32 %v1450_v53, %v4164_v54  ;;  %v1457_v58 = vmul.f32 %v3951_v56, %v1446_v52  ;;  %v3399_v54 = vor.u32 %v3842_v2, %v3398_v1  ;;  %v3824_v52 = vld [vmem:[#allocation8 + $0x64] sm:$0xf]  ;;  %v3335_v53 = vor.u32 %v3826_v51, %v3334_v30  ;;  %v3827_v56 = vld [vmem:[#allocation8 + $0x74] sm:$0xf0]  ;;  %v3320_v2 = vld [vmem:[#allocation8 + $0x50] sm:$0xf0] }
 0x353   :  { %v3953_v59 = vpop.eup %3952 }
 0x354   :  { %v4168_v60 = vadd.f32 %v1457_v58, %v1456_v57  ;;  %v1454_v61 = vadd.f32 1.0, %v3953_v59  ;;  %1937 = vmatpush.bf16.msrb.mxu0 %v3399_v54  ;;  %v3339_v57 = vor.u32 %v3824_v52, %v3336_v55  ;;  %v3343_v58 = vor.u32 %v3827_v56, %v3342_v42  ;;  %v3825_v59 = vld [vmem:[#allocation8 + $0x6c] sm:$0xf]  ;;  %v3823_v54 = vld [vmem:[#allocation8 + $0x54] sm:$0xf0] }
 0x355   :  { %v3327_v6 = vor.u32 %v3823_v54, %v3326_v3  ;;  %v3531_v52 = vor.u32 %v3872_v46, %v3528_v48  ;;  %v3512_v55 = vld [vmem:[#allocation8 + $0xd0] sm:$0xf0]  ;;  %v1468_v42 = vunpack.c.l.bf16 %v1465_v40  ;;  %v1469_v56 = vunpack.c.h.bf16 %v1465_v40  ;;  %v3856_v40 = vld [vmem:[#allocation8 + $0x64] sm:$0xf]  ;;  %v3869_v48 = vld [vmem:[#allocation8 + $0xcc] sm:$0xf] }
 0x356   :  { %3954 = vtanh.f32 %v4168_v60  ;;  %v1455_v49 = vmul.f32 0.5, %v1454_v61  ;;  %v3344_v61 = vld [vmem:[#allocation8 + $0x78] sm:$0xf0]  ;;  %1954 = vmatpush.bf16.msrb.mxu1 %v3339_v57  ;;  %1967 = vmatpush.bf16.msrb.mxu2 %v3343_v58  ;;  %v3511_v57 = vor.u32 %v3870_v35, %v3510_v50 }
 0x357   :  { %v3520_v50 = vld [vmem:[#allocation8 + $0xd8] sm:$0xf0] }
 0x358   :  { %1938 = vmatpush.bf16.msrb.mxu0 %v3383_v15  ;;  %v3819_v15 = vld [vmem:[#allocation8 + $0x34] sm:$0xf0]  ;;  %v3523_v35 = vor.u32 %v3869_v48, %v3520_v50 }
 0x359   :  { %v3311_v17 = vor.u32 %v3819_v15, %v3310_v14  ;;  %v3479_v14 = vor.u32 %v3862_v8, %v3478_v7  ;;  %v3861_v7 = vld [vmem:[#allocation8 + $0x8c] sm:$0xf]  ;;  %v3488_v8 = vld [vmem:[#allocation8 + $0x98] sm:$0xf0]  ;;  %v3891_v48 = vld [vmem:[#allocation10 + $0x54] sm:$0xf0] }
 0x35a   :  { %1968 = vmatpush.bf16.msrb.mxu2 %v3327_v6 }
 0x35c   :  { %v3955_v62 = vpop.eup %3954  ;;  %1939 = vmatpush.bf16.msrb.mxu0 %v3367_v27  ;;  %v3294_v27 = vld [vmem:[#allocation8 + $0x8] sm:$0xf] }
 0x35d   :  { %v1460_v63 = vmul.f32 %v3955_v62, %v1455_v49  ;;  %v3347_v49 = vor.u32 %v3825_v59, %v3344_v61  ;;  %v3318_v62 = vld [vmem:[#allocation8 + $0x40] sm:$0xf]  ;;  %v3295_v31 = vor.u32 %v3815_v28, %v3294_v27  ;;  %v3866_v61 = vld [vmem:[#allocation8 + $0xac] sm:$0xf0] }
 0x35e   :  { %1969 = vmatpush.bf16.msrb.mxu2 %v3311_v17  ;;  %v3494_v59 = vld [vmem:[#allocation8 + $0xa0] sm:$0xf] }
 0x35f   :  { %v1461_v0 = vpack.c.bf16 %v1460_v63, %v1460_v63  ;;  %v3822_v63 = vld [vmem:[#allocation8 + $0x4c] sm:$0xf0]  ;;  %1980 = vmatpush.bf16.msrb.mxu3 %v3347_v49  ;;  %v3864_v49 = vld [vmem:[#allocation8 + $0xa4] sm:$0xf] }
 0x360   :  { %1940 = vmatpush.bf16.msrb.mxu0 %v3351_v41  ;;  %v3319_v1 = vor.u32 %v3822_v63, %v3318_v62  ;;  %v3496_v62 = vld [vmem:[#allocation8 + $0xb0] sm:$0xf0] }
 0x361   :  { %1462 = vst [vmem:[#allocation4 + $0x14] sm:$0xf] %v1461_v0  ;;  %1670 = vmatmul.bf16.vlgmr.msra.gmra.mxu0 %v1461_v0  ;;  %1683 = vmatmul.bf16.vlgmr.msra.gmra.mxu1 %v1461_v0  ;;  %v3499_v6 = vor.u32 %v3864_v49, %v3496_v62  ;;  %v3430_v62 = vld [vmem:[#allocation8 + $0x20] sm:$0xf] }
 0x362   :  { %1696 = vmatmul.bf16.vlgmr.msra.gmra.mxu2 %v1461_v0  ;;  %1709 = vmatmul.bf16.vlgmr.msra.gmra.mxu3 %v1461_v0  ;;  %v3820_v0 = vld [vmem:[#allocation8 + $0x44] sm:$0xf] }
 0x363   :  { %v3323_v4 = vor.u32 %v3820_v0, %v3320_v2  ;;  %1981 = vmatpush.bf16.msrb.mxu3 %v3331_v9  ;;  %1970 = vmatpush.bf16.msrb.mxu2 %v3295_v31 }
 0x364   :  { %1941 = vmatpush.bf16.msrb.mxu0 %v3335_v53  ;;  %v3868_v53 = vld [vmem:[#allocation8 + $0xc4] sm:$0xf] }
 0x365   :  { %1955 = vmatpush.bf16.msrb.mxu1 %v3323_v4  ;;  %v3515_v58 = vor.u32 %v3868_v53, %v3512_v55  ;;  %v3495_v4 = vor.u32 %v3866_v61, %v3494_v59  ;;  %v3852_v53 = vld [vmem:[#allocation8 + $0x44] sm:$0xf]  ;;  %v3448_v55 = vld [vmem:[#allocation8 + $0x50] sm:$0xf0]  ;;  %v3504_v59 = vld [vmem:[#allocation8 + $0xb8] sm:$0xf0] }
 0x367   :  { %1982 = vmatpush.bf16.msrb.mxu3 %v3315_v21 }
 0x368   :  { %1942 = vmatpush.bf16.msrb.mxu0 %v3319_v1 }
 0x369   :  { %1956 = vmatpush.bf16.msrb.mxu1 %v3307_v16  ;;  %v3483_v16 = vor.u32 %v3860_v10, %v3480_v5  ;;  %v3414_v10 = vld [vmem:[#allocation8] sm:$0xf]  ;;  %v3846_v5 = vld [vmem:[#allocation8 + $0xc] sm:$0xf0] }
 0x36b   :  { %1983 = vmatpush.bf16.msrb.mxu3 %v3299_v37 }
 0x36c   :  { %1943 = vmatpush.bf16.msrb.mxu0 %v3303_v12 }
 0x36d   :  { %1957 = vmatpush.bf16.msrb.mxu1 %v3291_v29 }
 0x370   :  { %1944 = vmatpush.bf16.msrb.mxu0 %v3287_v25 }
 0x371   :  { %2225 = vmatpush.bf16.msra.mxu1 %v3531_v52 }
 0x374   :  { %2212 = vmatpush.bf16.msra.mxu0 %v3527_v47  ;;  %v3519_v47 = vor.u32 %v3871_v45, %v3518_v44  ;;  %v3849_v44 = vld [vmem:[#allocation8 + $0x2c] sm:$0xf] }
 0x375   :  { %2226 = vmatpush.bf16.msra.mxu1 %v3515_v58  ;;  %v3865_v58 = vld [vmem:[#allocation8 + $0xac] sm:$0xf] }
 0x376   :  { %v3507_v49 = vor.u32 %v3865_v58, %v3504_v59  ;;  %v3424_v58 = vld [vmem:[#allocation8 + $0x18] sm:$0xf0]  ;;  %v3590_v59 = vld [vmem:[#allocation10 + $0x40] sm:$0xf] }
 0x378   :  { %2213 = vmatpush.bf16.msra.mxu0 %v3511_v57  ;;  %v3867_v57 = vld [vmem:[#allocation8 + $0xb4] sm:$0xf0] }
 0x379   :  { %2227 = vmatpush.bf16.msra.mxu1 %v3499_v6 }
 0x37c   :  { %2214 = vmatpush.bf16.msra.mxu0 %v3495_v4 }
 0x37d   :  { %2228 = vmatpush.bf16.msra.mxu1 %v3483_v16 }
 0x380   :  { %2215 = vmatpush.bf16.msra.mxu0 %v3479_v14  ;;  %v3470_v14 = vld [vmem:[#allocation8 + $0x68] sm:$0xf] }
 0x3de   :  { %v1671_v38 = vpop.f32.mrf.mxu0  ;;  %v1684_v39 = vpop.f32.mrf.mxu1 }
 0x3df   :  { %v1714_v41 = vadd.f32 %v1671_v38, %v1466_v34  ;;  %v1715_v43 = vadd.f32 %v1684_v39, %v1467_v36  ;;  %v3535_v34 = vor.u32 %v3875_v33, %v3534_v32  ;;  %v3536_v36 = vld [vmem:[#allocation8 + $0xf8] sm:$0xf0]  ;;  %v3462_v38 = vld [vmem:[#allocation8 + $0x60] sm:$0xf]  ;;  %v3858_v39 = vld [vmem:[#allocation8 + $0x6c] sm:$0xf0] }
 0x3e0   :  { %v3456_v33 = vld [vmem:[#allocation8 + $0x58] sm:$0xf0] }
 0x3e1   :  { %v1718_v30 = vmul.f32 0.5, %v1714_v41  ;;  %v1722_v51 = vmul.f32 0.5, %v1715_v43  ;;  %2238 = vmatpush.bf16.msra.mxu2 %v3535_v34  ;;  %v3463_v41 = vor.u32 %v3858_v39, %v3462_v38  ;;  %v3464_v43 = vld [vmem:[#allocation8 + $0x70] sm:$0xf0]  ;;  %v3893_v34 = vld [vmem:[#allocation10 + $0x64] sm:$0xf0] }
 0x3e2   :  { %v3467_v46 = vor.u32 %v3856_v40, %v3464_v43  ;;  %v3892_v38 = vld [vmem:[#allocation10 + $0x64] sm:$0xf]  ;;  %v3608_v39 = vld [vmem:[#allocation10 + $0x68] sm:$0xf0]  ;;  %v3851_v43 = vld [vmem:[#allocation8 + $0x34] sm:$0xf0] }
 0x3e3   :  { %3956 = vtanh.f32 %v1718_v30  ;;  %2216 = vmatpush.bf16.msra.mxu0 %v3463_v41  ;;  %v3446_v30 = vld [vmem:[#allocation8 + $0x40] sm:$0xf]  ;;  %v3611_v40 = vor.u32 %v3892_v38, %v3608_v39  ;;  %v3438_v41 = vld [vmem:[#allocation8 + $0x28] sm:$0xf] }
 0x3e4   :  { %3958 = vtanh.f32 %v1722_v51  ;;  %2229 = vmatpush.bf16.msra.mxu1 %v3467_v46  ;;  %v3854_v51 = vld [vmem:[#allocation8 + $0x4c] sm:$0xf0]  ;;  %v3439_v45 = vor.u32 %v3851_v43, %v3438_v41  ;;  %v3440_v46 = vld [vmem:[#allocation8 + $0x38] sm:$0xf0]  ;;  %v3881_v39 = vld [vmem:[#allocation10 + $0x4] sm:$0xf0] }
 0x3e5   :  { %v1697_v63 = vpop.f32.mrf.mxu2  ;;  %v1710_v0 = vpop.f32.mrf.mxu3  ;;  %2239 = vmatpush.bf16.msra.mxu2 %v3519_v47  ;;  %v3447_v52 = vor.u32 %v3854_v51, %v3446_v30  ;;  %v3598_v47 = vld [vmem:[#allocation10 + $0x50] sm:$0xf]  ;;  %v3443_v50 = vor.u32 %v3849_v44, %v3440_v46  ;;  %v3890_v30 = vld [vmem:[#allocation10 + $0x54] sm:$0xf]  ;;  %v3600_v51 = vld [vmem:[#allocation10 + $0x58] sm:$0xf0] }
 0x3e6   :  { %v1716_v1 = vadd.f32 %v1697_v63, %v1468_v42  ;;  %v1717_v2 = vadd.f32 %v1710_v0, %v1469_v56  ;;  %v1673_v3 = vpop.f32.mrf.mxu0  ;;  %v1686_v54 = vpop.f32.mrf.mxu1  ;;  %v3502_v42 = vld [vmem:[#allocation8 + $0xa8] sm:$0xf]  ;;  %v3451_v56 = vor.u32 %v3852_v53, %v3448_v55  ;;  %v3850_v63 = vld [vmem:[#allocation8 + $0x2c] sm:$0xf0]  ;;  %v3848_v0 = vld [vmem:[#allocation8 + $0x24] sm:$0xf]  ;;  %v3603_v53 = vor.u32 %v3890_v30, %v3600_v51 }
 0x3e7   :  { %2217 = vmatpush.bf16.msra.mxu0 %v3447_v52  ;;  %v3503_v61 = vor.u32 %v3867_v57, %v3502_v42  ;;  %v3486_v3 = vld [vmem:[#allocation8 + $0x88] sm:$0xf]  ;;  %v3863_v54 = vld [vmem:[#allocation8 + $0x94] sm:$0xf0]  ;;  %v1739_v52 = vld [vmem:[#allocation5 + $0x60] sm:$0xff] }
 0x3e8   :  { %3960 = vtanh.f32 %v1716_v1  ;;  %v1727_v9 = vmul.f32 0.5, %v1717_v2  ;;  %2230 = vmatpush.bf16.msra.mxu1 %v3451_v56  ;;  %v3431_v1 = vor.u32 %v3850_v63, %v3430_v62  ;;  %v3432_v2 = vld [vmem:[#allocation8 + $0x30] sm:$0xf0]  ;;  %v3487_v6 = vor.u32 %v3863_v54, %v3486_v3  ;;  %v3422_v55 = vld [vmem:[#allocation8 + $0x8] sm:$0xf] }
 0x3e9   :  { %v3957_v11 = vpop.eup %3956  ;;  %2240 = vmatpush.bf16.msra.mxu2 %v3503_v61  ;;  %v3435_v4 = vor.u32 %v3848_v0, %v3432_v2  ;;  %v3847_v42 = vld [vmem:[#allocation8 + $0x14] sm:$0xf0]  ;;  %v3845_v56 = vld [vmem:[#allocation8 + $0xc] sm:$0xf]  ;;  %v3889_v61 = vld [vmem:[#allocation10 + $0x44] sm:$0xf0]  ;;  %v1742_v2 = vunpack.c.h.bf16 %v1739_v52 }
 0x3ea   :  { %v3959_v12 = vpop.eup %3958  ;;  %v1720_v13 = vadd.f32 1.0, %v3957_v11  ;;  %3962 = vtanh.f32 %v1727_v9  ;;  %v3491_v9 = vor.u32 %v3861_v7, %v3488_v8  ;;  %v3844_v11 = vld [vmem:[#allocation8 + $0x4] sm:$0xf]  ;;  %v3423_v57 = vor.u32 %v3847_v42, %v3422_v55  ;;  %v3592_v0 = vld [vmem:[#allocation10 + $0x48] sm:$0xf0] }
 0x3eb   :  { %v1724_v15 = vadd.f32 1.0, %v3959_v12  ;;  %2218 = vmatpush.bf16.msra.mxu0 %v3431_v1  ;;  %v3415_v12 = vor.u32 %v3846_v5, %v3414_v10  ;;  %v3591_v62 = vor.u32 %v3889_v61, %v3590_v59  ;;  %v3888_v63 = vld [vmem:[#allocation10 + $0x44] sm:$0xf]  ;;  %v1741_v1 = vunpack.c.l.bf16 %v1739_v52  ;;  %v3582_v54 = vld [vmem:[#allocation10 + $0x30] sm:$0xf] }
 0x3ec   :  { %v1721_v17 = vmul.f32 0.5, %v1720_v13  ;;  %2231 = vmatpush.bf16.msra.mxu1 %v3435_v4  ;;  %v3416_v13 = vld [vmem:[#allocation8 + $0x10] sm:$0xf0]  ;;  %v3595_v3 = vor.u32 %v3888_v63, %v3592_v0  ;;  %v3887_v4 = vld [vmem:[#allocation10 + $0x34] sm:$0xf0]  ;;  %v3876_v63 = vld [vmem:[#allocation4] sm:$0xff] }
 0x3ed   :  { %v1725_v18 = vmul.f32 0.5, %v1724_v15  ;;  %v1699_v19 = vpop.f32.mrf.mxu2  ;;  %v1712_v20 = vpop.f32.mrf.mxu3  ;;  %2241 = vmatpush.bf16.msra.mxu2 %v3487_v6  ;;  %v3859_v15 = vld [vmem:[#allocation8 + $0x74] sm:$0xf0]  ;;  %v3419_v16 = vor.u32 %v3844_v11, %v3416_v13  ;;  %v3886_v6 = vld [vmem:[#allocation10 + $0x34] sm:$0xf]  ;;  %v3583_v10 = vor.u32 %v3887_v4, %v3582_v54  ;;  %v3877_v0 = vld [vmem:[#allocation4 + $0x8] sm:$0xff] }
 0x3ee   :  { %v3961_v21 = vpop.eup %3960  ;;  %v3472_v19 = vld [vmem:[#allocation8 + $0x78] sm:$0xf0]  ;;  %v3614_v20 = vld [vmem:[#allocation10 + $0x70] sm:$0xf]  ;;  %v3560_v41 = vld [vmem:[#allocation10 + $0x8] sm:$0xf0] }
 0x3ef   :  { %v1731_v22 = vmul.f32 %v1725_v18, %v4168_v60  ;;  %v1732_v23 = vmul.f32 %v3961_v21, %v1721_v17  ;;  %v3873_v60 = vld [vmem:[#allocation8 + $0xec] sm:$0xf]  ;;  %v3471_v17 = vor.u32 %v3859_v15, %v3470_v14  ;;  %2219 = vmatpush.bf16.msra.mxu0 %v3415_v12  ;;  %v3584_v5 = vld [vmem:[#allocation10 + $0x38] sm:$0xf0]  ;;  %v3574_v14 = vld [vmem:[#allocation10 + $0x20] sm:$0xf] }
 0x3f0   :  { %v3963_v24 = vpop.eup %3962  ;;  %v3539_v37 = vor.u32 %v3873_v60, %v3536_v36  ;;  %v3857_v18 = vld [vmem:[#allocation8 + $0x6c] sm:$0xf]  ;;  %2232 = vmatpush.bf16.msra.mxu1 %v3419_v16  ;;  %v3606_v60 = vld [vmem:[#allocation10 + $0x60] sm:$0xf]  ;;  %v3587_v13 = vor.u32 %v3886_v6, %v3584_v5  ;;  %v3885_v15 = vld [vmem:[#allocation10 + $0x24] sm:$0xf0] }
 0x3f1   :  { %v4172_v25 = vadd.f32 %v1732_v23, %v1731_v22  ;;  %v1729_v26 = vadd.f32 1.0, %v3963_v24  ;;  %v3475_v21 = vor.u32 %v3857_v18, %v3472_v19  ;;  %v3895_v22 = vld [vmem:[#allocation10 + $0x74] sm:$0xf0]  ;;  %v3894_v23 = vld [vmem:[#allocation10 + $0x74] sm:$0xf]  ;;  %2242 = vmatpush.bf16.msra.mxu2 %v3471_v17 }
 0x3f2   :  { %2251 = vmatpush.bf16.msra.mxu3 %v3539_v37  ;;  %v3616_v24 = vld [vmem:[#allocation10 + $0x78] sm:$0xf0]  ;;  %v3607_v37 = vor.u32 %v3893_v34, %v3606_v60  ;;  %v3884_v16 = vld [vmem:[#allocation10 + $0x24] sm:$0xf]  ;;  %v3576_v17 = vld [vmem:[#allocation10 + $0x28] sm:$0xf0] }
 0x3f3   :  { %3964 = vtanh.f32 %v4172_v25  ;;  %v1730_v27 = vmul.f32 0.5, %v1729_v26  ;;  %v3615_v26 = vor.u32 %v3895_v22, %v3614_v20  ;;  %v3575_v20 = vor.u32 %v3885_v15, %v3574_v14  ;;  %v3566_v22 = vld [vmem:[#allocation10 + $0x10] sm:$0xf]  ;;  %v3558_v60 = vld [vmem:[#allocation10] sm:$0xf] }
 0x3f6   :  { %2252 = vmatpush.bf16.msra.mxu3 %v3523_v35  ;;  %v3599_v35 = vor.u32 %v3891_v48, %v3598_v47 }
 0x3f9   :  { %v3965_v28 = vpop.eup %3964 }
 0x3fa   :  { %v1735_v29 = vmul.f32 %v3965_v28, %v1730_v27  ;;  %2253 = vmatpush.bf16.msra.mxu3 %v3507_v49  ;;  %v3619_v27 = vor.u32 %v3894_v23, %v3616_v24  ;;  %v3454_v28 = vld [vmem:[#allocation8 + $0x48] sm:$0xf]  ;;  %v3427_v49 = vor.u32 %v3845_v56, %v3424_v58 }
 0x3fc   :  { %v1736_v31 = vpack.c.bf16 %v1735_v29, %v1735_v29  ;;  %v3855_v29 = vld [vmem:[#allocation8 + $0x54] sm:$0xf0] }
 0x3fd   :  { %v3455_v32 = vor.u32 %v3855_v29, %v3454_v28  ;;  %v3568_v28 = vld [vmem:[#allocation10 + $0x18] sm:$0xf0] }
 0x3fe   :  { %1737 = vst [vmem:[#allocation4 + $0x18] sm:$0xf] %v1736_v31  ;;  %1945 = vmatmul.bf16.vlgmr.msrb.gmra.mxu0 %v1736_v31  ;;  %1958 = vmatmul.bf16.vlgmr.msrb.gmra.mxu1 %v1736_v31 }
 0x3ff   :  { %1971 = vmatmul.bf16.vlgmr.msrb.gmra.mxu2 %v1736_v31  ;;  %1984 = vmatmul.bf16.vlgmr.msrb.gmra.mxu3 %v1736_v31  ;;  %v3853_v31 = vld [vmem:[#allocation8 + $0x4c] sm:$0xf] }
 0x400   :  { %2254 = vmatpush.bf16.msra.mxu3 %v3491_v9  ;;  %2422 = vmatpush.bf16.msrb.mxu0 %v3615_v26  ;;  %v3459_v36 = vor.u32 %v3853_v31, %v3456_v33  ;;  %v1740_v9 = vld [vmem:[#allocation5 + $0x68] sm:$0xff]  ;;  %v3883_v26 = vld [vmem:[#allocation10 + $0x14] sm:$0xf0] }
 0x401   :  { %2451 = vmatpush.bf16.msrb.mxu1 %v3619_v27  ;;  %2243 = vmatpush.bf16.msra.mxu2 %v3455_v32  ;;  %v1743_v23 = vunpack.c.l.bf16 %v1740_v9  ;;  %v1744_v24 = vunpack.c.h.bf16 %v1740_v9  ;;  %v3882_v27 = vld [vmem:[#allocation10 + $0x14] sm:$0xf]  ;;  %v3567_v32 = vor.u32 %v3883_v26, %v3566_v22 }
 0x402   :  { %v3571_v33 = vor.u32 %v3882_v27, %v3568_v28 }
 0x404   :  { %2255 = vmatpush.bf16.msra.mxu3 %v3475_v21  ;;  %2423 = vmatpush.bf16.msrb.mxu0 %v3607_v37  ;;  %v3579_v21 = vor.u32 %v3884_v16, %v3576_v17 }
 0x405   :  { %2452 = vmatpush.bf16.msrb.mxu1 %v3611_v40  ;;  %2244 = vmatpush.bf16.msra.mxu2 %v3439_v45  ;;  %v3880_v40 = vld [vmem:[#allocation10 + $0x4] sm:$0xf]  ;;  %v3559_v45 = vor.u32 %v3881_v39, %v3558_v60 }
 0x406   :  { %v3563_v46 = vor.u32 %v3880_v40, %v3560_v41 }
 0x408   :  { %2256 = vmatpush.bf16.msra.mxu3 %v3459_v36  ;;  %2424 = vmatpush.bf16.msrb.mxu0 %v3599_v35 }
 0x409   :  { %2453 = vmatpush.bf16.msrb.mxu1 %v3603_v53  ;;  %2245 = vmatpush.bf16.msra.mxu2 %v3423_v57 }
 0x40c   :  { %2257 = vmatpush.bf16.msra.mxu3 %v3443_v50  ;;  %2425 = vmatpush.bf16.msrb.mxu0 %v3591_v62 }
 0x40d   :  { %2454 = vmatpush.bf16.msrb.mxu1 %v3595_v3 }
 0x410   :  { %2258 = vmatpush.bf16.msra.mxu3 %v3427_v49  ;;  %2426 = vmatpush.bf16.msrb.mxu0 %v3583_v10 }
 0x411   :  { %2455 = vmatpush.bf16.msrb.mxu1 %v3587_v13 }
 0x414   :  { %2427 = vmatpush.bf16.msrb.mxu0 %v3575_v20 }
 0x415   :  { %2456 = vmatpush.bf16.msrb.mxu1 %v3579_v21 }
 0x418   :  { %2428 = vmatpush.bf16.msrb.mxu0 %v3567_v32 }
 0x419   :  { %2457 = vmatpush.bf16.msrb.mxu1 %v3571_v33 }
 0x41c   :  { %2429 = vmatpush.bf16.msrb.mxu0 %v3559_v45 }
 0x41d   :  { %2458 = vmatpush.bf16.msrb.mxu1 %v3563_v46 }
 0x47b   :  { %v1946_v7 = vpop.f32.mrf.mxu0  ;;  %v1959_v8 = vpop.f32.mrf.mxu1 }
 0x47c   :  { %v1989_v11 = vadd.f32 %v1946_v7, %v1741_v1  ;;  %v1990_v12 = vadd.f32 %v1959_v8, %v1742_v2  ;;  %v2312_v8 = vld [vmem:[%s4188_s3] sm:$0x3]  ;;  %s4085_s3 = smov [#allocation11]  }
 0x47d   :  { %v2314_v9 = vperm.slane %v2312_v8, 0  ;;  %v2315_v10 = vperm.slane %v2312_v8, 1  ;;  %s2500_s17 = sshll.u32 %s4085_s3, 4  ;;  %s2501_s17 = int_to_ptr.vmem [resolvable:$true] %s2500_s17 }
 0x47e   :  { %v1993_v18 = vmul.f32 0.5, %v1989_v11  ;;  %v1997_v19 = vmul.f32 0.5, %v1990_v12 }
 0x480   :  { %3966 = vtanh.f32 %v1993_v18 }
 0x481   :  { %3968 = vtanh.f32 %v1997_v19 }
 0x482   :  { %v1972_v29 = vpop.f32.mrf.mxu2  ;;  %v1985_v31 = vpop.f32.mrf.mxu3 }
 0x483   :  { %v1991_v34 = vadd.f32 %v1972_v29, %v1743_v23  ;;  %v1992_v36 = vadd.f32 %v1985_v31, %v1744_v24  ;;  %v1948_v37 = vpop.f32.mrf.mxu0  ;;  %v1961_v38 = vpop.f32.mrf.mxu1 }
 0x485   :  { %3970 = vtanh.f32 %v1991_v34  ;;  %v2002_v43 = vmul.f32 0.5, %v1992_v36 }
 0x486   :  { %v3967_v44 = vpop.eup %3966 }
 0x487   :  { %v3969_v47 = vpop.eup %3968  ;;  %v1995_v48 = vadd.f32 1.0, %v3967_v44  ;;  %3972 = vtanh.f32 %v2002_v43 }
 0x488   :  { %v1999_v50 = vadd.f32 1.0, %v3969_v47 }
 0x489   :  { %v1996_v35 = vmul.f32 0.5, %v1995_v48 }
 0x48a   :  { %v2000_v30 = vmul.f32 0.5, %v1999_v50  ;;  %v1974_v51 = vpop.f32.mrf.mxu2  ;;  %v1987_v52 = vpop.f32.mrf.mxu3 }
 0x48b   :  { %v3971_v53 = vpop.eup %3970 }
 0x48c   :  { %v2006_v55 = vmul.f32 %v2000_v30, %v4172_v25  ;;  %v2007_v42 = vmul.f32 %v3971_v53, %v1996_v35  ;;  %v3878_v25 = vld [vmem:[#allocation4 + $0x10] sm:$0xff] }
 0x48d   :  { %v3973_v56 = vpop.eup %3972 }
 0x48e   :  { %v2008_v57 = vadd.f32 %v2007_v42, %v2006_v55  ;;  %v2004_v58 = vadd.f32 1.0, %v3973_v56 }
 0x490   :  { %3974 = vtanh.f32 %v2008_v57  ;;  %v2005_v59 = vmul.f32 0.5, %v2004_v58 }
 0x496   :  { %v3975_v61 = vpop.eup %3974 }
 0x497   :  { %v2010_v49 = vmul.f32 %v3975_v61, %v2005_v59 }
 0x499   :  { %v2011_v62 = vpack.c.bf16 %v2010_v49, %v2010_v49 }
 0x49b   :  { %2012 = vst [vmem:[#allocation4 + $0x1c] sm:$0xf] %v2011_v62  ;;  %2220 = vmatmul.bf16.vlgmr.msra.gmra.mxu0 %v2011_v62  ;;  %2233 = vmatmul.bf16.vlgmr.msra.gmra.mxu1 %v2011_v62 }
 0x49c   :  { %2246 = vmatmul.bf16.vlgmr.msra.gmra.mxu2 %v2011_v62  ;;  %2259 = vmatmul.bf16.vlgmr.msra.gmra.mxu3 %v2011_v62 }
 0x4a2   :  { %v3879_v1 = vld [vmem:[#allocation4 + $0x18] sm:$0xff] }
 0x4ab   :  { %2430 = vmatmul.bf16.vlgmr.msrb.gmra.mxu0 %v3876_v63  ;;  %2459 = vmatmul.bf16.vlgmr.msrb.gmra.mxu1 %v3876_v63 }
 0x4bb   :  { %2435 = vmatmul.bf16.gmra.mxu0 %v3877_v0  ;;  %2464 = vmatmul.bf16.gmra.mxu1 %v3877_v0 }
 0x4cb   :  { %2440 = vmatmul.bf16.gmra.mxu0 %v3878_v25  ;;  %2469 = vmatmul.bf16.gmra.mxu1 %v3878_v25 }
 0x4db   :  { %2445 = vmatmul.bf16.gmra.mxu0 %v3879_v1  ;;  %2474 = vmatmul.bf16.gmra.mxu1 %v3879_v1 }
 0x518   :  { %v2221_v2 = vpop.f32.mrf.mxu0  ;;  %v2234_v3 = vpop.f32.mrf.mxu1 }
 0x51f   :  { %v2247_v54 = vpop.f32.mrf.mxu2  ;;  %v2260_v4 = vpop.f32.mrf.mxu3 }
 0x520   :  { %v2223_v6 = vpop.f32.mrf.mxu0  ;;  %v2236_v7 = vpop.f32.mrf.mxu1 }
 0x527   :  { %v2249_v5 = vpop.f32.mrf.mxu2  ;;  %v2262_v11 = vpop.f32.mrf.mxu3 }
 0x528   :  { %v2431_v12 = vpop.f32.mrf.mxu0  ;;  %v2460_v13 = vpop.f32.mrf.mxu1 }
 0x529   :  { %v2432_v14 = vadd.f32 %v2431_v12, %v2314_v9  ;;  %v2461_v15 = vadd.f32 %v2460_v13, %v2315_v10 }
 0x52b   :  { %2480 = vst [vmem:[#allocation11] sm:$0xff] %v2432_v14 }
 0x52c   :  { %2481 = vst [vmem:[#allocation11 + $0x8] sm:$0xff] %v2461_v15 }
 0x530   :  { %v2433_v16 = vpop.f32.mrf.mxu0  ;;  %v2462_v17 = vpop.f32.mrf.mxu1 }
 0x531   :  { %v2434_v18 = vadd.f32 %v2433_v16, %v2314_v9  ;;  %v2463_v19 = vadd.f32 %v2462_v17, %v2315_v10 }
 0x533   :  { %2482 = vst [vmem:[#allocation11 + $0x10] sm:$0xff] %v2434_v18 }
 0x534   :  { %2483 = vst [vmem:[#allocation11 + $0x18] sm:$0xff] %v2463_v19 }
 0x538   :  { %v2436_v20 = vpop.f32.mrf.mxu0  ;;  %v2465_v21 = vpop.f32.mrf.mxu1 }
 0x539   :  { %v2437_v22 = vadd.f32 %v2436_v20, %v2314_v9  ;;  %v2466_v23 = vadd.f32 %v2465_v21, %v2315_v10 }
 0x53b   :  { %2484 = vst [vmem:[#allocation11 + $0x20] sm:$0xff] %v2437_v22 }
 0x53c   :  { %2485 = vst [vmem:[#allocation11 + $0x28] sm:$0xff] %v2466_v23 }
 0x540   :  { %v2438_v24 = vpop.f32.mrf.mxu0  ;;  %v2467_v26 = vpop.f32.mrf.mxu1 }
 0x541   :  { %v2439_v27 = vadd.f32 %v2438_v24, %v2314_v9  ;;  %v2468_v28 = vadd.f32 %v2467_v26, %v2315_v10 }
 0x543   :  { %2486 = vst [vmem:[#allocation11 + $0x30] sm:$0xff] %v2439_v27 }
 0x544   :  { %2487 = vst [vmem:[#allocation11 + $0x38] sm:$0xff] %v2468_v28 }
 0x548   :  { %v2441_v29 = vpop.f32.mrf.mxu0  ;;  %v2470_v31 = vpop.f32.mrf.mxu1 }
 0x549   :  { %v2442_v32 = vadd.f32 %v2441_v29, %v2314_v9  ;;  %v2471_v33 = vadd.f32 %v2470_v31, %v2315_v10 }
 0x54b   :  { %2488 = vst [vmem:[#allocation11 + $0x40] sm:$0xff] %v2442_v32 }
 0x54c   :  { %2489 = vst [vmem:[#allocation11 + $0x48] sm:$0xff] %v2471_v33 }
 0x550   :  { %v2443_v60 = vpop.f32.mrf.mxu0  ;;  %v2472_v34 = vpop.f32.mrf.mxu1 }
 0x551   :  { %v2444_v36 = vadd.f32 %v2443_v60, %v2314_v9  ;;  %v2473_v37 = vadd.f32 %v2472_v34, %v2315_v10 }
 0x553   :  { %2490 = vst [vmem:[#allocation11 + $0x50] sm:$0xff] %v2444_v36 }
 0x554   :  { %2491 = vst [vmem:[#allocation11 + $0x58] sm:$0xff] %v2473_v37 }
 0x558   :  { %v2446_v38 = vpop.f32.mrf.mxu0  ;;  %v2475_v39 = vpop.f32.mrf.mxu1 }
 0x559   :  { %v2447_v40 = vadd.f32 %v2446_v38, %v2314_v9  ;;  %v2476_v41 = vadd.f32 %v2475_v39, %v2315_v10 }
 0x55b   :  { %2492 = vst [vmem:[#allocation11 + $0x60] sm:$0xff] %v2447_v40 }
 0x55c   :  { %2493 = vst [vmem:[#allocation11 + $0x68] sm:$0xff] %v2476_v41 }
 0x560   :  { %v2448_v43 = vpop.f32.mrf.mxu0  ;;  %v2477_v44 = vpop.f32.mrf.mxu1 }
 0x561   :  { %v2449_v45 = vadd.f32 %v2448_v43, %v2314_v9  ;;  %v2478_v46 = vadd.f32 %v2477_v44, %v2315_v10 }
 0x563   :  { %2494 = vst [vmem:[#allocation11 + $0x70] sm:$0xff] %v2449_v45 }
 0x564   :  { %2495 = vst [vmem:[#allocation11 + $0x78] sm:$0xff] %v2478_v46 }
 0x565   :  { %2508 = dma.vmem_to_hbm [thread:$0]  %s2501_s17, 2048, %s2503_s20, [#allocation7], %s4079_s29, %s4079_s29, %s4080_s30  }
 0x566   :  { %4076 = dma.done.wait [#allocation7], 2048  }
 0x567   :  { %4077 = vsyncadd [#allocation7], 4294965248 }
 0x568   :  { %2513 = vsyncpa [#allocation6], 1 }
 0x569   :  { %2514 = vsyncpa [#allocation9], 1 }
 0x56a   :  { %2515 = vsyncpa [#allocation7], 1 }

</bundles_post_ra>
